<compile_context>
chip_gen: v7x
topology: tpu7x:2x2x1
jax: 0.10.0
libtpu: 0.0.40
codegen_flags: <defaults>
</compile_context>

<pallas_src>
import jax
import jax.numpy as jnp
from jax.experimental import pallas as pl
from jax.experimental.pallas import tpu as pltpu

IN_DIM = 28 * 28          # 784
IN_PAD = 896              # 784 padded up to a multiple of 128
H1, H2, H3, OUT = 1024, 512, 256, 1
LEAK = 0.2


def _leaky_relu(x):
    return jnp.where(x > 0, x, LEAK * x)


def discriminator_kernel(x_ref,
                         w1_ref, b1_ref,
                         w2_ref, b2_ref,
                         w3_ref, b3_ref,
                         w4_ref, b4_ref,
                         o_ref):
    """Fused 4-layer MLP + LeakyReLU + Sigmoid on one batch tile.

    x_ref        [TB, 896]  bf16
    w1/w2/w3     bf16 weight matrices, b1/b2/b3 f32 row biases
    w4_ref       [1, 256]   f32 (last layer as a row vector)
    b4_ref       [1, 1]     f32
    o_ref        [TB, 1]    f32
    """
    x = x_ref[...]                                                      # bf16 [TB, 896]

    h = jnp.dot(x, w1_ref[...], preferred_element_type=jnp.float32)    # f32 [TB, 1024]
    h = _leaky_relu(h + b1_ref[...])
    # Dropout(0.3): identity in eval mode.

    h = jnp.dot(h.astype(jnp.bfloat16), w2_ref[...],
                preferred_element_type=jnp.float32)                     # f32 [TB, 512]
    h = _leaky_relu(h + b2_ref[...])
    # Dropout(0.3): identity in eval mode.

    h = jnp.dot(h.astype(jnp.bfloat16), w3_ref[...],
                preferred_element_type=jnp.float32)                     # f32 [TB, 256]
    h = _leaky_relu(h + b3_ref[...])

    # Final 256 -> 1 layer: VPU multiply + lane reduction (avoids a nearly
    # empty MXU pass with N=1). Done in f32 on the VPU/XLU.
    logits = jnp.sum(h * w4_ref[...], axis=-1, keepdims=True) + b4_ref[...]
    o_ref[...] = jax.nn.sigmoid(logits)                                 # f32 [TB, 1]


def discriminator2_forward(img, params, *, batch_tile=128):
    """img: [B, 1, 28, 28] float32 (NCHW). Returns [B, 1] float32."""
    (w1, b1), (w2, b2), (w3, b3), (w4, b4) = params
    B = img.shape[0]

    # ---- plain-JAX glue: flatten, pad features to 896, cast matmul inputs to bf16
    x = img.reshape(B, IN_DIM)
    x = jnp.pad(x, ((0, 0), (0, IN_PAD - IN_DIM))).astype(jnp.bfloat16)   # [B, 896]
    w1p = jnp.pad(w1, ((0, IN_PAD - IN_DIM), (0, 0))).astype(jnp.bfloat16)  # [896, 1024]
    w2b = w2.astype(jnp.bfloat16)                                          # [1024, 512]
    w3b = w3.astype(jnp.bfloat16)                                          # [512, 256]
    w4row = w4.reshape(1, H3).astype(jnp.float32)                          # [1, 256]
    b4s = b4.reshape(1, 1).astype(jnp.float32)                             # [1, 1]
    b1f = b1.astype(jnp.float32)
    b2f = b2.astype(jnp.float32)
    b3f = b3.astype(jnp.float32)

    # ---- batch tiling: big tiles for MXU utilization, shrink / pad for odd B
    tb = batch_tile if B >= batch_tile else B
    Bp = pl.cdiv(B, tb) * tb
    if Bp != B:
        x = jnp.pad(x, ((0, Bp - B), (0, 0)))
    grid = (Bp // tb,)

    def batch_map(i):
        return (i, 0)

    def full_map(i):
        return (0, 0)

    out = pl.pallas_call(
        discriminator_kernel,
        out_shape=jax.ShapeDtypeStruct((Bp, OUT), jnp.float32),
        grid_spec=pltpu.PrefetchScalarGridSpec(
            num_scalar_prefetch=0,
            grid=grid,
            in_specs=[
                pl.BlockSpec((tb, IN_PAD), batch_map),     # x tile (bf16)
                pl.BlockSpec((IN_PAD, H1), full_map),      # w1 (bf16)
                pl.BlockSpec((1, H1), full_map),           # b1 (f32)
                pl.BlockSpec((H1, H2), full_map),          # w2 (bf16)
                pl.BlockSpec((1, H2), full_map),           # b2 (f32)
                pl.BlockSpec((H2, H3), full_map),          # w3 (bf16)
                pl.BlockSpec((1, H3), full_map),           # b3 (f32)
                pl.BlockSpec((1, H3), full_map),           # w4 row (f32)
                pl.BlockSpec((1, 1), full_map),            # b4 (f32)
            ],
            out_specs=pl.BlockSpec((tb, OUT), batch_map),
        ),
        compiler_params=pltpu.CompilerParams(
            dimension_semantics=("parallel",),   # multi-step grids shard across v7x TCs
            vmem_limit_bytes=32 << 20,           # real footprint ~10 MiB; safe on 64 MiB v7x
        ),
    )(x, w1p, b1f, w2b, b2f, w3b, b3f, w4row, b4s)
    return out[:B]


def init_params(key):
    """Deterministic synthetic parameters (shapes match nn.Linear layers)."""
    ks = jax.random.split(key, 8)

    def linear(kw, kb, fan_in, fan_out):
        bound = 1.0 / jnp.sqrt(fan_in)
        w = jax.random.uniform(kw, (fan_in, fan_out), jnp.float32, -bound, bound)
        b = jax.random.uniform(kb, (1, fan_out), jnp.float32, -bound, bound)
        return w, b

    return (
        linear(ks[0], ks[1], IN_DIM, H1),
        linear(ks[2], ks[3], H1, H2),
        linear(ks[4], ks[5], H2, H3),
        linear(ks[6], ks[7], H3, OUT),
    )


def _reference(img, params):
    """Plain-JAX reference mimicking the kernel's bf16 matmul inputs / f32 accum."""
    (w1, b1), (w2, b2), (w3, b3), (w4, b4) = params
    h = img.reshape(img.shape[0], -1)
    for w, b in ((w1, b1), (w2, b2), (w3, b3)):
        hb = h.astype(jnp.bfloat16).astype(jnp.float32)
        wb = w.astype(jnp.bfloat16).astype(jnp.float32)
        h = hb @ wb + b
        h = jnp.where(h > 0, h, LEAK * h)
    logits = h @ w4 + b4
    return jax.nn.sigmoid(logits)


if __name__ == "__main__":
    key = jax.random.PRNGKey(0)
    k_img, k_par = jax.random.split(key)

    B = 8
    img = jax.random.normal(k_img, (B, 1, 28, 28), jnp.float32)   # NCHW, MNIST-like
    params = init_params(k_par)

    out = discriminator2_forward(img, params)
    out = jax.block_until_ready(out)

    ref = _reference(img, params)
    assert out.shape == (B, 1)
    assert jnp.allclose(out, ref, atol=5e-3, rtol=5e-3), (
        f"max abs diff {jnp.max(jnp.abs(out - ref))}")

    print("KERNEL_OK")
</pallas_src>

<mosaic_0001>
module attributes {stable_mosaic.version = 11 : i64} {
  func.func @discriminator_kernel(%arg0: i32, %arg1: memref<8x896xbf16, #tpu.memory_space<vmem>>, %arg2: memref<896x1024xbf16, #tpu.memory_space<vmem>>, %arg3: memref<1x1024xf32, #tpu.memory_space<vmem>>, %arg4: memref<1024x512xbf16, #tpu.memory_space<vmem>>, %arg5: memref<1x512xf32, #tpu.memory_space<vmem>>, %arg6: memref<512x256xbf16, #tpu.memory_space<vmem>>, %arg7: memref<1x256xf32, #tpu.memory_space<vmem>>, %arg8: memref<1x256xf32, #tpu.memory_space<vmem>>, %arg9: memref<1x1xf32, #tpu.memory_space<vmem>>, %arg10: memref<8x1xf32, #tpu.memory_space<vmem>>) attributes {dimension_semantics = [#tpu.dimension_semantics<parallel>], iteration_bounds = array<i64: 1>, scalar_prefetch = 0 : i64, scratch_operands = 0 : i64, tpu.core_type = #tpu.core_type<tc>, window_params = [{transform_indices = @transform_0, window_bounds = array<i64: 8, 896>}, {pipeline_mode = #tpu.pipeline_mode<synchronous>, transform_indices = @transform_1, window_bounds = array<i64: 896, 1024>}, {pipeline_mode = #tpu.pipeline_mode<synchronous>, transform_indices = @transform_2, window_bounds = array<i64: 1, 1024>}, {pipeline_mode = #tpu.pipeline_mode<synchronous>, transform_indices = @transform_3, window_bounds = array<i64: 1024, 512>}, {pipeline_mode = #tpu.pipeline_mode<synchronous>, transform_indices = @transform_4, window_bounds = array<i64: 1, 512>}, {pipeline_mode = #tpu.pipeline_mode<synchronous>, transform_indices = @transform_5, window_bounds = array<i64: 512, 256>}, {pipeline_mode = #tpu.pipeline_mode<synchronous>, transform_indices = @transform_6, window_bounds = array<i64: 1, 256>}, {pipeline_mode = #tpu.pipeline_mode<synchronous>, transform_indices = @transform_7, window_bounds = array<i64: 1, 256>}, {pipeline_mode = #tpu.pipeline_mode<synchronous>, transform_indices = @transform_8, window_bounds = array<i64: 1, 1>}, {transform_indices = @transform_9, window_bounds = array<i64: 8, 1>}]} {
    %c0 = arith.constant 0 : index
    %c0_0 = arith.constant 0 : index
    %0 = vector.load %arg1[%c0, %c0_0] : memref<8x896xbf16, #tpu.memory_space<vmem>>, vector<8x896xbf16>
    %c0_1 = arith.constant 0 : index
    %c0_2 = arith.constant 0 : index
    %1 = vector.load %arg2[%c0_1, %c0_2] : memref<896x1024xbf16, #tpu.memory_space<vmem>>, vector<896x1024xbf16>
    %cst = arith.constant dense<0.000000e+00> : vector<8x1024xf32>
    %2 = tpu.matmul %0, %1, %cst {dimension_numbers = #tpu.dot_dimension_numbers<[1], [0], [0], [1], [0, 0, 1, 1], [], []>} : vector<8x896xbf16>, vector<896x1024xbf16>, vector<8x1024xf32> -> vector<8x1024xf32>
    %c0_3 = arith.constant 0 : index
    %c0_4 = arith.constant 0 : index
    %3 = vector.load %arg3[%c0_3, %c0_4] : memref<1x1024xf32, #tpu.memory_space<vmem>>, vector<1x1024xf32>
    %4 = vector.broadcast %3 : vector<1x1024xf32> to vector<8x1024xf32>
    %5 = arith.addf %2, %4 : vector<8x1024xf32>
    %cst_5 = arith.constant 0.000000e+00 : f32
    %6 = vector.broadcast %cst_5 : f32 to vector<8x1024xf32>
    %7 = arith.cmpf ogt, %5, %6 : vector<8x1024xf32>
    %cst_6 = arith.constant 2.000000e-01 : f32
    %8 = vector.broadcast %cst_6 : f32 to vector<8x1024xf32>
    %9 = arith.mulf %8, %5 : vector<8x1024xf32>
    %10 = arith.select %7, %5, %9 : vector<8x1024xi1>, vector<8x1024xf32>
    %11 = arith.truncf %10 : vector<8x1024xf32> to vector<8x1024xbf16>
    %c0_7 = arith.constant 0 : index
    %c0_8 = arith.constant 0 : index
    %12 = vector.load %arg4[%c0_7, %c0_8] : memref<1024x512xbf16, #tpu.memory_space<vmem>>, vector<1024x512xbf16>
    %cst_9 = arith.constant dense<0.000000e+00> : vector<8x512xf32>
    %13 = tpu.matmul %11, %12, %cst_9 {dimension_numbers = #tpu.dot_dimension_numbers<[1], [0], [0], [1], [0, 0, 1, 1], [], []>} : vector<8x1024xbf16>, vector<1024x512xbf16>, vector<8x512xf32> -> vector<8x512xf32>
    %c0_10 = arith.constant 0 : index
    %c0_11 = arith.constant 0 : index
    %14 = vector.load %arg5[%c0_10, %c0_11] : memref<1x512xf32, #tpu.memory_space<vmem>>, vector<1x512xf32>
    %15 = vector.broadcast %14 : vector<1x512xf32> to vector<8x512xf32>
    %16 = arith.addf %13, %15 : vector<8x512xf32>
    %cst_12 = arith.constant 0.000000e+00 : f32
    %17 = vector.broadcast %cst_12 : f32 to vector<8x512xf32>
    %18 = arith.cmpf ogt, %16, %17 : vector<8x512xf32>
    %cst_13 = arith.constant 2.000000e-01 : f32
    %19 = vector.broadcast %cst_13 : f32 to vector<8x512xf32>
    %20 = arith.mulf %19, %16 : vector<8x512xf32>
    %21 = arith.select %18, %16, %20 : vector<8x512xi1>, vector<8x512xf32>
    %22 = arith.truncf %21 : vector<8x512xf32> to vector<8x512xbf16>
    %c0_14 = arith.constant 0 : index
    %c0_15 = arith.constant 0 : index
    %23 = vector.load %arg6[%c0_14, %c0_15] : memref<512x256xbf16, #tpu.memory_space<vmem>>, vector<512x256xbf16>
    %cst_16 = arith.constant dense<0.000000e+00> : vector<8x256xf32>
    %24 = tpu.matmul %22, %23, %cst_16 {dimension_numbers = #tpu.dot_dimension_numbers<[1], [0], [0], [1], [0, 0, 1, 1], [], []>} : vector<8x512xbf16>, vector<512x256xbf16>, vector<8x256xf32> -> vector<8x256xf32>
    %c0_17 = arith.constant 0 : index
    %c0_18 = arith.constant 0 : index
    %25 = vector.load %arg7[%c0_17, %c0_18] : memref<1x256xf32, #tpu.memory_space<vmem>>, vector<1x256xf32>
    %26 = vector.broadcast %25 : vector<1x256xf32> to vector<8x256xf32>
    %27 = arith.addf %24, %26 : vector<8x256xf32>
    %cst_19 = arith.constant 0.000000e+00 : f32
    %28 = vector.broadcast %cst_19 : f32 to vector<8x256xf32>
    %29 = arith.cmpf ogt, %27, %28 : vector<8x256xf32>
    %cst_20 = arith.constant 2.000000e-01 : f32
    %30 = vector.broadcast %cst_20 : f32 to vector<8x256xf32>
    %31 = arith.mulf %30, %27 : vector<8x256xf32>
    %32 = arith.select %29, %27, %31 : vector<8x256xi1>, vector<8x256xf32>
    %c0_21 = arith.constant 0 : index
    %c0_22 = arith.constant 0 : index
    %33 = vector.load %arg8[%c0_21, %c0_22] : memref<1x256xf32, #tpu.memory_space<vmem>>, vector<1x256xf32>
    %34 = vector.broadcast %33 : vector<1x256xf32> to vector<8x256xf32>
    %35 = arith.mulf %32, %34 : vector<8x256xf32>
    %cst_23 = arith.constant dense<0.000000e+00> : vector<8xf32>
    %36 = vector.multi_reduction <add>, %35, %cst_23 [1] : vector<8x256xf32> to vector<8xf32>
    %37 = vector.shape_cast %36 : vector<8xf32> to vector<8x1xf32>
    %c0_24 = arith.constant 0 : index
    %c0_25 = arith.constant 0 : index
    %38 = vector.load %arg9[%c0_24, %c0_25] : memref<1x1xf32, #tpu.memory_space<vmem>>, vector<1x1xf32>
    %39 = vector.broadcast %38 : vector<1x1xf32> to vector<8x1xf32>
    %40 = arith.addf %37, %39 : vector<8x1xf32>
    %41 = arith.negf %40 : vector<8x1xf32>
    %42 = math.exp %41 : vector<8x1xf32>
    %cst_26 = arith.constant 1.000000e+00 : f32
    %43 = vector.broadcast %cst_26 : f32 to vector<8x1xf32>
    %44 = arith.addf %43, %42 : vector<8x1xf32>
    %45 = arith.divf %43, %44 : vector<8x1xf32>
    %c0_27 = arith.constant 0 : index
    %c0_28 = arith.constant 0 : index
    %46 = vector.load %arg10[%c0_27, %c0_28] : memref<8x1xf32, #tpu.memory_space<vmem>>, vector<8x1xf32>
    tpu.vector_store %arg10[%c0_27, %c0_28], %45 {strides = array<i32>} : memref<8x1xf32, #tpu.memory_space<vmem>>, vector<8x1xf32>,
    return
  }
  func.func @transform_0(%arg0: i32) -> (i32, i32) {
    %c0_i32 = arith.constant 0 : i32
    %c0_i32_0 = arith.constant 0 : i32
    return %arg0, %c0_i32 : i32, i32
  }
  func.func @transform_1(%arg0: i32) -> (i32, i32) {
    %c0_i32 = arith.constant 0 : i32
    %c0_i32_0 = arith.constant 0 : i32
    %c0_i32_1 = arith.constant 0 : i32
    return %c0_i32, %c0_i32_0 : i32, i32
  }
  func.func @transform_2(%arg0: i32) -> (i32, i32) {
    %c0_i32 = arith.constant 0 : i32
    %c0_i32_0 = arith.constant 0 : i32
    %c0_i32_1 = arith.constant 0 : i32
    return %c0_i32, %c0_i32_0 : i32, i32
  }
  func.func @transform_3(%arg0: i32) -> (i32, i32) {
    %c0_i32 = arith.constant 0 : i32
    %c0_i32_0 = arith.constant 0 : i32
    %c0_i32_1 = arith.constant 0 : i32
    return %c0_i32, %c0_i32_0 : i32, i32
  }
  func.func @transform_4(%arg0: i32) -> (i32, i32) {
    %c0_i32 = arith.constant 0 : i32
    %c0_i32_0 = arith.constant 0 : i32
    %c0_i32_1 = arith.constant 0 : i32
    return %c0_i32, %c0_i32_0 : i32, i32
  }
  func.func @transform_5(%arg0: i32) -> (i32, i32) {
    %c0_i32 = arith.constant 0 : i32
    %c0_i32_0 = arith.constant 0 : i32
    %c0_i32_1 = arith.constant 0 : i32
    return %c0_i32, %c0_i32_0 : i32, i32
  }
  func.func @transform_6(%arg0: i32) -> (i32, i32) {
    %c0_i32 = arith.constant 0 : i32
    %c0_i32_0 = arith.constant 0 : i32
    %c0_i32_1 = arith.constant 0 : i32
    return %c0_i32, %c0_i32_0 : i32, i32
  }
  func.func @transform_7(%arg0: i32) -> (i32, i32) {
    %c0_i32 = arith.constant 0 : i32
    %c0_i32_0 = arith.constant 0 : i32
    %c0_i32_1 = arith.constant 0 : i32
    return %c0_i32, %c0_i32_0 : i32, i32
  }
  func.func @transform_8(%arg0: i32) -> (i32, i32) {
    %c0_i32 = arith.constant 0 : i32
    %c0_i32_0 = arith.constant 0 : i32
    %c0_i32_1 = arith.constant 0 : i32
    return %c0_i32, %c0_i32_0 : i32, i32
  }
  func.func @transform_9(%arg0: i32) -> (i32, i32) {
    %c0_i32 = arith.constant 0 : i32
    %c0_i32_0 = arith.constant 0 : i32
    return %arg0, %c0_i32 : i32, i32
  }
}

</mosaic_0001>

<bundles_post_ra>
// kernel: tpu_custom_call.1
= control target key start
LH: loop header
LB: loop body
LE: loop exit
PB: predicated region body
PF: predicated region fallthrough
CT: control target
= control target key end

     0   :  { %s7885_s0 = inlined_call_operand.hbm [shape: bf16[8,896], index: 0, kind: input, shape index: {}]   ;;  %s7886_s1 = inlined_call_operand.hbm [shape: bf16[896,1024], index: 1, kind: input, shape index: {}]   ;;  %s7887_s2 = inlined_call_operand.hbm [shape: f32[1,1024], index: 2, kind: input, shape index: {}]   ;;  %s7888_s3 = inlined_call_operand.hbm [shape: bf16[1024,512], index: 3, kind: input, shape index: {}]   ;;  %s7889_s4 = inlined_call_operand.hbm [shape: f32[1,512], index: 4, kind: input, shape index: {}]   ;;  %s7890_s5 = inlined_call_operand.hbm [shape: bf16[512,256], index: 5, kind: input, shape index: {}]   ;;  %s7891_s6 = inlined_call_operand.hbm [shape: f32[1,256], index: 6, kind: input, shape index: {}]   ;;  %s7892_s7 = inlined_call_operand.hbm [shape: f32[1,256], index: 7, kind: input, shape index: {}]   ;;  %s7893_s8 = inlined_call_operand.<no memory space> [shape: f32[1,1], index: 8, kind: input, shape index: {}]   ;;  %s7894_s9 = inlined_call_operand.vmem [shape: f32[8,1], index: 9, kind: output, shape index: {}]  }
   0x1   :  { %v14_v0 = vstv %s7893_s8 }
   0x2   :  { %15 = vst [vmem:[#allocation2] sm:$0x1] %v14_v0 }
   0x3   :  { %16 = vsyncpa [#allocation4], 0 }
   0x4   :  { %17 = vsyncpa [#allocation6], 0 }
   0x5   :  { %18 = vsyncpa [#allocation9], 0 }
   0x6   :  { %19 = vsyncpa [#allocation12], 0 }
   0x7   :  { %20 = vsyncpa [#allocation15], 0  ;;  %s7569_s11 = smov [#allocation5]   ;;  %s7383_s15 = scalar_lea.hbm %s7886_s1, 57344 }
   0x8   :  { %s36_s12 = sshll.u32 %s7569_s11, 4  ;;  %p7384_p0 = scmp.ne.s32.totalorder %s7886_s1, %s7383_s15  ;;  %s37_s12 = int_to_ptr.vmem [resolvable:$true] %s36_s12 }
   0x9   :  { %p7387_p1 = scmp.lt.u32.totalorder %s7383_s15, %s7886_s1 }
   0xb   :  { %p7389_p2 = pnand %p7387_p1, %p7384_p0 }
   0xd   :  { %7392 = shalt.err (!%p7389_p2)
}
   0xe   :  { %s7393_s8 = scalar_lea.vmem %s37_s12, 57344  ;;  %p7398_p4 = scmp.lt.s32.totalorder %s37_s12, %s37_s12 }
   0xf   :  { %p7394_p3 = scmp.ne.s32.totalorder %s37_s12, %s7393_s8  ;;  %p7399_p5 = scmp.lt.s32.totalorder %s7393_s8, %s7393_s8 }
  0x11   :  { %p7400_p6 = por %p7399_p5, %p7398_p4 }
  0x13   :  { %p7401_p7 = pnand %p7400_p6, %p7394_p3 }
  0x15   :  { %7404 = shalt.err (!%p7401_p7)
}
  0x16   :  { %s7570_s20 = smov 512   ;;  %s7571_s21 = smov 32  }
  0x17   :  { %42 = dma.hbm_to_vmem [thread:$0]  %s7886_s1, 57344, %s37_s12, [#allocation6], %s7570_s20, %s7570_s20, %s7571_s21  }
  0x18   :  { %s7572_s24 = smov [#allocation8]   ;;  %s7405_s28 = scalar_lea.hbm %s7888_s3, 32768 }
  0x19   :  { %s58_s25 = sshll.u32 %s7572_s24, 4  ;;  %p7406_p8 = scmp.ne.s32.totalorder %s7888_s3, %s7405_s28  ;;  %s59_s25 = int_to_ptr.vmem [resolvable:$true] %s58_s25 }
  0x1a   :  { %p7409_p9 = scmp.lt.u32.totalorder %s7405_s28, %s7888_s3 }
  0x1c   :  { %p7411_p10 = pnand %p7409_p9, %p7406_p8 }
  0x1e   :  { %7414 = shalt.err (!%p7411_p10)
}
  0x1f   :  { %s7415_s13 = scalar_lea.vmem %s59_s25, 32768  ;;  %p7420_p12 = scmp.lt.s32.totalorder %s59_s25, %s59_s25 }
  0x20   :  { %p7416_p11 = scmp.ne.s32.totalorder %s59_s25, %s7415_s13  ;;  %p7421_p13 = scmp.lt.s32.totalorder %s7415_s13, %s7415_s13 }
  0x22   :  { %p7422_p0 = por %p7421_p13, %p7420_p12 }
  0x24   :  { %p7423_p1 = pnand %p7422_p0, %p7416_p11 }
  0x26   :  { %7426 = shalt.err (!%p7423_p1)
}
  0x27   :  { %s7573_s1 = smov 256   ;;  %s7574_s12 = smov 16  }
  0x28   :  { %64 = dma.hbm_to_vmem [thread:$0]  %s7888_s3, 32768, %s59_s25, [#allocation9], %s7573_s1, %s7573_s1, %s7574_s12  }
  0x29   :  { %s7575_s16 = smov [#allocation11]   ;;  %s7427_s8 = scalar_lea.hbm %s7890_s5, 8192 }
  0x2a   :  { %s80_s17 = sshll.u32 %s7575_s16, 4  ;;  %p7428_p2 = scmp.ne.s32.totalorder %s7890_s5, %s7427_s8  ;;  %s81_s17 = int_to_ptr.vmem [resolvable:$true] %s80_s17 }
  0x2b   :  { %p7431_p3 = scmp.lt.u32.totalorder %s7427_s8, %s7890_s5 }
  0x2d   :  { %p7433_p4 = pnand %p7431_p3, %p7428_p2 }
  0x2f   :  { %7436 = shalt.err (!%p7433_p4)
}
  0x30   :  { %s7437_s24 = scalar_lea.vmem %s81_s17, 8192  ;;  %p7442_p6 = scmp.lt.s32.totalorder %s81_s17, %s81_s17 }
  0x31   :  { %p7438_p5 = scmp.ne.s32.totalorder %s81_s17, %s7437_s24  ;;  %p7443_p7 = scmp.lt.s32.totalorder %s7437_s24, %s7437_s24 }
  0x33   :  { %p7444_p8 = por %p7443_p7, %p7442_p6 }
  0x35   :  { %p7445_p9 = pnand %p7444_p8, %p7438_p5 }
  0x37   :  { %7448 = shalt.err (!%p7445_p9)
}
  0x38   :  { %s7576_s3 = smov 128   ;;  %s7577_s25 = smov 8  }
  0x39   :  { %86 = dma.hbm_to_vmem [thread:$0]  %s7890_s5, 8192, %s81_s17, [#allocation12], %s7576_s3, %s7576_s3, %s7577_s25  }
  0x3a   :  { %s7578_s28 = smov [#allocation3]   ;;  %s7579_s30 = smov [#allocation7]  }
  0x3b   :  { %s27_s29 = sshll.u32 %s7578_s28, 4  ;;  %s49_s10 = sshll.u32 %s7579_s30, 4  ;;  %s28_s29 = int_to_ptr.vmem [resolvable:$true] %s27_s29  ;;  %s50_s10 = int_to_ptr.vmem [resolvable:$true] %s49_s10 }
  0x3c   :  { %s7449_s1 = scalar_lea.hbm %s7885_s0, 448 }
  0x3d   :  { %p7450_p10 = scmp.ne.s32.totalorder %s7885_s0, %s7449_s1  ;;  %p7453_p11 = scmp.lt.u32.totalorder %s7449_s1, %s7885_s0 }
  0x3f   :  { %p7455_p12 = pnand %p7453_p11, %p7450_p10 }
  0x41   :  { %7458 = shalt.err (!%p7455_p12)
}
  0x42   :  { %s7459_s5 = scalar_lea.vmem %s28_s29, 448  ;;  %p7464_p0 = scmp.lt.s32.totalorder %s28_s29, %s28_s29 }
  0x43   :  { %p7460_p13 = scmp.ne.s32.totalorder %s28_s29, %s7459_s5  ;;  %p7465_p1 = scmp.lt.s32.totalorder %s7459_s5, %s7459_s5 }
  0x45   :  { %p7466_p2 = por %p7465_p1, %p7464_p0 }
  0x47   :  { %p7467_p3 = pnand %p7466_p2, %p7460_p13 }
  0x49   :  { %7470 = shalt.err (!%p7467_p3)
}
  0x4a   :  { %30 = dma.hbm_to_vmem [thread:$0]  %s7885_s0, 448, %s28_s29, [#allocation4]  }
  0x4b   :  { %s7471_s20 = scalar_lea.hbm %s7887_s2, 128 }
  0x4c   :  { %p7472_p4 = scmp.ne.s32.totalorder %s7887_s2, %s7471_s20  ;;  %p7475_p5 = scmp.lt.u32.totalorder %s7471_s20, %s7887_s2 }
  0x4e   :  { %p7477_p6 = pnand %p7475_p5, %p7472_p4 }
  0x50   :  { %7480 = shalt.err (!%p7477_p6)
}
  0x51   :  { %s7481_s3 = scalar_lea.vmem %s50_s10, 128  ;;  %p7486_p8 = scmp.lt.s32.totalorder %s50_s10, %s50_s10 }
  0x52   :  { %p7482_p7 = scmp.ne.s32.totalorder %s50_s10, %s7481_s3  ;;  %p7487_p9 = scmp.lt.s32.totalorder %s7481_s3, %s7481_s3 }
  0x54   :  { %p7488_p10 = por %p7487_p9, %p7486_p8 }
  0x56   :  { %p7489_p11 = pnand %p7488_p10, %p7482_p7 }
  0x58   :  { %7492 = shalt.err (!%p7489_p11)
}
  0x59   :  { %52 = dma.hbm_to_vmem [thread:$0]  %s7887_s2, 128, %s50_s10, [#allocation6]  }
  0x5a   :  { %s7580_s26 = smov [#allocation10]   ;;  %s7581_s28 = smov [#allocation13]  }
  0x5b   :  { %s71_s27 = sshll.u32 %s7580_s26, 4  ;;  %s93_s29 = sshll.u32 %s7581_s28, 4  ;;  %s72_s27 = int_to_ptr.vmem [resolvable:$true] %s71_s27  ;;  %s94_s29 = int_to_ptr.vmem [resolvable:$true] %s93_s29 }
  0x5c   :  { %s7493_s13 = scalar_lea.hbm %s7889_s4, 64 }
  0x5d   :  { %p7494_p12 = scmp.ne.s32.totalorder %s7889_s4, %s7493_s13  ;;  %p7497_p13 = scmp.lt.u32.totalorder %s7493_s13, %s7889_s4 }
  0x5f   :  { %p7499_p0 = pnand %p7497_p13, %p7494_p12 }
  0x61   :  { %7502 = shalt.err (!%p7499_p0)
}
  0x62   :  { %s7503_s2 = scalar_lea.vmem %s72_s27, 64  ;;  %p7508_p2 = scmp.lt.s32.totalorder %s72_s27, %s72_s27 }
  0x63   :  { %p7504_p1 = scmp.ne.s32.totalorder %s72_s27, %s7503_s2  ;;  %p7509_p3 = scmp.lt.s32.totalorder %s7503_s2, %s7503_s2 }
  0x65   :  { %p7510_p4 = por %p7509_p3, %p7508_p2 }
  0x67   :  { %p7511_p5 = pnand %p7510_p4, %p7504_p1 }
  0x69   :  { %7514 = shalt.err (!%p7511_p5)
}
  0x6a   :  { %74 = dma.hbm_to_vmem [thread:$0]  %s7889_s4, 64, %s72_s27, [#allocation9]  }
  0x6b   :  { %s7515_s18 = scalar_lea.hbm %s7891_s6, 32 }
  0x6c   :  { %p7516_p6 = scmp.ne.s32.totalorder %s7891_s6, %s7515_s18  ;;  %p7519_p7 = scmp.lt.u32.totalorder %s7515_s18, %s7891_s6 }
  0x6e   :  { %p7521_p8 = pnand %p7519_p7, %p7516_p6 }
  0x70   :  { %7524 = shalt.err (!%p7521_p8)
}
  0x71   :  { %s7525_s22 = scalar_lea.vmem %s94_s29, 32  ;;  %p7530_p10 = scmp.lt.s32.totalorder %s94_s29, %s94_s29 }
  0x72   :  { %p7526_p9 = scmp.ne.s32.totalorder %s94_s29, %s7525_s22  ;;  %p7531_p11 = scmp.lt.s32.totalorder %s7525_s22, %s7525_s22 }
  0x74   :  { %p7532_p12 = por %p7531_p11, %p7530_p10 }
  0x76   :  { %p7533_p13 = pnand %p7532_p12, %p7526_p9 }
  0x78   :  { %7536 = shalt.err (!%p7533_p13)
}
  0x79   :  { %96 = dma.hbm_to_vmem [thread:$0]  %s7891_s6, 32, %s94_s29, [#allocation12]  }
  0x7a   :  { %s7582_s24 = smov [#allocation14]   ;;  %s7537_s26 = scalar_lea.hbm %s7892_s7, 32 }
  0x7b   :  { %s103_s3 = sshll.u32 %s7582_s24, 4  ;;  %p7538_p0 = scmp.ne.s32.totalorder %s7892_s7, %s7537_s26  ;;  %s104_s3 = int_to_ptr.vmem [resolvable:$true] %s103_s3 }
  0x7c   :  { %p7541_p1 = scmp.lt.u32.totalorder %s7537_s26, %s7892_s7 }
  0x7e   :  { %p7543_p2 = pnand %p7541_p1, %p7538_p0 }
  0x80   :  { %7546 = shalt.err (!%p7543_p2)
}
  0x81   :  { %s7547_s13 = scalar_lea.vmem %s104_s3, 32  ;;  %p7552_p4 = scmp.lt.s32.totalorder %s104_s3, %s104_s3 }
  0x82   :  { %p7548_p3 = scmp.ne.s32.totalorder %s104_s3, %s7547_s13  ;;  %p7553_p5 = scmp.lt.s32.totalorder %s7547_s13, %s7547_s13 }
  0x84   :  { %p7554_p6 = por %p7553_p5, %p7552_p4 }
  0x86   :  { %p7555_p7 = pnand %p7554_p6, %p7548_p3 }
  0x88   :  { %7558 = shalt.err (!%p7555_p7)
}
  0x89   :  { %106 = dma.hbm_to_vmem [thread:$0]  %s7892_s7, 32, %s104_s3, [#allocation15]  }
  0x8a   :  { %7559 = dma.done.wait [#allocation4], 448  }
  0x8b   :  { %7560 = vsyncadd [#allocation4], 4294966848 }
  0x8c   :  { %7561 = dma.done.wait [#allocation6], 57472  }
  0x8d   :  { %7562 = vsyncadd [#allocation6], 4294909824 }
  0x8e   :  { %7563 = dma.done.wait [#allocation9], 32832  }
  0x8f   :  { %7564 = vsyncadd [#allocation9], 4294934464 }
  0x90   :  { %7565 = dma.done.wait [#allocation12], 8224  }
  0x91   :  { %7566 = vsyncadd [#allocation12], 4294959072 }
  0x92   :  { %7567 = dma.done.wait [#allocation15], 32  }
  0x93   :  { %7568 = vsyncadd [#allocation15], 4294967264  ;;  %v138_v1 = vld [vmem:[#allocation5] sm:$0xff]  ;;  %v7735_v55 = vld [vmem:[#allocation3 + $0x8] sm:$0xff]  ;;  %vm5998_vm14 = vcmask 7168  }
  0x94   :  { %v142_v2 = vld [vmem:[#allocation5 + $0x20] sm:$0xff]  ;;  %v7743_v62 = vcombine.high %v7735_v55, %v7735_v55 }
  0x95   :  { %v266_v3 = vld [vmem:[#allocation5 + $0x400] sm:$0xff]  ;;  %v6017_v4 = vcombine.high %v138_v1, %v142_v2  ;;  %v6016_v6 = vcombine.low %v138_v1, %v142_v2 }
  0x96   :  { %v270_v5 = vld [vmem:[#allocation5 + $0x420] sm:$0xff]  ;;  %2966 = vmatprep.mubr.bf16.mxu0 %v7743_v62 }
  0x97   :  { %v146_v7 = vld [vmem:[#allocation5 + $0x40] sm:$0xff]  ;;  %v6145_v9 = vcombine.high %v266_v3, %v270_v5  ;;  %v6144_v10 = vcombine.low %v266_v3, %v270_v5  ;;  %2893 = vmatprep.subr.bf16.mxu1 %v6017_v4 }
  0x98   :  { %v150_v8 = vld [vmem:[#allocation5 + $0x60] sm:$0xff]  ;;  %2894 = vmatpush1.bf16.msra.mxu1 %v6016_v6 }
  0x99   :  { %v6025_v11 = vcombine.high %v146_v7, %v150_v8  ;;  %v274_v12 = vld [vmem:[#allocation5 + $0x440] sm:$0xff]  ;;  %2934 = vmatprep.subr.bf16.mxu0 %v6145_v9  ;;  %v6024_v19 = vcombine.low %v146_v7, %v150_v8 }
  0x9a   :  { %v278_v13 = vld [vmem:[#allocation5 + $0x460] sm:$0xff]  ;;  %2935 = vmatpush1.bf16.msra.mxu0 %v6144_v10 }
  0x9b   :  { %v154_v14 = vld [vmem:[#allocation5 + $0x80] sm:$0xff]  ;;  %v6153_v15 = vcombine.high %v274_v12, %v278_v13  ;;  %2895 = vmatprep.subr.bf16.mxu1 %v6025_v11  ;;  %v6152_v20 = vcombine.low %v274_v12, %v278_v13 }
  0x9c   :  { %v158_v16 = vld [vmem:[#allocation5 + $0xa0] sm:$0xff]  ;;  %2896 = vmatpush1.bf16.msra.mxu1 %v6024_v19 }
  0x9d   :  { %v282_v17 = vld [vmem:[#allocation5 + $0x480] sm:$0xff]  ;;  %v6033_v21 = vcombine.high %v154_v14, %v158_v16  ;;  %2936 = vmatprep.subr.bf16.mxu0 %v6153_v15  ;;  %v6032_v27 = vcombine.low %v154_v14, %v158_v16 }
  0x9e   :  { %v286_v18 = vld [vmem:[#allocation5 + $0x4a0] sm:$0xff]  ;;  %2937 = vmatpush1.bf16.msra.mxu0 %v6152_v20 }
  0x9f   :  { %v6161_v22 = vcombine.high %v282_v17, %v286_v18  ;;  %v162_v23 = vld [vmem:[#allocation5 + $0xc0] sm:$0xff]  ;;  %2897 = vmatprep.subr.bf16.mxu1 %v6033_v21  ;;  %v6160_v28 = vcombine.low %v282_v17, %v286_v18 }
  0xa0   :  { %v166_v24 = vld [vmem:[#allocation5 + $0xe0] sm:$0xff]  ;;  %2898 = vmatpush1.bf16.msra.mxu1 %v6032_v27 }
  0xa1   :  { %v290_v25 = vld [vmem:[#allocation5 + $0x4c0] sm:$0xff]  ;;  %v6041_v29 = vcombine.high %v162_v23, %v166_v24  ;;  %2938 = vmatprep.subr.bf16.mxu0 %v6161_v22  ;;  %v6040_v35 = vcombine.low %v162_v23, %v166_v24 }
  0xa2   :  { %v294_v26 = vld [vmem:[#allocation5 + $0x4e0] sm:$0xff]  ;;  %2939 = vmatpush1.bf16.msra.mxu0 %v6160_v28 }
  0xa3   :  { %v6169_v30 = vcombine.high %v290_v25, %v294_v26  ;;  %v170_v31 = vld [vmem:[#allocation5 + $0x100] sm:$0xff]  ;;  %2899 = vmatprep.subr.bf16.mxu1 %v6041_v29  ;;  %v6168_v36 = vcombine.low %v290_v25, %v294_v26 }
  0xa4   :  { %v174_v32 = vld [vmem:[#allocation5 + $0x120] sm:$0xff]  ;;  %2900 = vmatpush1.bf16.msra.mxu1 %v6040_v35 }
  0xa5   :  { %v298_v33 = vld [vmem:[#allocation5 + $0x500] sm:$0xff]  ;;  %v6049_v37 = vcombine.high %v170_v31, %v174_v32  ;;  %2940 = vmatprep.subr.bf16.mxu0 %v6169_v30  ;;  %v6048_v43 = vcombine.low %v170_v31, %v174_v32 }
  0xa6   :  { %v302_v34 = vld [vmem:[#allocation5 + $0x520] sm:$0xff]  ;;  %2941 = vmatpush1.bf16.msra.mxu0 %v6168_v36 }
  0xa7   :  { %v6177_v38 = vcombine.high %v298_v33, %v302_v34  ;;  %v178_v39 = vld [vmem:[#allocation5 + $0x140] sm:$0xff]  ;;  %2901 = vmatprep.subr.bf16.mxu1 %v6049_v37  ;;  %v6176_v44 = vcombine.low %v298_v33, %v302_v34 }
  0xa8   :  { %v182_v40 = vld [vmem:[#allocation5 + $0x160] sm:$0xff]  ;;  %2902 = vmatpush1.bf16.msra.mxu1 %v6048_v43 }
  0xa9   :  { %v306_v41 = vld [vmem:[#allocation5 + $0x540] sm:$0xff]  ;;  %v6057_v45 = vcombine.high %v178_v39, %v182_v40  ;;  %2942 = vmatprep.subr.bf16.mxu0 %v6177_v38  ;;  %v6056_v51 = vcombine.low %v178_v39, %v182_v40 }
  0xaa   :  { %v310_v42 = vld [vmem:[#allocation5 + $0x560] sm:$0xff]  ;;  %2943 = vmatpush1.bf16.msra.mxu0 %v6176_v44 }
  0xab   :  { %v6185_v46 = vcombine.high %v306_v41, %v310_v42  ;;  %v186_v47 = vld [vmem:[#allocation5 + $0x180] sm:$0xff]  ;;  %2903 = vmatprep.subr.bf16.mxu1 %v6057_v45  ;;  %v6184_v52 = vcombine.low %v306_v41, %v310_v42 }
  0xac   :  { %v190_v48 = vld [vmem:[#allocation5 + $0x1a0] sm:$0xff]  ;;  %2904 = vmatpush1.bf16.msra.mxu1 %v6056_v51 }
  0xad   :  { %v314_v49 = vld [vmem:[#allocation5 + $0x580] sm:$0xff]  ;;  %v6065_v53 = vcombine.high %v186_v47, %v190_v48  ;;  %2944 = vmatprep.subr.bf16.mxu0 %v6185_v46  ;;  %v6064_v63 = vcombine.low %v186_v47, %v190_v48 }
  0xae   :  { %v318_v50 = vld [vmem:[#allocation5 + $0x5a0] sm:$0xff]  ;;  %2945 = vmatpush1.bf16.msra.mxu0 %v6184_v52 }
  0xaf   :  { %v7733_v54 = vld [vmem:[#allocation3] sm:$0xff]  ;;  %v6193_v56 = vcombine.high %v314_v49, %v318_v50  ;;  %2905 = vmatprep.subr.bf16.mxu1 %v6065_v53  ;;  %v6192_v0 = vcombine.low %v314_v49, %v318_v50 }
  0xb0   :  { %v194_v57 = vld [vmem:[#allocation5 + $0x1c0] sm:$0xff]  ;;  %v7739_v59 = vcombine.high %v7733_v54, %v7733_v54  ;;  %2906 = vmatpush1.bf16.msra.mxu1 %v6064_v63 }
  0xb1   :  { %v198_v58 = vld [vmem:[#allocation5 + $0x1e0] sm:$0xff]  ;;  %2946 = vmatprep.subr.bf16.mxu0 %v6193_v56 }
  0xb2   :  { %v322_v60 = vld [vmem:[#allocation5 + $0x5c0] sm:$0xff]  ;;  %2925 = vmatprep.mubr.bf16.mxu1 %v7739_v59  ;;  %v6073_v1 = vcombine.high %v194_v57, %v198_v58  ;;  %v6072_v7 = vcombine.low %v194_v57, %v198_v58  ;;  %2947 = vmatpush1.bf16.msra.mxu0 %v6192_v0 }
  0xb3   :  { %v326_v61 = vld [vmem:[#allocation5 + $0x5e0] sm:$0xff] }
  0xb4   :  { %v6201_v2 = vcombine.high %v322_v60, %v326_v61  ;;  %v202_v3 = vld [vmem:[#allocation5 + $0x200] sm:$0xff]  ;;  %2907 = vmatprep.subr.bf16.mxu1 %v6073_v1  ;;  %v6200_v8 = vcombine.low %v322_v60, %v326_v61 }
  0xb5   :  { %v206_v4 = vld [vmem:[#allocation5 + $0x220] sm:$0xff]  ;;  %2908 = vmatpush1.bf16.msra.mxu1 %v6072_v7  ;;  %v139_v7 = vld [vmem:[#allocation5 + $0x8] sm:$0xff] }
  0xb6   :  { %v330_v5 = vld [vmem:[#allocation5 + $0x600] sm:$0xff]  ;;  %v6081_v9 = vcombine.high %v202_v3, %v206_v4  ;;  %2948 = vmatprep.subr.bf16.mxu0 %v6201_v2  ;;  %v6080_v15 = vcombine.low %v202_v3, %v206_v4 }
  0xb7   :  { %v334_v6 = vld [vmem:[#allocation5 + $0x620] sm:$0xff]  ;;  %2949 = vmatpush1.bf16.msra.mxu0 %v6200_v8  ;;  %v143_v8 = vld [vmem:[#allocation5 + $0x28] sm:$0xff] }
  0xb8   :  { %v6209_v10 = vcombine.high %v330_v5, %v334_v6  ;;  %v210_v11 = vld [vmem:[#allocation5 + $0x240] sm:$0xff]  ;;  %2909 = vmatprep.subr.bf16.mxu1 %v6081_v9  ;;  %v6208_v16 = vcombine.low %v330_v5, %v334_v6 }
  0xb9   :  { %v214_v12 = vld [vmem:[#allocation5 + $0x260] sm:$0xff]  ;;  %2910 = vmatpush1.bf16.msra.mxu1 %v6080_v15  ;;  %v147_v15 = vld [vmem:[#allocation5 + $0x48] sm:$0xff] }
  0xba   :  { %v338_v13 = vld [vmem:[#allocation5 + $0x640] sm:$0xff]  ;;  %v6089_v17 = vcombine.high %v210_v11, %v214_v12  ;;  %2950 = vmatprep.subr.bf16.mxu0 %v6209_v10  ;;  %v6088_v23 = vcombine.low %v210_v11, %v214_v12 }
  0xbb   :  { %v342_v14 = vld [vmem:[#allocation5 + $0x660] sm:$0xff]  ;;  %2951 = vmatpush1.bf16.msra.mxu0 %v6208_v16  ;;  %v151_v16 = vld [vmem:[#allocation5 + $0x68] sm:$0xff] }
  0xbc   :  { %v6217_v18 = vcombine.high %v338_v13, %v342_v14  ;;  %v218_v19 = vld [vmem:[#allocation5 + $0x280] sm:$0xff]  ;;  %2911 = vmatprep.subr.bf16.mxu1 %v6089_v17  ;;  %v6216_v24 = vcombine.low %v338_v13, %v342_v14  ;;  %v6019_v13 = vcombine.high %v139_v7, %v143_v8  ;;  %v7749_v17 = vcombine.low %v7733_v54, %v7733_v54  ;;  %v155_v54 = vld [vmem:[#allocation5 + $0x88] sm:$0xff] }
  0xbd   :  { %v222_v20 = vld [vmem:[#allocation5 + $0x2a0] sm:$0xff]  ;;  %2912 = vmatpush1.bf16.msra.mxu1 %v6088_v23 }
  0xbe   :  { %v346_v21 = vld [vmem:[#allocation5 + $0x680] sm:$0xff]  ;;  %v6097_v25 = vcombine.high %v218_v19, %v222_v20  ;;  %2952 = vmatprep.subr.bf16.mxu0 %v6217_v18  ;;  %v6096_v31 = vcombine.low %v218_v19, %v222_v20  ;;  %v7751_v20 = vld [vmem:[#allocation3 + $0x10] sm:$0xff] }
  0xbf   :  { %v350_v22 = vld [vmem:[#allocation5 + $0x6a0] sm:$0xff]  ;;  %2953 = vmatpush1.bf16.msra.mxu0 %v6216_v24  ;;  %v6027_v24 = vcombine.high %v147_v15, %v151_v16 }
  0xc0   :  { %v6225_v26 = vcombine.high %v346_v21, %v350_v22  ;;  %v226_v27 = vld [vmem:[#allocation5 + $0x2c0] sm:$0xff]  ;;  %2913 = vmatprep.subr.bf16.mxu1 %v6097_v25  ;;  %v6224_v32 = vcombine.low %v346_v21, %v350_v22  ;;  %v6018_v21 = vcombine.low %v139_v7, %v143_v8  ;;  %v7755_v22 = vcombine.low %v7735_v55, %v7735_v55  ;;  %v199_v8 = vld [vmem:[#allocation5 + $0x1e8] sm:$0xff] }
  0xc1   :  { %v230_v28 = vld [vmem:[#allocation5 + $0x2e0] sm:$0xff]  ;;  %2914 = vmatpush1.bf16.msra.mxu1 %v6096_v31  ;;  %v6026_v55 = vcombine.low %v147_v15, %v151_v16  ;;  %v207_v16 = vld [vmem:[#allocation5 + $0x228] sm:$0xff] }
  0xc2   :  { %v354_v29 = vld [vmem:[#allocation5 + $0x6c0] sm:$0xff]  ;;  %v6105_v33 = vcombine.high %v226_v27, %v230_v28  ;;  %2954 = vmatprep.subr.bf16.mxu0 %v6225_v26  ;;  %v6104_v39 = vcombine.low %v226_v27, %v230_v28  ;;  %v159_v28 = vld [vmem:[#allocation5 + $0xa8] sm:$0xff] }
  0xc3   :  { %v358_v30 = vld [vmem:[#allocation5 + $0x6e0] sm:$0xff]  ;;  %2955 = vmatpush1.bf16.msra.mxu0 %v6224_v32  ;;  %v6035_v31 = vcombine.high %v155_v54, %v159_v28 }
  0xc4   :  { %v6233_v34 = vcombine.high %v354_v29, %v358_v30  ;;  %v234_v35 = vld [vmem:[#allocation5 + $0x300] sm:$0xff]  ;;  %2915 = vmatprep.subr.bf16.mxu1 %v6105_v33  ;;  %v6232_v40 = vcombine.low %v354_v29, %v358_v30  ;;  %v7759_v29 = vcombine.high %v7751_v20, %v7751_v20 }
  0xc5   :  { %v238_v36 = vld [vmem:[#allocation5 + $0x320] sm:$0xff]  ;;  %2916 = vmatpush1.bf16.msra.mxu1 %v6104_v39 }
  0xc6   :  { %v362_v37 = vld [vmem:[#allocation5 + $0x700] sm:$0xff]  ;;  %v6113_v41 = vcombine.high %v234_v35, %v238_v36  ;;  %2956 = vmatprep.subr.bf16.mxu0 %v6233_v34  ;;  %v6112_v47 = vcombine.low %v234_v35, %v238_v36  ;;  %v163_v34 = vld [vmem:[#allocation5 + $0xc8] sm:$0xff] }
  0xc7   :  { %v366_v38 = vld [vmem:[#allocation5 + $0x720] sm:$0xff]  ;;  %2957 = vmatpush1.bf16.msra.mxu0 %v6232_v40  ;;  %v167_v36 = vld [vmem:[#allocation5 + $0xe8] sm:$0xff] }
  0xc8   :  { %v6241_v42 = vcombine.high %v362_v37, %v366_v38  ;;  %v242_v43 = vld [vmem:[#allocation5 + $0x340] sm:$0xff]  ;;  %2917 = vmatprep.subr.bf16.mxu1 %v6113_v41  ;;  %v6240_v48 = vcombine.low %v362_v37, %v366_v38  ;;  %v6034_v37 = vcombine.low %v155_v54, %v159_v28  ;;  %v6043_v39 = vcombine.high %v163_v34, %v167_v36 }
  0xc9   :  { %v246_v44 = vld [vmem:[#allocation5 + $0x360] sm:$0xff]  ;;  %2918 = vmatpush1.bf16.msra.mxu1 %v6112_v47 }
  0xca   :  { %v370_v45 = vld [vmem:[#allocation5 + $0x740] sm:$0xff]  ;;  %v6121_v49 = vcombine.high %v242_v43, %v246_v44  ;;  %2958 = vmatprep.subr.bf16.mxu0 %v6241_v42  ;;  %v6120_v57 = vcombine.low %v242_v43, %v246_v44  ;;  %v171_v42 = vld [vmem:[#allocation5 + $0x108] sm:$0xff] }
  0xcb   :  { %v374_v46 = vld [vmem:[#allocation5 + $0x760] sm:$0xff]  ;;  %2959 = vmatpush1.bf16.msra.mxu0 %v6240_v48  ;;  %v175_v44 = vld [vmem:[#allocation5 + $0x128] sm:$0xff] }
  0xcc   :  { %v6249_v50 = vcombine.high %v370_v45, %v374_v46  ;;  %v250_v51 = vld [vmem:[#allocation5 + $0x380] sm:$0xff]  ;;  %2919 = vmatprep.subr.bf16.mxu1 %v6121_v49  ;;  %v6248_v58 = vcombine.low %v370_v45, %v374_v46  ;;  %v6042_v45 = vcombine.low %v163_v34, %v167_v36  ;;  %v6051_v47 = vcombine.high %v171_v42, %v175_v44  ;;  %v223_v34 = vld [vmem:[#allocation5 + $0x2a8] sm:$0xff] }
  0xcd   :  { %v254_v52 = vld [vmem:[#allocation5 + $0x3a0] sm:$0xff]  ;;  %2920 = vmatpush1.bf16.msra.mxu1 %v6120_v57 }
  0xce   :  { %v378_v53 = vld [vmem:[#allocation5 + $0x780] sm:$0xff]  ;;  %v6129_v60 = vcombine.high %v250_v51, %v254_v52  ;;  %2960 = vmatprep.subr.bf16.mxu0 %v6249_v50  ;;  %v6128_v3 = vcombine.low %v250_v51, %v254_v52  ;;  %v179_v50 = vld [vmem:[#allocation5 + $0x148] sm:$0xff] }
  0xcf   :  { %v382_v56 = vld [vmem:[#allocation5 + $0x7a0] sm:$0xff]  ;;  %2961 = vmatpush1.bf16.msra.mxu0 %v6248_v58  ;;  %v183_v52 = vld [vmem:[#allocation5 + $0x168] sm:$0xff] }
  0xd0   :  { %v6257_v61 = vcombine.high %v378_v53, %v382_v56  ;;  %v258_v63 = vld [vmem:[#allocation5 + $0x3c0] sm:$0xff]  ;;  %2921 = vmatprep.subr.bf16.mxu1 %v6129_v60  ;;  %v6256_v4 = vcombine.low %v378_v53, %v382_v56  ;;  %v6050_v53 = vcombine.low %v171_v42, %v175_v44  ;;  %v6059_v57 = vcombine.high %v179_v50, %v183_v52  ;;  %v231_v42 = vld [vmem:[#allocation5 + $0x2e8] sm:$0xff] }
  0xd1   :  { %v262_v0 = vld [vmem:[#allocation5 + $0x3e0] sm:$0xff]  ;;  %2922 = vmatpush1.bf16.msra.mxu1 %v6128_v3 }
  0xd2   :  { %v386_v1 = vld [vmem:[#allocation5 + $0x7c0] sm:$0xff]  ;;  %v6137_v5 = vcombine.high %v258_v63, %v262_v0  ;;  %2962 = vmatprep.subr.bf16.mxu0 %v6257_v61  ;;  %v6136_v11 = vcombine.low %v258_v63, %v262_v0  ;;  %v187_v61 = vld [vmem:[#allocation5 + $0x188] sm:$0xff] }
  0xd3   :  { %v390_v2 = vld [vmem:[#allocation5 + $0x7e0] sm:$0xff]  ;;  %2963 = vmatpush1.bf16.msra.mxu0 %v6256_v4  ;;  %v191_v0 = vld [vmem:[#allocation5 + $0x1a8] sm:$0xff] }
  0xd4   :  { %v6265_v6 = vcombine.high %v386_v1, %v390_v2  ;;  %v394_v9 = vld [vmem:[#allocation5 + $0x800] sm:$0xff]  ;;  %2923 = vmatprep.subr.bf16.mxu1 %v6137_v5  ;;  %v6264_v12 = vcombine.low %v386_v1, %v390_v2  ;;  %v6058_v1 = vcombine.low %v179_v50, %v183_v52  ;;  %v6067_v3 = vcombine.high %v187_v61, %v191_v0  ;;  %v239_v50 = vld [vmem:[#allocation5 + $0x328] sm:$0xff] }
  0xd5   :  { %v398_v10 = vld [vmem:[#allocation5 + $0x820] sm:$0xff]  ;;  %2924 = vmatpush1.bf16.msra.mxu1 %v6136_v11 }
  0xd6   :  { %2964 = vmatprep.subr.bf16.mxu0 %v6265_v6  ;;  %v6273_v14 = vcombine.high %v394_v9, %v398_v10  ;;  %v402_v18 = vld [vmem:[#allocation5 + $0x840] sm:$0xff]  ;;  %v6272_v23 = vcombine.low %v394_v9, %v398_v10  ;;  %3057 = vmatprep.subr.bf16.mxu1 %v6019_v13  ;;  %v195_v6 = vld [vmem:[#allocation5 + $0x1c8] sm:$0xff]  ;;  %v6066_v9 = vcombine.low %v187_v61, %v191_v0 }
  0xd7   :  { %v406_v19 = vld [vmem:[#allocation5 + $0x860] sm:$0xff]  ;;  %2965 = vmatpush1.bf16.msra.mxu0 %v6264_v12  ;;  %v6075_v11 = vcombine.high %v195_v6, %v199_v8  ;;  %v247_v61 = vld [vmem:[#allocation5 + $0x368] sm:$0xff] }
  0xd8   :  { %v410_v25 = vld [vmem:[#allocation5 + $0x880] sm:$0xff]  ;;  %2975 = vmatprep.subr.bf16.mxu0 %v6273_v14  ;;  %v6281_v26 = vcombine.high %v402_v18, %v406_v19  ;;  %2926 = vmatmul.mubr.bf16.vlgmr.msra.gmra.mrb[0].mxu1 %v7749_v17  ;;  %v6280_v30 = vcombine.low %v402_v18, %v406_v19  ;;  %v203_v14 = vld [vmem:[#allocation5 + $0x208] sm:$0xff]  ;;  %v6074_v18 = vcombine.low %v195_v6, %v199_v8 }
  0xd9   :  { %v414_v27 = vld [vmem:[#allocation5 + $0x8a0] sm:$0xff]  ;;  %3058 = vmatpush1.bf16.msra.mxu1 %v6018_v21  ;;  %3089 = vmatprep.mubr.bf16.mxu1 %v7739_v59  ;;  %v6083_v21 = vcombine.high %v203_v14, %v207_v16  ;;  %v6082_v54 = vcombine.low %v203_v14, %v207_v16  ;;  %v255_v6 = vld [vmem:[#allocation5 + $0x3a8] sm:$0xff] }
  0xda   :  { %2967 = vmatmul.mubr.bf16.vlgmr.msra.gmra.mrb[0].mxu0 %v7755_v22  ;;  %3059 = vmatprep.subr.bf16.mxu1 %v6027_v24  ;;  %v418_v32 = vld [vmem:[#allocation5 + $0x8c0] sm:$0xff]  ;;  %v6289_v35 = vcombine.high %v410_v25, %v414_v27  ;;  %v6288_v38 = vcombine.low %v410_v25, %v414_v27  ;;  %v211_v25 = vld [vmem:[#allocation5 + $0x248] sm:$0xff] }
  0xdb   :  { %2976 = vmatpush1.bf16.msra.mxu0 %v6272_v23  ;;  %v422_v33 = vld [vmem:[#allocation5 + $0x8e0] sm:$0xff]  ;;  %3007 = vmatprep.mubr.bf16.mxu0 %v7759_v29  ;;  %v215_v27 = vld [vmem:[#allocation5 + $0x268] sm:$0xff] }
  0xdc   :  { %2977 = vmatprep.subr.bf16.mxu0 %v6281_v26  ;;  %v426_v40 = vld [vmem:[#allocation5 + $0x900] sm:$0xff]  ;;  %v6297_v43 = vcombine.high %v418_v32, %v422_v33  ;;  %v6296_v46 = vcombine.low %v418_v32, %v422_v33  ;;  %v219_v32 = vld [vmem:[#allocation5 + $0x288] sm:$0xff] }
  0xdd   :  { %3060 = vmatpush1.bf16.msra.mxu1 %v6026_v55  ;;  %v430_v41 = vld [vmem:[#allocation5 + $0x920] sm:$0xff]  ;;  %v6091_v55 = vcombine.high %v211_v25, %v215_v27  ;;  %v263_v14 = vld [vmem:[#allocation5 + $0x3e8] sm:$0xff] }
  0xde   :  { %3061 = vmatprep.subr.bf16.mxu1 %v6035_v31  ;;  %v434_v48 = vld [vmem:[#allocation5 + $0x940] sm:$0xff]  ;;  %v6305_v51 = vcombine.high %v426_v40, %v430_v41  ;;  %v6304_v56 = vcombine.low %v426_v40, %v430_v41  ;;  %v227_v40 = vld [vmem:[#allocation5 + $0x2c8] sm:$0xff] }
  0xdf   :  { %2978 = vmatpush1.bf16.msra.mxu0 %v6280_v30  ;;  %v438_v49 = vld [vmem:[#allocation5 + $0x960] sm:$0xff] }
  0xe0   :  { %2979 = vmatprep.subr.bf16.mxu0 %v6289_v35  ;;  %v442_v58 = vld [vmem:[#allocation5 + $0x980] sm:$0xff]  ;;  %v6313_v63 = vcombine.high %v434_v48, %v438_v49  ;;  %v6312_v2 = vcombine.low %v434_v48, %v438_v49  ;;  %v6090_v35 = vcombine.low %v211_v25, %v215_v27  ;;  %v235_v48 = vld [vmem:[#allocation5 + $0x308] sm:$0xff] }
  0xe1   :  { %3062 = vmatpush1.bf16.msra.mxu1 %v6034_v37  ;;  %v446_v60 = vld [vmem:[#allocation5 + $0x9a0] sm:$0xff]  ;;  %v6099_v37 = vcombine.high %v219_v32, %v223_v34  ;;  %v271_v25 = vld [vmem:[#allocation5 + $0x428] sm:$0xff] }
  0xe2   :  { %3063 = vmatprep.subr.bf16.mxu1 %v6043_v39  ;;  %v450_v4 = vld [vmem:[#allocation5 + $0x9c0] sm:$0xff]  ;;  %v6321_v7 = vcombine.high %v442_v58, %v446_v60  ;;  %v6320_v10 = vcombine.low %v442_v58, %v446_v60  ;;  %v243_v58 = vld [vmem:[#allocation5 + $0x348] sm:$0xff] }
  0xe3   :  { %2980 = vmatpush1.bf16.msra.mxu0 %v6288_v38  ;;  %v454_v5 = vld [vmem:[#allocation5 + $0x9e0] sm:$0xff] }
  0xe4   :  { %2981 = vmatprep.subr.bf16.mxu0 %v6297_v43  ;;  %v458_v12 = vld [vmem:[#allocation5 + $0xa00] sm:$0xff]  ;;  %v6329_v15 = vcombine.high %v450_v4, %v454_v5  ;;  %v6328_v19 = vcombine.low %v450_v4, %v454_v5  ;;  %v6098_v43 = vcombine.low %v219_v32, %v223_v34  ;;  %v251_v4 = vld [vmem:[#allocation5 + $0x388] sm:$0xff]  ;;  %v7767_v34 = vcombine.low %v7751_v20, %v7751_v20 }
  0xe5   :  { %3064 = vmatpush1.bf16.msra.mxu1 %v6042_v45  ;;  %v462_v13 = vld [vmem:[#allocation5 + $0xa20] sm:$0xff]  ;;  %v6107_v45 = vcombine.high %v227_v40, %v231_v42  ;;  %v279_v32 = vld [vmem:[#allocation5 + $0x468] sm:$0xff] }
  0xe6   :  { %3065 = vmatprep.subr.bf16.mxu1 %v6051_v47  ;;  %v466_v23 = vld [vmem:[#allocation5 + $0xa40] sm:$0xff]  ;;  %v6337_v26 = vcombine.high %v458_v12, %v462_v13  ;;  %v6336_v28 = vcombine.low %v458_v12, %v462_v13  ;;  %v259_v12 = vld [vmem:[#allocation5 + $0x3c8] sm:$0xff] }
  0xe7   :  { %2982 = vmatpush1.bf16.msra.mxu0 %v6296_v46  ;;  %v470_v24 = vld [vmem:[#allocation5 + $0xa60] sm:$0xff] }
  0xe8   :  { %2983 = vmatprep.subr.bf16.mxu0 %v6305_v51  ;;  %v474_v30 = vld [vmem:[#allocation5 + $0xa80] sm:$0xff]  ;;  %v6345_v33 = vcombine.high %v466_v23, %v470_v24  ;;  %v6344_v36 = vcombine.low %v466_v23, %v470_v24  ;;  %v6106_v51 = vcombine.low %v227_v40, %v231_v42  ;;  %v267_v23 = vld [vmem:[#allocation5 + $0x408] sm:$0xff] }
  0xe9   :  { %3066 = vmatpush1.bf16.msra.mxu1 %v6050_v53  ;;  %v478_v31 = vld [vmem:[#allocation5 + $0xaa0] sm:$0xff]  ;;  %v6115_v53 = vcombine.high %v235_v48, %v239_v50 }
  0xea   :  { %3067 = vmatprep.subr.bf16.mxu1 %v6059_v57  ;;  %v482_v38 = vld [vmem:[#allocation5 + $0xac0] sm:$0xff]  ;;  %v6353_v41 = vcombine.high %v474_v30, %v478_v31  ;;  %v6352_v44 = vcombine.low %v474_v30, %v478_v31  ;;  %v275_v30 = vld [vmem:[#allocation5 + $0x448] sm:$0xff] }
  0xeb   :  { %2984 = vmatpush1.bf16.msra.mxu0 %v6304_v56  ;;  %v486_v39 = vld [vmem:[#allocation5 + $0xae0] sm:$0xff]  ;;  %v6154_v42 = vcombine.low %v275_v30, %v279_v32 }
  0xec   :  { %2985 = vmatprep.subr.bf16.mxu0 %v6313_v63  ;;  %v490_v46 = vld [vmem:[#allocation5 + $0xb00] sm:$0xff]  ;;  %v6361_v49 = vcombine.high %v482_v38, %v486_v39  ;;  %v6360_v52 = vcombine.low %v482_v38, %v486_v39  ;;  %v6114_v63 = vcombine.low %v235_v48, %v239_v50  ;;  %v283_v39 = vld [vmem:[#allocation5 + $0x488] sm:$0xff] }
  0xed   :  { %3068 = vmatpush1.bf16.msra.mxu1 %v6058_v1  ;;  %v494_v47 = vld [vmem:[#allocation5 + $0xb20] sm:$0xff]  ;;  %v6123_v1 = vcombine.high %v243_v58, %v247_v61  ;;  %v295_v48 = vld [vmem:[#allocation5 + $0x4e8] sm:$0xff] }
  0xee   :  { %3069 = vmatprep.subr.bf16.mxu1 %v6067_v3  ;;  %v498_v56 = vld [vmem:[#allocation5 + $0xb40] sm:$0xff]  ;;  %v6369_v60 = vcombine.high %v490_v46, %v494_v47  ;;  %v6368_v0 = vcombine.low %v490_v46, %v494_v47  ;;  %v291_v46 = vld [vmem:[#allocation5 + $0x4c8] sm:$0xff] }
  0xef   :  { %2986 = vmatpush1.bf16.msra.mxu0 %v6312_v2  ;;  %v502_v57 = vld [vmem:[#allocation5 + $0xb60] sm:$0xff] }
  0xf0   :  { %2987 = vmatprep.subr.bf16.mxu0 %v6321_v7  ;;  %v506_v2 = vld [vmem:[#allocation5 + $0xb80] sm:$0xff]  ;;  %v6377_v5 = vcombine.high %v498_v56, %v502_v57  ;;  %v6122_v7 = vcombine.low %v243_v58, %v247_v61  ;;  %v6376_v8 = vcombine.low %v498_v56, %v502_v57  ;;  %v299_v57 = vld [vmem:[#allocation5 + $0x508] sm:$0xff]  ;;  %v6170_v61 = vcombine.low %v291_v46, %v295_v48 }
  0xf1   :  { %3070 = vmatpush1.bf16.msra.mxu1 %v6066_v9  ;;  %v510_v3 = vld [vmem:[#allocation5 + $0xba0] sm:$0xff]  ;;  %v6131_v9 = vcombine.high %v251_v4, %v255_v6 }
  0xf2   :  { %3071 = vmatprep.subr.bf16.mxu1 %v6075_v11  ;;  %v518_v11 = vld [vmem:[#allocation5 + $0xbe0] sm:$0xff]  ;;  %v6385_v13 = vcombine.high %v506_v2, %v510_v3  ;;  %v6384_v16 = vcombine.low %v506_v2, %v510_v3  ;;  %v307_v3 = vld [vmem:[#allocation5 + $0x548] sm:$0xff] }
  0xf3   :  { %2988 = vmatpush1.bf16.msra.mxu0 %v6320_v10  ;;  %v514_v10 = vld [vmem:[#allocation5 + $0xbc0] sm:$0xff] }
  0xf4   :  { %2989 = vmatprep.subr.bf16.mxu0 %v6329_v15  ;;  %v6130_v15 = vcombine.low %v251_v4, %v255_v6  ;;  %v6393_v24 = vcombine.high %v514_v10, %v518_v11  ;;  %v6392_v27 = vcombine.low %v514_v10, %v518_v11  ;;  %v542_v38 = vld [vmem:[#allocation5 + $0xca0] sm:$0xff]  ;;  %v315_v11 = vld [vmem:[#allocation5 + $0x588] sm:$0xff] }
  0xf5   :  { %3072 = vmatpush1.bf16.msra.mxu1 %v6074_v18  ;;  %v6139_v18 = vcombine.high %v259_v12, %v263_v14  ;;  %v558_v56 = vld [vmem:[#allocation5 + $0xd20] sm:$0xff] }
  0xf6   :  { %3073 = vmatprep.subr.bf16.mxu1 %v6083_v21  ;;  %v526_v21 = vld [vmem:[#allocation5 + $0xc20] sm:$0xff] }
  0xf7   :  { %2990 = vmatpush1.bf16.msra.mxu0 %v6328_v19  ;;  %v522_v19 = vld [vmem:[#allocation5 + $0xc00] sm:$0xff] }
  0xf8   :  { %2991 = vmatprep.subr.bf16.mxu0 %v6337_v26  ;;  %v6138_v26 = vcombine.low %v259_v12, %v263_v14  ;;  %v6401_v31 = vcombine.high %v522_v19, %v526_v21  ;;  %v566_v2 = vld [vmem:[#allocation5 + $0xd60] sm:$0xff] }
  0xf9   :  { %3074 = vmatpush1.bf16.msra.mxu1 %v6082_v54  ;;  %v6147_v54 = vcombine.high %v267_v23, %v271_v25  ;;  %v574_v10 = vld [vmem:[#allocation5 + $0xda0] sm:$0xff] }
  0xfa   :  { %3075 = vmatprep.subr.bf16.mxu1 %v6091_v55  ;;  %v534_v55 = vld [vmem:[#allocation5 + $0xc60] sm:$0xff] }
  0xfb   :  { %2992 = vmatpush1.bf16.msra.mxu0 %v6336_v28  ;;  %v530_v28 = vld [vmem:[#allocation5 + $0xc40] sm:$0xff] }
  0xfc   :  { %2993 = vmatprep.subr.bf16.mxu0 %v6345_v33  ;;  %v6146_v33 = vcombine.low %v267_v23, %v271_v25  ;;  %v6409_v40 = vcombine.high %v530_v28, %v534_v55  ;;  %v323_v23 = vld [vmem:[#allocation5 + $0x5c8] sm:$0xff] }
  0xfd   :  { %3076 = vmatpush1.bf16.msra.mxu1 %v6090_v35  ;;  %v6400_v35 = vcombine.low %v522_v19, %v526_v21  ;;  %v582_v19 = vld [vmem:[#allocation5 + $0xde0] sm:$0xff] }
  0xfe   :  { %3077 = vmatprep.subr.bf16.mxu1 %v6099_v37  ;;  %v538_v37 = vld [vmem:[#allocation5 + $0xc80] sm:$0xff] }
  0xff   :  { %2994 = vmatpush1.bf16.msra.mxu0 %v6344_v36  ;;  %v6155_v36 = vcombine.high %v275_v30, %v279_v32  ;;  %v6417_v47 = vcombine.high %v538_v37, %v542_v38 }
 0x100   :  { %2995 = vmatprep.subr.bf16.mxu0 %v6353_v41  ;;  %v287_v41 = vld [vmem:[#allocation5 + $0x4a8] sm:$0xff] }
 0x101   :  { %3078 = vmatpush1.bf16.msra.mxu1 %v6098_v43  ;;  %v6408_v43 = vcombine.low %v530_v28, %v534_v55  ;;  %v6163_v20 = vcombine.high %v283_v39, %v287_v41  ;;  %v6162_v50 = vcombine.low %v283_v39, %v287_v41  ;;  %v335_v28 = vld [vmem:[#allocation5 + $0x628] sm:$0xff]  ;;  %v140_v55 = vld [vmem:[#allocation5 + $0x10] sm:$0xff]  ;;  %v6895_v39 = vld [vmem:[#allocation3 + $0x18] ss:$0 sps:$4 sm:$0xff]  }
 0x102   :  { %3079 = vmatprep.subr.bf16.mxu1 %v6107_v45  ;;  %v550_v45 = vld [vmem:[#allocation5 + $0xce0] sm:$0xff]  ;;  %v152_v41 = vld [vmem:[#allocation5 + $0x70] sm:$0xff] }
 0x103   :  { %2996 = vmatpush1.bf16.msra.mxu0 %v6352_v44  ;;  %v546_v44 = vld [vmem:[#allocation5 + $0xcc0] sm:$0xff] }
 0x104   :  { %2997 = vmatprep.subr.bf16.mxu0 %v6361_v49  ;;  %v7583_v49 = vmov 0   ;;  %v6425_v58 = vcombine.high %v546_v44, %v550_v45 }
 0x105   :  { %3080 = vmatpush1.bf16.msra.mxu1 %v6106_v51  ;;  %v6416_v51 = vcombine.low %v538_v37, %v542_v38  ;;  %v343_v37 = vld [vmem:[#allocation5 + $0x668] sm:$0xff]  ;;  %v148_v38 = vld [vmem:[#allocation5 + $0x50] sm:$0xff] }
 0x106   :  { %3081 = vmatprep.subr.bf16.mxu1 %v6115_v53  ;;  %v554_v53 = vld [vmem:[#allocation5 + $0xd00] sm:$0xff] }
 0x107   :  { %2998 = vmatpush1.bf16.msra.mxu0 %v6360_v52  ;;  %v6171_v52 = vcombine.high %v291_v46, %v295_v48  ;;  %v6433_v4 = vcombine.high %v554_v53, %v558_v56  ;;  %v156_v46 = vld [vmem:[#allocation5 + $0x90] sm:$0xff] }
 0x108   :  { %2999 = vmatprep.subr.bf16.mxu0 %v6369_v60  ;;  %v303_v60 = vld [vmem:[#allocation5 + $0x528] sm:$0xff]  ;;  %v160_v48 = vld [vmem:[#allocation5 + $0xb0] sm:$0xff] }
 0x109   :  { %3082 = vmatpush1.bf16.msra.mxu1 %v6114_v63  ;;  %v6424_v63 = vcombine.low %v546_v44, %v550_v45  ;;  %v6178_v6 = vcombine.low %v299_v57, %v303_v60  ;;  %v347_v44 = vld [vmem:[#allocation5 + $0x688] sm:$0xff] }
 0x10a   :  { %3083 = vmatprep.subr.bf16.mxu1 %v6123_v1  ;;  %v562_v1 = vld [vmem:[#allocation5 + $0xd40] sm:$0xff]  ;;  %v351_v45 = vld [vmem:[#allocation5 + $0x6a8] sm:$0xff] }
 0x10b   :  { %3000 = vmatpush1.bf16.msra.mxu0 %v6368_v0  ;;  %v6179_v0 = vcombine.high %v299_v57, %v303_v60  ;;  %v6441_v12 = vcombine.high %v562_v1, %v566_v2  ;;  %v164_v57 = vld [vmem:[#allocation5 + $0xd0] sm:$0xff] }
 0x10c   :  { %3001 = vmatprep.subr.bf16.mxu0 %v6377_v5  ;;  %v311_v5 = vld [vmem:[#allocation5 + $0x568] sm:$0xff]  ;;  %v168_v60 = vld [vmem:[#allocation5 + $0xf0] sm:$0xff] }
 0x10d   :  { %3084 = vmatpush1.bf16.msra.mxu1 %v6122_v7  ;;  %v6432_v7 = vcombine.low %v554_v53, %v558_v56  ;;  %v6186_v14 = vcombine.low %v307_v3, %v311_v5  ;;  %v355_v53 = vld [vmem:[#allocation5 + $0x6c8] sm:$0xff] }
 0x10e   :  { %3085 = vmatprep.subr.bf16.mxu1 %v6131_v9  ;;  %v570_v9 = vld [vmem:[#allocation5 + $0xd80] sm:$0xff]  ;;  %v359_v56 = vld [vmem:[#allocation5 + $0x6e8] sm:$0xff] }
 0x10f   :  { %3002 = vmatpush1.bf16.msra.mxu0 %v6376_v8  ;;  %v6187_v8 = vcombine.high %v307_v3, %v311_v5  ;;  %v6449_v21 = vcombine.high %v570_v9, %v574_v10  ;;  %v172_v3 = vld [vmem:[#allocation5 + $0x110] sm:$0xff] }
 0x110   :  { %3003 = vmatprep.subr.bf16.mxu0 %v6385_v13  ;;  %v319_v13 = vld [vmem:[#allocation5 + $0x5a8] sm:$0xff]  ;;  %v176_v5 = vld [vmem:[#allocation5 + $0x130] sm:$0xff] }
 0x111   :  { %3086 = vmatpush1.bf16.msra.mxu1 %v6130_v15  ;;  %v6440_v15 = vcombine.low %v562_v1, %v566_v2  ;;  %v6194_v25 = vcombine.low %v315_v11, %v319_v13  ;;  %v363_v1 = vld [vmem:[#allocation5 + $0x708] sm:$0xff] }
 0x112   :  { %3087 = vmatprep.subr.bf16.mxu1 %v6139_v18  ;;  %v578_v18 = vld [vmem:[#allocation5 + $0xdc0] sm:$0xff]  ;;  %v367_v2 = vld [vmem:[#allocation5 + $0x728] sm:$0xff] }
 0x113   :  { %3004 = vmatpush1.bf16.msra.mxu0 %v6384_v16  ;;  %v6195_v16 = vcombine.high %v315_v11, %v319_v13  ;;  %v6457_v30 = vcombine.high %v578_v18, %v582_v19  ;;  %v180_v11 = vld [vmem:[#allocation5 + $0x150] sm:$0xff] }
 0x114   :  { %3005 = vmatprep.subr.bf16.mxu0 %v6393_v24  ;;  %v327_v24 = vld [vmem:[#allocation5 + $0x5e8] sm:$0xff]  ;;  %v184_v13 = vld [vmem:[#allocation5 + $0x170] sm:$0xff] }
 0x115   :  { %3088 = vmatpush1.bf16.msra.mxu1 %v6138_v26  ;;  %v6448_v26 = vcombine.low %v570_v9, %v574_v10  ;;  %v6202_v32 = vcombine.low %v323_v23, %v327_v24  ;;  %v371_v9 = vld [vmem:[#allocation5 + $0x748] sm:$0xff] }
 0x116   :  { %3098 = vmatprep.subr.bf16.mxu1 %v6147_v54  ;;  %v331_v54 = vld [vmem:[#allocation5 + $0x608] sm:$0xff] }
 0x117   :  { %3006 = vmatpush1.bf16.msra.mxu0 %v6392_v27  ;;  %v6203_v27 = vcombine.high %v323_v23, %v327_v24  ;;  %v375_v10 = vld [vmem:[#allocation5 + $0x768] sm:$0xff]  ;;  %v6061_v23 = vcombine.high %v180_v11, %v184_v13  ;;  %v192_v24 = vld [vmem:[#allocation5 + $0x1b0] sm:$0xff] }
 0x118   :  { %3016 = vmatprep.subr.bf16.mxu0 %v6401_v31  ;;  %3090 = vmatmul.mubr.bf16.vlgmr.msra.gmra.mrb[4].mxu1 %v7749_v17  ;;  %v144_v31 = vld [vmem:[#allocation5 + $0x30] sm:$0xff] }
 0x119   :  { %3099 = vmatpush1.bf16.msra.mxu1 %v6146_v33  ;;  %3130 = vmatprep.mubr.bf16.mxu1 %v7743_v62  ;;  %v6456_v33 = vcombine.low %v578_v18, %v582_v19  ;;  %v379_v18 = vld [vmem:[#allocation5 + $0x788] sm:$0xff] }
 0x11a   :  { %3008 = vmatmul.mubr.bf16.vlgmr.msra.gmra.mrb[0].mxu0 %v7767_v34  ;;  %3100 = vmatprep.subr.bf16.mxu1 %v6155_v36  ;;  %v339_v36 = vld [vmem:[#allocation5 + $0x648] sm:$0xff] }
 0x11b   :  { %3017 = vmatpush1.bf16.msra.mxu0 %v6400_v35  ;;  %3048 = vmatprep.mubr.bf16.mxu0 %v7583_v49  ;;  %v6211_v35 = vcombine.high %v331_v54, %v335_v28  ;;  %v383_v19 = vld [vmem:[#allocation5 + $0x7a8] sm:$0xff] }
 0x11c   :  { %3018 = vmatprep.subr.bf16.mxu0 %v6409_v40  ;;  %v6021_v40 = vcombine.high %v140_v55, %v144_v31 }
 0x11d   :  { %3101 = vmatpush1.bf16.msra.mxu1 %v6154_v42  ;;  %v6210_v42 = vcombine.low %v331_v54, %v335_v28  ;;  %v387_v54 = vld [vmem:[#allocation5 + $0x7c8] sm:$0xff] }
 0x11e   :  { %3102 = vmatprep.subr.bf16.mxu1 %v6163_v20  ;;  %v6219_v20 = vcombine.high %v339_v36, %v343_v37  ;;  %v391_v28 = vld [vmem:[#allocation5 + $0x7e8] sm:$0xff] }
 0x11f   :  { %3019 = vmatpush1.bf16.msra.mxu0 %v6408_v43  ;;  %v6020_v43 = vcombine.low %v140_v55, %v144_v31  ;;  %v196_v55 = vld [vmem:[#allocation5 + $0x1d0] sm:$0xff] }
 0x120   :  { %3020 = vmatprep.subr.bf16.mxu0 %v6417_v47  ;;  %v6029_v47 = vcombine.high %v148_v38, %v152_v41  ;;  %v200_v31 = vld [vmem:[#allocation5 + $0x1f0] sm:$0xff] }
 0x121   :  { %3103 = vmatpush1.bf16.msra.mxu1 %v6162_v50  ;;  %v6218_v50 = vcombine.low %v339_v36, %v343_v37  ;;  %v395_v36 = vld [vmem:[#allocation5 + $0x808] sm:$0xff] }
 0x122   :  { %3104 = vmatprep.subr.bf16.mxu1 %v6171_v52  ;;  %v6227_v52 = vcombine.high %v347_v44, %v351_v45  ;;  %v399_v37 = vld [vmem:[#allocation5 + $0x828] sm:$0xff] }
 0x123   :  { %3021 = vmatpush1.bf16.msra.mxu0 %v6416_v51  ;;  %v6028_v51 = vcombine.low %v148_v38, %v152_v41  ;;  %v204_v38 = vld [vmem:[#allocation5 + $0x210] sm:$0xff]  ;;  %v6266_v41 = vcombine.low %v387_v54, %v391_v28 }
 0x124   :  { %3022 = vmatprep.subr.bf16.mxu0 %v6425_v58  ;;  %v6037_v58 = vcombine.high %v156_v46, %v160_v48 }
 0x125   :  { %3105 = vmatpush1.bf16.msra.mxu1 %v6170_v61  ;;  %v6226_v61 = vcombine.low %v347_v44, %v351_v45  ;;  %v407_v44 = vld [vmem:[#allocation5 + $0x868] sm:$0xff]  ;;  %v212_v45 = vld [vmem:[#allocation5 + $0x250] sm:$0xff] }
 0x126   :  { %3106 = vmatprep.subr.bf16.mxu1 %v6179_v0  ;;  %v6235_v0 = vcombine.high %v355_v53, %v359_v56 }
 0x127   :  { %3023 = vmatpush1.bf16.msra.mxu0 %v6424_v63  ;;  %v6036_v63 = vcombine.low %v156_v46, %v160_v48  ;;  %v6274_v48 = vcombine.low %v395_v36, %v399_v37 }
 0x128   :  { %3024 = vmatprep.subr.bf16.mxu0 %v6433_v4  ;;  %v6045_v4 = vcombine.high %v164_v57, %v168_v60 }
 0x129   :  { %3107 = vmatpush1.bf16.msra.mxu1 %v6178_v6  ;;  %v6234_v6 = vcombine.low %v355_v53, %v359_v56  ;;  %v415_v53 = vld [vmem:[#allocation5 + $0x8a8] sm:$0xff]  ;;  %v220_v56 = vld [vmem:[#allocation5 + $0x290] sm:$0xff] }
 0x12a   :  { %3108 = vmatprep.subr.bf16.mxu1 %v6187_v8  ;;  %v6243_v8 = vcombine.high %v363_v1, %v367_v2 }
 0x12b   :  { %3025 = vmatpush1.bf16.msra.mxu0 %v6432_v7  ;;  %v6044_v7 = vcombine.low %v164_v57, %v168_v60 }
 0x12c   :  { %3026 = vmatprep.subr.bf16.mxu0 %v6441_v12  ;;  %v6053_v12 = vcombine.high %v172_v3, %v176_v5 }
 0x12d   :  { %3109 = vmatpush1.bf16.msra.mxu1 %v6186_v14  ;;  %v6242_v14 = vcombine.low %v363_v1, %v367_v2  ;;  %v423_v1 = vld [vmem:[#allocation5 + $0x8e8] sm:$0xff]  ;;  %v228_v2 = vld [vmem:[#allocation5 + $0x2d0] sm:$0xff] }
 0x12e   :  { %3110 = vmatprep.subr.bf16.mxu1 %v6195_v16  ;;  %v6251_v16 = vcombine.high %v371_v9, %v375_v10 }
 0x12f   :  { %3027 = vmatpush1.bf16.msra.mxu0 %v6440_v15  ;;  %v6052_v15 = vcombine.low %v172_v3, %v176_v5 }
 0x130   :  { %3028 = vmatprep.subr.bf16.mxu0 %v6449_v21  ;;  %v188_v21 = vld [vmem:[#allocation5 + $0x190] sm:$0xff] }
 0x131   :  { %3111 = vmatpush1.bf16.msra.mxu1 %v6194_v25  ;;  %v6250_v25 = vcombine.low %v371_v9, %v375_v10  ;;  %v431_v9 = vld [vmem:[#allocation5 + $0x928] sm:$0xff]  ;;  %v236_v10 = vld [vmem:[#allocation5 + $0x310] sm:$0xff] }
 0x132   :  { %3112 = vmatprep.subr.bf16.mxu1 %v6203_v27  ;;  %v6259_v27 = vcombine.high %v379_v18, %v383_v19 }
 0x133   :  { %3029 = vmatpush1.bf16.msra.mxu0 %v6448_v26  ;;  %v6060_v26 = vcombine.low %v180_v11, %v184_v13 }
 0x134   :  { %3030 = vmatprep.subr.bf16.mxu0 %v6457_v30  ;;  %v6069_v30 = vcombine.high %v188_v21, %v192_v24 }
 0x135   :  { %3113 = vmatpush1.bf16.msra.mxu1 %v6202_v32  ;;  %v6258_v32 = vcombine.low %v379_v18, %v383_v19  ;;  %v439_v18 = vld [vmem:[#allocation5 + $0x968] sm:$0xff]  ;;  %v244_v19 = vld [vmem:[#allocation5 + $0x350] sm:$0xff] }
 0x136   :  { %3114 = vmatprep.subr.bf16.mxu1 %v6211_v35  ;;  %v6267_v35 = vcombine.high %v387_v54, %v391_v28  ;;  %v447_v54 = vld [vmem:[#allocation5 + $0x9a8] sm:$0xff]  ;;  %v252_v28 = vld [vmem:[#allocation5 + $0x390] sm:$0xff] }
 0x137   :  { %3031 = vmatpush1.bf16.msra.mxu0 %v6456_v33  ;;  %v6068_v33 = vcombine.low %v188_v21, %v192_v24 }
 0x138   :  { %3221 = vmatprep.subr.bf16.mxu0 %v6021_v40  ;;  %v208_v40 = vld [vmem:[#allocation5 + $0x230] sm:$0xff] }
 0x139   :  { %3115 = vmatpush1.bf16.msra.mxu1 %v6210_v42  ;;  %v6076_v42 = vcombine.low %v196_v55, %v200_v31  ;;  %v6085_v46 = vcombine.high %v204_v38, %v208_v40 }
 0x13a   :  { %3049 = vmatmul.mubr.bf16.vlgmr.msra.gmra.mrb[0].mxu0 %v6895_v39  ;;  %3116 = vmatprep.subr.bf16.mxu1 %v6219_v20  ;;  %v6077_v39 = vcombine.high %v196_v55, %v200_v31  ;;  %v403_v20 = vld [vmem:[#allocation5 + $0x848] sm:$0xff] }
 0x13b   :  { %3222 = vmatpush1.bf16.msra.mxu0 %v6020_v43  ;;  %3253 = vmatprep.mubr.bf16.mxu0 %v7739_v59  ;;  %v6275_v43 = vcombine.high %v395_v36, %v399_v37  ;;  %v6282_v60 = vcombine.low %v403_v20, %v407_v44  ;;  %v455_v36 = vld [vmem:[#allocation5 + $0x9e8] sm:$0xff]  ;;  %v260_v37 = vld [vmem:[#allocation5 + $0x3d0] sm:$0xff] }
 0x13c   :  { %3223 = vmatprep.subr.bf16.mxu0 %v6029_v47  ;;  %v216_v47 = vld [vmem:[#allocation5 + $0x270] sm:$0xff] }
 0x13d   :  { %3117 = vmatpush1.bf16.msra.mxu1 %v6218_v50  ;;  %v6084_v50 = vcombine.low %v204_v38, %v208_v40  ;;  %v6093_v57 = vcombine.high %v212_v45, %v216_v47 }
 0x13e   :  { %3118 = vmatprep.subr.bf16.mxu1 %v6227_v52  ;;  %v411_v52 = vld [vmem:[#allocation5 + $0x888] sm:$0xff] }
 0x13f   :  { %3224 = vmatpush1.bf16.msra.mxu0 %v6028_v51  ;;  %v6283_v51 = vcombine.high %v403_v20, %v407_v44  ;;  %v6290_v5 = vcombine.low %v411_v52, %v415_v53  ;;  %v463_v20 = vld [vmem:[#allocation5 + $0xa28] sm:$0xff]  ;;  %v268_v44 = vld [vmem:[#allocation5 + $0x410] sm:$0xff] }
 0x140   :  { %3225 = vmatprep.subr.bf16.mxu0 %v6037_v58  ;;  %v224_v58 = vld [vmem:[#allocation5 + $0x2b0] sm:$0xff] }
 0x141   :  { %3119 = vmatpush1.bf16.msra.mxu1 %v6226_v61  ;;  %v6092_v61 = vcombine.low %v212_v45, %v216_v47  ;;  %v6101_v3 = vcombine.high %v220_v56, %v224_v58 }
 0x142   :  { %3120 = vmatprep.subr.bf16.mxu1 %v6235_v0  ;;  %v419_v0 = vld [vmem:[#allocation5 + $0x8c8] sm:$0xff] }
 0x143   :  { %3226 = vmatpush1.bf16.msra.mxu0 %v6036_v63  ;;  %v6291_v63 = vcombine.high %v411_v52, %v415_v53  ;;  %v6298_v13 = vcombine.low %v419_v0, %v423_v1  ;;  %v471_v52 = vld [vmem:[#allocation5 + $0xa68] sm:$0xff]  ;;  %v276_v53 = vld [vmem:[#allocation5 + $0x450] sm:$0xff] }
 0x144   :  { %3227 = vmatprep.subr.bf16.mxu0 %v6045_v4  ;;  %v232_v4 = vld [vmem:[#allocation5 + $0x2f0] sm:$0xff] }
 0x145   :  { %3121 = vmatpush1.bf16.msra.mxu1 %v6234_v6  ;;  %v6100_v6 = vcombine.low %v220_v56, %v224_v58  ;;  %v6109_v11 = vcombine.high %v228_v2, %v232_v4 }
 0x146   :  { %3122 = vmatprep.subr.bf16.mxu1 %v6243_v8  ;;  %v427_v8 = vld [vmem:[#allocation5 + $0x908] sm:$0xff] }
 0x147   :  { %3228 = vmatpush1.bf16.msra.mxu0 %v6044_v7  ;;  %v6299_v7 = vcombine.high %v419_v0, %v423_v1  ;;  %v6306_v24 = vcombine.low %v427_v8, %v431_v9  ;;  %v479_v1 = vld [vmem:[#allocation5 + $0xaa8] sm:$0xff] }
 0x148   :  { %3229 = vmatprep.subr.bf16.mxu0 %v6053_v12  ;;  %v240_v12 = vld [vmem:[#allocation5 + $0x330] sm:$0xff] }
 0x149   :  { %3123 = vmatpush1.bf16.msra.mxu1 %v6242_v14  ;;  %v6108_v14 = vcombine.low %v228_v2, %v232_v4  ;;  %v6117_v21 = vcombine.high %v236_v10, %v240_v12  ;;  %v284_v2 = vld [vmem:[#allocation5 + $0x490] sm:$0xff] }
 0x14a   :  { %3124 = vmatprep.subr.bf16.mxu1 %v6251_v16  ;;  %v435_v16 = vld [vmem:[#allocation5 + $0x948] sm:$0xff] }
 0x14b   :  { %3230 = vmatpush1.bf16.msra.mxu0 %v6052_v15  ;;  %v6307_v15 = vcombine.high %v427_v8, %v431_v9  ;;  %v6314_v31 = vcombine.low %v435_v16, %v439_v18  ;;  %v483_v8 = vld [vmem:[#allocation5 + $0xac8] sm:$0xff] }
 0x14c   :  { %3231 = vmatprep.subr.bf16.mxu0 %v6061_v23  ;;  %v248_v23 = vld [vmem:[#allocation5 + $0x370] sm:$0xff]  ;;  %v487_v9 = vld [vmem:[#allocation5 + $0xae8] sm:$0xff] }
 0x14d   :  { %3125 = vmatpush1.bf16.msra.mxu1 %v6250_v25  ;;  %v6116_v25 = vcombine.low %v236_v10, %v240_v12  ;;  %v6125_v55 = vcombine.high %v244_v19, %v248_v23  ;;  %v292_v10 = vld [vmem:[#allocation5 + $0x4d0] sm:$0xff] }
 0x14e   :  { %3126 = vmatprep.subr.bf16.mxu1 %v6259_v27  ;;  %v443_v27 = vld [vmem:[#allocation5 + $0x988] sm:$0xff] }
 0x14f   :  { %3232 = vmatpush1.bf16.msra.mxu0 %v6060_v26  ;;  %v6315_v26 = vcombine.high %v435_v16, %v439_v18  ;;  %v6322_v40 = vcombine.low %v443_v27, %v447_v54  ;;  %v491_v16 = vld [vmem:[#allocation5 + $0xb08] sm:$0xff] }
 0x150   :  { %3233 = vmatprep.subr.bf16.mxu0 %v6069_v30  ;;  %v256_v30 = vld [vmem:[#allocation5 + $0x3b0] sm:$0xff]  ;;  %v495_v18 = vld [vmem:[#allocation5 + $0xb28] sm:$0xff] }
 0x151   :  { %3127 = vmatpush1.bf16.msra.mxu1 %v6258_v32  ;;  %v6124_v32 = vcombine.low %v244_v19, %v248_v23  ;;  %v6133_v38 = vcombine.high %v252_v28, %v256_v30  ;;  %v300_v19 = vld [vmem:[#allocation5 + $0x510] sm:$0xff]  ;;  %v6362_v23 = vcombine.low %v483_v8, %v487_v9 }
 0x152   :  { %3128 = vmatprep.subr.bf16.mxu1 %v6267_v35  ;;  %v451_v35 = vld [vmem:[#allocation5 + $0x9c8] sm:$0xff] }
 0x153   :  { %3234 = vmatpush1.bf16.msra.mxu0 %v6068_v33  ;;  %v6323_v33 = vcombine.high %v443_v27, %v447_v54  ;;  %v6330_v47 = vcombine.low %v451_v35, %v455_v36  ;;  %v499_v27 = vld [vmem:[#allocation5 + $0xb48] sm:$0xff] }
 0x154   :  { %3235 = vmatprep.subr.bf16.mxu0 %v6077_v39  ;;  %v264_v39 = vld [vmem:[#allocation5 + $0x3f0] sm:$0xff]  ;;  %v503_v54 = vld [vmem:[#allocation5 + $0xb68] sm:$0xff] }
 0x155   :  { %3129 = vmatpush1.bf16.msra.mxu1 %v6266_v41  ;;  %v6132_v41 = vcombine.low %v252_v28, %v256_v30  ;;  %v6141_v45 = vcombine.high %v260_v37, %v264_v39  ;;  %v308_v28 = vld [vmem:[#allocation5 + $0x550] sm:$0xff]  ;;  %v6370_v30 = vcombine.low %v491_v16, %v495_v18 }
 0x156   :  { %3139 = vmatprep.subr.bf16.mxu1 %v6275_v43  ;;  %v459_v43 = vld [vmem:[#allocation5 + $0xa08] sm:$0xff] }
 0x157   :  { %3236 = vmatpush1.bf16.msra.mxu0 %v6076_v42  ;;  %v6331_v42 = vcombine.high %v451_v35, %v455_v36  ;;  %v6338_v58 = vcombine.low %v459_v43, %v463_v20  ;;  %v507_v35 = vld [vmem:[#allocation5 + $0xb88] sm:$0xff] }
 0x158   :  { %3237 = vmatprep.subr.bf16.mxu0 %v6085_v46  ;;  %3131 = vmatmul.mubr.bf16.vlgmr.msra.gmra.mrb[4].mxu1 %v7755_v22  ;;  %v272_v46 = vld [vmem:[#allocation5 + $0x430] sm:$0xff]  ;;  %v511_v36 = vld [vmem:[#allocation5 + $0xba8] sm:$0xff] }
 0x159   :  { %3140 = vmatpush1.bf16.msra.mxu1 %v6274_v48  ;;  %3171 = vmatprep.mubr.bf16.mxu1 %v7759_v29  ;;  %v6140_v48 = vcombine.low %v260_v37, %v264_v39  ;;  %v6149_v56 = vcombine.high %v268_v44, %v272_v46  ;;  %v316_v37 = vld [vmem:[#allocation5 + $0x590] sm:$0xff]  ;;  %v6378_v39 = vcombine.low %v499_v27, %v503_v54 }
 0x15a   :  { %3141 = vmatprep.subr.bf16.mxu1 %v6283_v51  ;;  %v467_v51 = vld [vmem:[#allocation5 + $0xa48] sm:$0xff] }
 0x15b   :  { %3238 = vmatpush1.bf16.msra.mxu0 %v6084_v50  ;;  %v6339_v50 = vcombine.high %v459_v43, %v463_v20  ;;  %v6346_v4 = vcombine.low %v467_v51, %v471_v52  ;;  %v515_v43 = vld [vmem:[#allocation5 + $0xbc8] sm:$0xff] }
 0x15c   :  { %3239 = vmatprep.subr.bf16.mxu0 %v6093_v57  ;;  %v280_v57 = vld [vmem:[#allocation5 + $0x470] sm:$0xff]  ;;  %v519_v20 = vld [vmem:[#allocation5 + $0xbe8] sm:$0xff] }
 0x15d   :  { %3142 = vmatpush1.bf16.msra.mxu1 %v6282_v60  ;;  %v6148_v60 = vcombine.low %v268_v44, %v272_v46  ;;  %v6157_v0 = vcombine.high %v276_v53, %v280_v57  ;;  %v324_v44 = vld [vmem:[#allocation5 + $0x5d0] sm:$0xff]  ;;  %v6386_v46 = vcombine.low %v507_v35, %v511_v36 }
 0x15e   :  { %3143 = vmatprep.subr.bf16.mxu1 %v6291_v63  ;;  %v475_v63 = vld [vmem:[#allocation5 + $0xa88] sm:$0xff] }
 0x15f   :  { %3240 = vmatpush1.bf16.msra.mxu0 %v6092_v61  ;;  %v6347_v61 = vcombine.high %v467_v51, %v471_v52  ;;  %v6354_v12 = vcombine.low %v475_v63, %v479_v1  ;;  %v523_v51 = vld [vmem:[#allocation5 + $0xc08] sm:$0xff] }
 0x160   :  { %3241 = vmatprep.subr.bf16.mxu0 %v6101_v3  ;;  %v288_v3 = vld [vmem:[#allocation5 + $0x4b0] sm:$0xff]  ;;  %v527_v52 = vld [vmem:[#allocation5 + $0xc28] sm:$0xff] }
 0x161   :  { %3144 = vmatpush1.bf16.msra.mxu1 %v6290_v5  ;;  %v6156_v5 = vcombine.low %v276_v53, %v280_v57  ;;  %v332_v53 = vld [vmem:[#allocation5 + $0x610] sm:$0xff]  ;;  %v6394_v57 = vcombine.low %v515_v43, %v519_v20 }
 0x162   :  { %3145 = vmatprep.subr.bf16.mxu1 %v6299_v7  ;;  %v6165_v7 = vcombine.high %v284_v2, %v288_v3 }
 0x163   :  { %3242 = vmatpush1.bf16.msra.mxu0 %v6100_v6  ;;  %v6355_v6 = vcombine.high %v475_v63, %v479_v1  ;;  %v531_v63 = vld [vmem:[#allocation5 + $0xc48] sm:$0xff]  ;;  %v340_v1 = vld [vmem:[#allocation5 + $0x650] sm:$0xff] }
 0x164   :  { %3243 = vmatprep.subr.bf16.mxu0 %v6109_v11  ;;  %v296_v11 = vld [vmem:[#allocation5 + $0x4f0] sm:$0xff] }
 0x165   :  { %3146 = vmatpush1.bf16.msra.mxu1 %v6298_v13  ;;  %v6164_v13 = vcombine.low %v284_v2, %v288_v3  ;;  %v344_v2 = vld [vmem:[#allocation5 + $0x670] sm:$0xff]  ;;  %v6402_v3 = vcombine.low %v523_v51, %v527_v52 }
 0x166   :  { %3147 = vmatprep.subr.bf16.mxu1 %v6307_v15  ;;  %v6173_v15 = vcombine.high %v292_v10, %v296_v11 }
 0x167   :  { %3244 = vmatpush1.bf16.msra.mxu0 %v6108_v14  ;;  %v6363_v14 = vcombine.high %v483_v8, %v487_v9  ;;  %v543_v8 = vld [vmem:[#allocation5 + $0xca8] sm:$0xff]  ;;  %v348_v9 = vld [vmem:[#allocation5 + $0x690] sm:$0xff] }
 0x168   :  { %3245 = vmatprep.subr.bf16.mxu0 %v6117_v21  ;;  %v304_v21 = vld [vmem:[#allocation5 + $0x530] sm:$0xff] }
 0x169   :  { %3148 = vmatpush1.bf16.msra.mxu1 %v6306_v24  ;;  %v6172_v24 = vcombine.low %v292_v10, %v296_v11  ;;  %v352_v10 = vld [vmem:[#allocation5 + $0x6b0] sm:$0xff] }
 0x16a   :  { %3149 = vmatprep.subr.bf16.mxu1 %v6315_v26  ;;  %v6181_v26 = vcombine.high %v300_v19, %v304_v21 }
 0x16b   :  { %3246 = vmatpush1.bf16.msra.mxu0 %v6116_v25  ;;  %v6371_v25 = vcombine.high %v491_v16, %v495_v18  ;;  %v551_v16 = vld [vmem:[#allocation5 + $0xce8] sm:$0xff]  ;;  %v356_v18 = vld [vmem:[#allocation5 + $0x6d0] sm:$0xff] }
 0x16c   :  { %3247 = vmatprep.subr.bf16.mxu0 %v6125_v55  ;;  %v312_v55 = vld [vmem:[#allocation5 + $0x570] sm:$0xff] }
 0x16d   :  { %3150 = vmatpush1.bf16.msra.mxu1 %v6314_v31  ;;  %v6180_v31 = vcombine.low %v300_v19, %v304_v21  ;;  %v360_v19 = vld [vmem:[#allocation5 + $0x6f0] sm:$0xff] }
 0x16e   :  { %3151 = vmatprep.subr.bf16.mxu1 %v6323_v33  ;;  %v6189_v33 = vcombine.high %v308_v28, %v312_v55 }
 0x16f   :  { %3248 = vmatpush1.bf16.msra.mxu0 %v6124_v32  ;;  %v6379_v32 = vcombine.high %v499_v27, %v503_v54  ;;  %v559_v27 = vld [vmem:[#allocation5 + $0xd28] sm:$0xff]  ;;  %v364_v54 = vld [vmem:[#allocation5 + $0x710] sm:$0xff] }
 0x170   :  { %3249 = vmatprep.subr.bf16.mxu0 %v6133_v38  ;;  %v320_v38 = vld [vmem:[#allocation5 + $0x5b0] sm:$0xff] }
 0x171   :  { %3152 = vmatpush1.bf16.msra.mxu1 %v6322_v40  ;;  %v6188_v40 = vcombine.low %v308_v28, %v312_v55  ;;  %v368_v28 = vld [vmem:[#allocation5 + $0x730] sm:$0xff] }
 0x172   :  { %3153 = vmatprep.subr.bf16.mxu1 %v6331_v42  ;;  %v6197_v42 = vcombine.high %v316_v37, %v320_v38 }
 0x173   :  { %3250 = vmatpush1.bf16.msra.mxu0 %v6132_v41  ;;  %v6387_v41 = vcombine.high %v507_v35, %v511_v36  ;;  %v567_v35 = vld [vmem:[#allocation5 + $0xd68] sm:$0xff]  ;;  %v372_v36 = vld [vmem:[#allocation5 + $0x750] sm:$0xff] }
 0x174   :  { %3251 = vmatprep.subr.bf16.mxu0 %v6141_v45  ;;  %v328_v45 = vld [vmem:[#allocation5 + $0x5f0] sm:$0xff] }
 0x175   :  { %3154 = vmatpush1.bf16.msra.mxu1 %v6330_v47  ;;  %v6196_v47 = vcombine.low %v316_v37, %v320_v38  ;;  %v376_v37 = vld [vmem:[#allocation5 + $0x770] sm:$0xff] }
 0x176   :  { %3155 = vmatprep.subr.bf16.mxu1 %v6339_v50  ;;  %v6205_v50 = vcombine.high %v324_v44, %v328_v45 }
 0x177   :  { %3252 = vmatpush1.bf16.msra.mxu0 %v6140_v48  ;;  %v6395_v48 = vcombine.high %v515_v43, %v519_v20  ;;  %v575_v43 = vld [vmem:[#allocation5 + $0xda8] sm:$0xff]  ;;  %v380_v20 = vld [vmem:[#allocation5 + $0x790] sm:$0xff] }
 0x178   :  { %3262 = vmatprep.subr.bf16.mxu0 %v6149_v56  ;;  %v336_v56 = vld [vmem:[#allocation5 + $0x630] sm:$0xff] }
 0x179   :  { %3156 = vmatpush1.bf16.msra.mxu1 %v6338_v58  ;;  %v6204_v58 = vcombine.low %v324_v44, %v328_v45  ;;  %v384_v44 = vld [vmem:[#allocation5 + $0x7b0] sm:$0xff] }
 0x17a   :  { %3254 = vmatmul.mubr.bf16.vlgmr.msra.gmra.mrb[4].mxu0 %v7749_v17  ;;  %3157 = vmatprep.subr.bf16.mxu1 %v6347_v61  ;;  %v6213_v61 = vcombine.high %v332_v53, %v336_v56 }
 0x17b   :  { %3263 = vmatpush1.bf16.msra.mxu0 %v6148_v60  ;;  %3294 = vmatprep.mubr.bf16.mxu0 %v7743_v62  ;;  %v6403_v60 = vcombine.high %v523_v51, %v527_v52  ;;  %v579_v51 = vld [vmem:[#allocation5 + $0xdc8] sm:$0xff] }
 0x17c   :  { %3264 = vmatprep.subr.bf16.mxu0 %v6157_v0  ;;  %v535_v0 = vld [vmem:[#allocation5 + $0xc68] sm:$0xff] }
 0x17d   :  { %3158 = vmatpush1.bf16.msra.mxu1 %v6346_v4  ;;  %v6212_v4 = vcombine.low %v332_v53, %v336_v56  ;;  %v6410_v11 = vcombine.low %v531_v63, %v535_v0  ;;  %v583_v52 = vld [vmem:[#allocation5 + $0xde8] sm:$0xff]  ;;  %v388_v56 = vld [vmem:[#allocation5 + $0x7d0] sm:$0xff] }
 0x17e   :  { %3159 = vmatprep.subr.bf16.mxu1 %v6355_v6  ;;  %v6221_v6 = vcombine.high %v340_v1, %v344_v2 }
 0x17f   :  { %3265 = vmatpush1.bf16.msra.mxu0 %v6156_v5  ;;  %v6411_v5 = vcombine.high %v531_v63, %v535_v0  ;;  %v6260_v63 = vcombine.low %v380_v20, %v384_v44  ;;  %v6459_v0 = vcombine.high %v579_v51, %v583_v52 }
 0x180   :  { %3266 = vmatprep.subr.bf16.mxu0 %v6165_v7  ;;  %v539_v7 = vld [vmem:[#allocation5 + $0xc88] sm:$0xff] }
 0x181   :  { %3160 = vmatpush1.bf16.msra.mxu1 %v6354_v12  ;;  %v6220_v12 = vcombine.low %v340_v1, %v344_v2  ;;  %v6418_v21 = vcombine.low %v539_v7, %v543_v8  ;;  %v141_v2 = vld [vmem:[#allocation5 + $0x18] sm:$0xff] }
 0x182   :  { %3161 = vmatprep.subr.bf16.mxu1 %v6363_v14  ;;  %v6229_v14 = vcombine.high %v348_v9, %v352_v10 }
 0x183   :  { %3267 = vmatpush1.bf16.msra.mxu0 %v6164_v13  ;;  %v6419_v13 = vcombine.high %v539_v7, %v543_v8 }
 0x184   :  { %3268 = vmatprep.subr.bf16.mxu0 %v6173_v15  ;;  %v547_v15 = vld [vmem:[#allocation5 + $0xcc8] sm:$0xff] }
 0x185   :  { %3162 = vmatpush1.bf16.msra.mxu1 %v6362_v23  ;;  %v6228_v23 = vcombine.low %v348_v9, %v352_v10  ;;  %v6426_v55 = vcombine.low %v547_v15, %v551_v16  ;;  %v149_v10 = vld [vmem:[#allocation5 + $0x58] sm:$0xff] }
 0x186   :  { %3163 = vmatprep.subr.bf16.mxu1 %v6371_v25  ;;  %v6237_v25 = vcombine.high %v356_v18, %v360_v19 }
 0x187   :  { %3269 = vmatpush1.bf16.msra.mxu0 %v6172_v24  ;;  %v6427_v24 = vcombine.high %v547_v15, %v551_v16 }
 0x188   :  { %3270 = vmatprep.subr.bf16.mxu0 %v6181_v26  ;;  %v555_v26 = vld [vmem:[#allocation5 + $0xd08] sm:$0xff] }
 0x189   :  { %3164 = vmatpush1.bf16.msra.mxu1 %v6370_v30  ;;  %v6236_v30 = vcombine.low %v356_v18, %v360_v19  ;;  %v6434_v38 = vcombine.low %v555_v26, %v559_v27  ;;  %v157_v19 = vld [vmem:[#allocation5 + $0x98] sm:$0xff] }
 0x18a   :  { %3165 = vmatprep.subr.bf16.mxu1 %v6379_v32  ;;  %v6245_v32 = vcombine.high %v364_v54, %v368_v28 }
 0x18b   :  { %3271 = vmatpush1.bf16.msra.mxu0 %v6180_v31  ;;  %v6435_v31 = vcombine.high %v555_v26, %v559_v27 }
 0x18c   :  { %3272 = vmatprep.subr.bf16.mxu0 %v6189_v33  ;;  %v563_v33 = vld [vmem:[#allocation5 + $0xd48] sm:$0xff] }
 0x18d   :  { %3166 = vmatpush1.bf16.msra.mxu1 %v6378_v39  ;;  %v6244_v39 = vcombine.low %v364_v54, %v368_v28  ;;  %v6442_v45 = vcombine.low %v563_v33, %v567_v35 }
 0x18e   :  { %3167 = vmatprep.subr.bf16.mxu1 %v6387_v41  ;;  %v6253_v41 = vcombine.high %v372_v36, %v376_v37 }
 0x18f   :  { %3273 = vmatpush1.bf16.msra.mxu0 %v6188_v40  ;;  %v6443_v40 = vcombine.high %v563_v33, %v567_v35 }
 0x190   :  { %3274 = vmatprep.subr.bf16.mxu0 %v6197_v42  ;;  %v571_v42 = vld [vmem:[#allocation5 + $0xd88] sm:$0xff] }
 0x191   :  { %3168 = vmatpush1.bf16.msra.mxu1 %v6386_v46  ;;  %v6252_v46 = vcombine.low %v372_v36, %v376_v37 }
 0x192   :  { %3169 = vmatprep.subr.bf16.mxu1 %v6395_v48 }
 0x193   :  { %3275 = vmatpush1.bf16.msra.mxu0 %v6196_v47  ;;  %v6451_v47 = vcombine.high %v571_v42, %v575_v43 }
 0x194   :  { %3276 = vmatprep.subr.bf16.mxu0 %v6205_v50  ;;  %v6261_v50 = vcombine.high %v380_v20, %v384_v44  ;;  %v181_v44 = vld [vmem:[#allocation5 + $0x158] sm:$0xff] }
 0x195   :  { %3170 = vmatpush1.bf16.msra.mxu1 %v6394_v57  ;;  %v392_v57 = vld [vmem:[#allocation5 + $0x7f0] sm:$0xff] }
 0x196   :  { %3180 = vmatprep.subr.bf16.mxu1 %v6403_v60  ;;  %v6450_v60 = vcombine.low %v571_v42, %v575_v43  ;;  %v6269_v1 = vcombine.high %v388_v56, %v392_v57  ;;  %v6268_v7 = vcombine.low %v388_v56, %v392_v57  ;;  %v189_v57 = vld [vmem:[#allocation5 + $0x198] sm:$0xff] }
 0x197   :  { %3277 = vmatpush1.bf16.msra.mxu0 %v6204_v58 }
 0x198   :  { %3278 = vmatprep.subr.bf16.mxu0 %v6213_v61  ;;  %3172 = vmatmul.mubr.bf16.vlgmr.msra.gmra.mrb[4].mxu1 %v7767_v34 }
 0x199   :  { %3181 = vmatpush1.bf16.msra.mxu1 %v6402_v3  ;;  %3212 = vmatprep.mubr.bf16.mxu1 %v7583_v49  ;;  %v145_v3 = vld [vmem:[#allocation5 + $0x38] sm:$0xff] }
 0x19a   :  { %3182 = vmatprep.subr.bf16.mxu1 %v6411_v5  ;;  %v400_v5 = vld [vmem:[#allocation5 + $0x830] sm:$0xff]  ;;  %v6023_v8 = vcombine.high %v141_v2, %v145_v3 }
 0x19b   :  { %3279 = vmatpush1.bf16.msra.mxu0 %v6212_v4  ;;  %v396_v4 = vld [vmem:[#allocation5 + $0x810] sm:$0xff] }
 0x19c   :  { %3280 = vmatprep.subr.bf16.mxu0 %v6221_v6  ;;  %v6458_v6 = vcombine.low %v579_v51, %v583_v52  ;;  %v6277_v9 = vcombine.high %v396_v4, %v400_v5  ;;  %v6276_v15 = vcombine.low %v396_v4, %v400_v5  ;;  %v201_v4 = vld [vmem:[#allocation5 + $0x1f8] sm:$0xff]  ;;  %v452_v5 = vld [vmem:[#allocation5 + $0x9d0] sm:$0xff] }
 0x19d   :  { %3183 = vmatpush1.bf16.msra.mxu1 %v6410_v11  ;;  %v153_v11 = vld [vmem:[#allocation5 + $0x78] sm:$0xff] }
 0x19e   :  { %3184 = vmatprep.subr.bf16.mxu1 %v6419_v13  ;;  %v408_v13 = vld [vmem:[#allocation5 + $0x870] sm:$0xff]  ;;  %v6031_v16 = vcombine.high %v149_v10, %v153_v11  ;;  %v6030_v26 = vcombine.low %v149_v10, %v153_v11  ;;  %v205_v11 = vld [vmem:[#allocation5 + $0x218] sm:$0xff] }
 0x19f   :  { %3281 = vmatpush1.bf16.msra.mxu0 %v6220_v12  ;;  %v404_v12 = vld [vmem:[#allocation5 + $0x850] sm:$0xff] }
 0x1a0   :  { %3282 = vmatprep.subr.bf16.mxu0 %v6229_v14  ;;  %v6022_v14 = vcombine.low %v141_v2, %v145_v3  ;;  %v6285_v18 = vcombine.high %v404_v12, %v408_v13  ;;  %v6284_v27 = vcombine.low %v404_v12, %v408_v13  ;;  %v197_v3 = vld [vmem:[#allocation5 + $0x1d8] sm:$0xff]  ;;  %v460_v13 = vld [vmem:[#allocation5 + $0xa10] sm:$0xff] }
 0x1a1   :  { %3185 = vmatpush1.bf16.msra.mxu1 %v6418_v21  ;;  %v161_v21 = vld [vmem:[#allocation5 + $0xb8] sm:$0xff] }
 0x1a2   :  { %3186 = vmatprep.subr.bf16.mxu1 %v6427_v24  ;;  %v412_v24 = vld [vmem:[#allocation5 + $0x890] sm:$0xff]  ;;  %v6039_v54 = vcombine.high %v157_v19, %v161_v21  ;;  %v6038_v33 = vcombine.low %v157_v19, %v161_v21  ;;  %v209_v12 = vld [vmem:[#allocation5 + $0x238] sm:$0xff] }
 0x1a3   :  { %3283 = vmatpush1.bf16.msra.mxu0 %v6228_v23  ;;  %v7784_v23 = vld [vmem:[#allocation3 + $0x18] ss:$0 sps:$4 sm:$0xff]  }
 0x1a4   :  { %3284 = vmatprep.subr.bf16.mxu0 %v6237_v25  ;;  %v416_v25 = vld [vmem:[#allocation5 + $0x8b0] sm:$0xff]  ;;  %v213_v21 = vld [vmem:[#allocation5 + $0x258] sm:$0xff] }
 0x1a5   :  { %3187 = vmatpush1.bf16.msra.mxu1 %v6426_v55  ;;  %v6293_v28 = vcombine.high %v412_v24, %v416_v25  ;;  %v165_v55 = vld [vmem:[#allocation5 + $0xd8] sm:$0xff]  ;;  %v6292_v35 = vcombine.low %v412_v24, %v416_v25  ;;  %v468_v25 = vld [vmem:[#allocation5 + $0xa50] sm:$0xff] }
 0x1a6   :  { %3188 = vmatprep.subr.bf16.mxu1 %v6435_v31  ;;  %v420_v31 = vld [vmem:[#allocation5 + $0x8d0] sm:$0xff]  ;;  %v217_v24 = vld [vmem:[#allocation5 + $0x278] sm:$0xff] }
 0x1a7   :  { %3285 = vmatpush1.bf16.msra.mxu0 %v6236_v30  ;;  %v169_v30 = vld [vmem:[#allocation5 + $0xf8] sm:$0xff] }
 0x1a8   :  { %3286 = vmatprep.subr.bf16.mxu0 %v6245_v32  ;;  %v424_v32 = vld [vmem:[#allocation5 + $0x8f0] sm:$0xff]  ;;  %v6047_v36 = vcombine.high %v165_v55, %v169_v30  ;;  %v6046_v42 = vcombine.low %v165_v55, %v169_v30  ;;  %v221_v30 = vld [vmem:[#allocation5 + $0x298] sm:$0xff] }
 0x1a9   :  { %3189 = vmatpush1.bf16.msra.mxu1 %v6434_v38  ;;  %v6301_v37 = vcombine.high %v420_v31, %v424_v32  ;;  %v173_v38 = vld [vmem:[#allocation5 + $0x118] sm:$0xff]  ;;  %v6300_v43 = vcombine.low %v420_v31, %v424_v32  ;;  %v476_v32 = vld [vmem:[#allocation5 + $0xa90] sm:$0xff] }
 0x1aa   :  { %3190 = vmatprep.subr.bf16.mxu1 %v6443_v40  ;;  %v428_v40 = vld [vmem:[#allocation5 + $0x910] sm:$0xff]  ;;  %v225_v31 = vld [vmem:[#allocation5 + $0x2b8] sm:$0xff] }
 0x1ab   :  { %3287 = vmatpush1.bf16.msra.mxu0 %v6244_v39  ;;  %v7780_v48 = vpop.f32.mrb[0].mxu1  ;;  %v177_v39 = vld [vmem:[#allocation5 + $0x138] sm:$0xff] }
 0x1ac   :  { %3288 = vmatprep.subr.bf16.mxu0 %v6253_v41  ;;  %v7782_v53 = vpop.f32.mrb[1].mxu1  ;;  %v432_v41 = vld [vmem:[#allocation5 + $0x930] sm:$0xff]  ;;  %v6055_v20 = vcombine.high %v173_v38, %v177_v39 }
 0x1ad   :  { %v2931_v58 = vpop.f32.mrb[2].mxu1  ;;  %3191 = vmatpush1.bf16.msra.mxu1 %v6442_v45  ;;  %v185_v45 = vld [vmem:[#allocation5 + $0x178] sm:$0xff]  ;;  %v6308_v51 = vcombine.low %v428_v40, %v432_v41 }
 0x1ae   :  { %v2932_v61 = vpop.f32.mrb[3].mxu1  ;;  %3192 = vmatprep.subr.bf16.mxu1 %v6451_v47  ;;  %v440_v47 = vld [vmem:[#allocation5 + $0x970] sm:$0xff]  ;;  %v6063_v52 = vcombine.high %v181_v44, %v185_v45  ;;  %v193_v58 = vld [vmem:[#allocation5 + $0x1b8] sm:$0xff] }
 0x1af   :  { %3289 = vmatpush1.bf16.msra.mxu0 %v6252_v46  ;;  %v436_v46 = vld [vmem:[#allocation5 + $0x950] sm:$0xff] }
 0x1b0   :  { %3290 = vmatprep.subr.bf16.mxu0 %v6261_v50  ;;  %v6054_v50 = vcombine.low %v173_v38, %v177_v39  ;;  %v6317_v56 = vcombine.high %v436_v46, %v440_v47  ;;  %v448_v61 = vld [vmem:[#allocation5 + $0x9b0] sm:$0xff]  ;;  %v229_v39 = vld [vmem:[#allocation5 + $0x2d8] sm:$0xff] }
 0x1b1   :  { %3193 = vmatpush1.bf16.msra.mxu1 %v6450_v60  ;;  %v444_v60 = vld [vmem:[#allocation5 + $0x990] sm:$0xff] }
 0x1b2   :  { %3194 = vmatprep.subr.bf16.mxu1 %v6459_v0  ;;  %v6316_v0 = vcombine.low %v436_v46, %v440_v47  ;;  %v6325_v2 = vcombine.high %v444_v60, %v448_v61  ;;  %v241_v46 = vld [vmem:[#allocation5 + $0x338] sm:$0xff]  ;;  %v492_v47 = vld [vmem:[#allocation5 + $0xb10] sm:$0xff] }
 0x1b3   :  { %3291 = vmatpush1.bf16.msra.mxu0 %v6260_v63  ;;  %v6062_v63 = vcombine.low %v181_v44, %v185_v45  ;;  %v237_v45 = vld [vmem:[#allocation5 + $0x318] sm:$0xff] }
 0x1b4   :  { %3292 = vmatprep.subr.bf16.mxu0 %v6269_v1  ;;  %v6071_v1 = vcombine.high %v189_v57, %v193_v58 }
 0x1b5   :  { %3195 = vmatpush1.bf16.msra.mxu1 %v6458_v6  ;;  %v456_v6 = vld [vmem:[#allocation5 + $0x9f0] sm:$0xff] }
 0x1b6   :  { %3385 = vmatprep.subr.bf16.mxu1 %v6023_v8  ;;  %v6324_v8 = vcombine.low %v444_v60, %v448_v61  ;;  %v6333_v10 = vcombine.high %v452_v5, %v456_v6  ;;  %v249_v60 = vld [vmem:[#allocation5 + $0x378] sm:$0xff]  ;;  %v500_v61 = vld [vmem:[#allocation5 + $0xb50] sm:$0xff] }
 0x1b7   :  { %3293 = vmatpush1.bf16.msra.mxu0 %v6268_v7  ;;  %v6070_v7 = vcombine.low %v189_v57, %v193_v58  ;;  %v245_v58 = vld [vmem:[#allocation5 + $0x358] sm:$0xff] }
 0x1b8   :  { %3303 = vmatprep.subr.bf16.mxu0 %v6277_v9  ;;  %3213 = vmatmul.mubr.bf16.vlgmr.msra.gmra.mrb[4].mxu1 %v7784_v23  ;;  %v6079_v9 = vcombine.high %v197_v3, %v201_v4 }
 0x1b9   :  { %3386 = vmatpush1.bf16.msra.mxu1 %v6022_v14  ;;  %3417 = vmatprep.mubr.bf16.mxu1 %v7739_v59  ;;  %v6309_v59 = vcombine.high %v428_v40, %v432_v41  ;;  %v464_v14 = vld [vmem:[#allocation5 + $0xa30] sm:$0xff]  ;;  %v233_v40 = vld [vmem:[#allocation5 + $0x2f8] sm:$0xff] }
 0x1ba   :  { %3295 = vmatmul.mubr.bf16.vlgmr.msra.gmra.mrb[4].mxu0 %v7755_v22  ;;  %3387 = vmatprep.subr.bf16.mxu1 %v6031_v16  ;;  %v6332_v16 = vcombine.low %v452_v5, %v456_v6  ;;  %v6341_v19 = vcombine.high %v460_v13, %v464_v14  ;;  %v484_v41 = vld [vmem:[#allocation5 + $0xad0] sm:$0xff]  ;;  %v257_v5 = vld [vmem:[#allocation5 + $0x3b8] sm:$0xff] }
 0x1bb   :  { %3304 = vmatpush1.bf16.msra.mxu0 %v6276_v15  ;;  %3335 = vmatprep.mubr.bf16.mxu0 %v7759_v29  ;;  %v6078_v15 = vcombine.low %v197_v3, %v201_v4  ;;  %v253_v4 = vld [vmem:[#allocation5 + $0x398] sm:$0xff]  ;;  %v508_v6 = vld [vmem:[#allocation5 + $0xb90] sm:$0xff] }
 0x1bc   :  { %3305 = vmatprep.subr.bf16.mxu0 %v6285_v18  ;;  %v6087_v18 = vcombine.high %v205_v11, %v209_v12 }
 0x1bd   :  { %3388 = vmatpush1.bf16.msra.mxu1 %v6030_v26  ;;  %v472_v26 = vld [vmem:[#allocation5 + $0xa70] sm:$0xff] }
 0x1be   :  { %3389 = vmatprep.subr.bf16.mxu1 %v6039_v54  ;;  %v6340_v54 = vcombine.low %v460_v13, %v464_v14  ;;  %v6349_v55 = vcombine.high %v468_v25, %v472_v26  ;;  %v265_v13 = vld [vmem:[#allocation5 + $0x3f8] sm:$0xff]  ;;  %v516_v14 = vld [vmem:[#allocation5 + $0xbd0] sm:$0xff] }
 0x1bf   :  { %3306 = vmatpush1.bf16.msra.mxu0 %v6284_v27  ;;  %v6086_v27 = vcombine.low %v205_v11, %v209_v12  ;;  %v261_v12 = vld [vmem:[#allocation5 + $0x3d8] sm:$0xff] }
 0x1c0   :  { %3307 = vmatprep.subr.bf16.mxu0 %v6293_v28  ;;  %v6095_v28 = vcombine.high %v213_v21, %v217_v24 }
 0x1c1   :  { %3390 = vmatpush1.bf16.msra.mxu1 %v6038_v33  ;;  %v480_v33 = vld [vmem:[#allocation5 + $0xab0] sm:$0xff] }
 0x1c2   :  { %3391 = vmatprep.subr.bf16.mxu1 %v6047_v36  ;;  %v6348_v36 = vcombine.low %v468_v25, %v472_v26  ;;  %v6357_v38 = vcombine.high %v476_v32, %v480_v33  ;;  %v273_v25 = vld [vmem:[#allocation5 + $0x438] sm:$0xff]  ;;  %v524_v26 = vld [vmem:[#allocation5 + $0xc10] sm:$0xff] }
 0x1c3   :  { %3308 = vmatpush1.bf16.msra.mxu0 %v6292_v35  ;;  %v6094_v35 = vcombine.low %v213_v21, %v217_v24  ;;  %v269_v24 = vld [vmem:[#allocation5 + $0x418] sm:$0xff] }
 0x1c4   :  { %3309 = vmatprep.subr.bf16.mxu0 %v6301_v37  ;;  %v6103_v37 = vcombine.high %v221_v30, %v225_v31 }
 0x1c5   :  { %3392 = vmatpush1.bf16.msra.mxu1 %v6046_v42  ;;  %v488_v42 = vld [vmem:[#allocation5 + $0xaf0] sm:$0xff] }
 0x1c6   :  { %3393 = vmatprep.subr.bf16.mxu1 %v6055_v20  ;;  %v6356_v20 = vcombine.low %v476_v32, %v480_v33  ;;  %v6365_v44 = vcombine.high %v484_v41, %v488_v42  ;;  %v281_v32 = vld [vmem:[#allocation5 + $0x478] sm:$0xff]  ;;  %v532_v33 = vld [vmem:[#allocation5 + $0xc50] sm:$0xff] }
 0x1c7   :  { %3310 = vmatpush1.bf16.msra.mxu0 %v6300_v43  ;;  %v6102_v43 = vcombine.low %v221_v30, %v225_v31  ;;  %v277_v31 = vld [vmem:[#allocation5 + $0x458] sm:$0xff] }
 0x1c8   :  { %3311 = vmatprep.subr.bf16.mxu0 %v6309_v59  ;;  %v6111_v59 = vcombine.high %v229_v39, %v233_v40 }
 0x1c9   :  { %3394 = vmatpush1.bf16.msra.mxu1 %v6054_v50  ;;  %v496_v50 = vld [vmem:[#allocation5 + $0xb30] sm:$0xff] }
 0x1ca   :  { %3395 = vmatprep.subr.bf16.mxu1 %v6063_v52  ;;  %v6364_v52 = vcombine.low %v484_v41, %v488_v42  ;;  %v6373_v57 = vcombine.high %v492_v47, %v496_v50  ;;  %v289_v41 = vld [vmem:[#allocation5 + $0x4b8] sm:$0xff]  ;;  %v540_v42 = vld [vmem:[#allocation5 + $0xc90] sm:$0xff] }
 0x1cb   :  { %3312 = vmatpush1.bf16.msra.mxu0 %v6308_v51  ;;  %v6110_v51 = vcombine.low %v229_v39, %v233_v40  ;;  %v285_v40 = vld [vmem:[#allocation5 + $0x498] sm:$0xff] }
 0x1cc   :  { %3313 = vmatprep.subr.bf16.mxu0 %v6317_v56  ;;  %v6119_v56 = vcombine.high %v237_v45, %v241_v46 }
 0x1cd   :  { %3396 = vmatpush1.bf16.msra.mxu1 %v6062_v63  ;;  %v504_v63 = vld [vmem:[#allocation5 + $0xb70] sm:$0xff] }
 0x1ce   :  { %3397 = vmatprep.subr.bf16.mxu1 %v6071_v1  ;;  %v6372_v1 = vcombine.low %v492_v47, %v496_v50  ;;  %v6381_v3 = vcombine.high %v500_v61, %v504_v63  ;;  %v293_v47 = vld [vmem:[#allocation5 + $0x4d8] sm:$0xff] }
 0x1cf   :  { %3314 = vmatpush1.bf16.msra.mxu0 %v6316_v0  ;;  %v6118_v0 = vcombine.low %v237_v45, %v241_v46  ;;  %v588_v45 = vlaneseq  ;;  %v297_v50 = vld [vmem:[#allocation5 + $0x4f8] sm:$0xff] }
 0x1d0   :  { %3315 = vmatprep.subr.bf16.mxu0 %v6325_v2  ;;  %v6127_v2 = vcombine.high %v245_v58, %v249_v60 }
 0x1d1   :  { %3398 = vmatpush1.bf16.msra.mxu1 %v6070_v7  ;;  %v512_v7 = vld [vmem:[#allocation5 + $0xbb0] sm:$0xff] }
 0x1d2   :  { %3399 = vmatprep.subr.bf16.mxu1 %v6079_v9  ;;  %v6380_v9 = vcombine.low %v500_v61, %v504_v63  ;;  %v6389_v11 = vcombine.high %v508_v6, %v512_v7  ;;  %v301_v61 = vld [vmem:[#allocation5 + $0x518] sm:$0xff] }
 0x1d3   :  { %3316 = vmatpush1.bf16.msra.mxu0 %v6324_v8  ;;  %v6126_v8 = vcombine.low %v245_v58, %v249_v60  ;;  %v7794_v58 = vshrl.u32 %v588_v45, 7  ;;  %v305_v63 = vld [vmem:[#allocation5 + $0x538] sm:$0xff] }
 0x1d4   :  { %3317 = vmatprep.subr.bf16.mxu0 %v6333_v10  ;;  %v6135_v10 = vcombine.high %v253_v4, %v257_v5 }
 0x1d5   :  { %3400 = vmatpush1.bf16.msra.mxu1 %v6078_v15  ;;  %v520_v15 = vld [vmem:[#allocation5 + $0xbf0] sm:$0xff] }
 0x1d6   :  { %3401 = vmatprep.subr.bf16.mxu1 %v6087_v18  ;;  %v6388_v18 = vcombine.low %v508_v6, %v512_v7  ;;  %v6397_v21 = vcombine.high %v516_v14, %v520_v15  ;;  %v309_v6 = vld [vmem:[#allocation5 + $0x558] sm:$0xff] }
 0x1d7   :  { %3318 = vmatpush1.bf16.msra.mxu0 %v6332_v16  ;;  %v6134_v16 = vcombine.low %v253_v4, %v257_v5  ;;  %v7797_v4 = vsub.s32 0, %v7794_v58  ;;  %v313_v7 = vld [vmem:[#allocation5 + $0x578] sm:$0xff] }
 0x1d8   :  { %3319 = vmatprep.subr.bf16.mxu0 %v6341_v19  ;;  %v6143_v19 = vcombine.high %v261_v12, %v265_v13 }
 0x1d9   :  { %3402 = vmatpush1.bf16.msra.mxu1 %v6086_v27  ;;  %v528_v27 = vld [vmem:[#allocation5 + $0xc30] sm:$0xff] }
 0x1da   :  { %3403 = vmatprep.subr.bf16.mxu1 %v6095_v28  ;;  %v6396_v28 = vcombine.low %v516_v14, %v520_v15  ;;  %v6405_v30 = vcombine.high %v524_v26, %v528_v27  ;;  %v6191_v14 = vcombine.high %v309_v6, %v313_v7 }
 0x1db   :  { %3320 = vmatpush1.bf16.msra.mxu0 %v6340_v54  ;;  %v6142_v54 = vcombine.low %v261_v12, %v265_v13  ;;  %v6182_v12 = vcombine.low %v301_v61, %v305_v63 }
 0x1dc   :  { %3321 = vmatprep.subr.bf16.mxu0 %v6349_v55  ;;  %v6151_v55 = vcombine.high %v269_v24, %v273_v25 }
 0x1dd   :  { %3404 = vmatpush1.bf16.msra.mxu1 %v6094_v35  ;;  %v536_v35 = vld [vmem:[#allocation5 + $0xc70] sm:$0xff] }
 0x1de   :  { %3405 = vmatprep.subr.bf16.mxu1 %v6103_v37  ;;  %v6404_v37 = vcombine.low %v524_v26, %v528_v27  ;;  %v6413_v39 = vcombine.high %v532_v33, %v536_v35  ;;  %v6190_v26 = vcombine.low %v309_v6, %v313_v7  ;;  %v357_v6 = vld [vmem:[#allocation5 + $0x6d8] sm:$0xff] }
 0x1df   :  { %3322 = vmatpush1.bf16.msra.mxu0 %v6348_v36  ;;  %v6150_v36 = vcombine.low %v269_v24, %v273_v25  ;;  %v572_v24 = vld [vmem:[#allocation5 + $0xd90] sm:$0xff]  ;;  %v361_v7 = vld [vmem:[#allocation5 + $0x6f8] sm:$0xff] }
 0x1e0   :  { %3323 = vmatprep.subr.bf16.mxu0 %v6357_v38  ;;  %v6159_v38 = vcombine.high %v277_v31, %v281_v32  ;;  %v576_v25 = vld [vmem:[#allocation5 + $0xdb0] sm:$0xff] }
 0x1e1   :  { %3406 = vmatpush1.bf16.msra.mxu1 %v6102_v43  ;;  %v544_v43 = vld [vmem:[#allocation5 + $0xcb0] sm:$0xff] }
 0x1e2   :  { %3407 = vmatprep.subr.bf16.mxu1 %v6111_v59  ;;  %v6412_v59 = vcombine.low %v532_v33, %v536_v35  ;;  %v6421_v46 = vcombine.high %v540_v42, %v544_v43  ;;  %v580_v35 = vld [vmem:[#allocation5 + $0xdd0] sm:$0xff] }
 0x1e3   :  { %3324 = vmatpush1.bf16.msra.mxu0 %v6356_v20  ;;  %v6158_v20 = vcombine.low %v277_v31, %v281_v32  ;;  %v329_v31 = vld [vmem:[#allocation5 + $0x5f8] sm:$0xff] }
 0x1e4   :  { %3325 = vmatprep.subr.bf16.mxu0 %v6365_v44  ;;  %v6167_v44 = vcombine.high %v285_v40, %v289_v41 }
 0x1e5   :  { %3408 = vmatpush1.bf16.msra.mxu1 %v6110_v51  ;;  %v548_v51 = vld [vmem:[#allocation5 + $0xcd0] sm:$0xff] }
 0x1e6   :  { %3409 = vmatprep.subr.bf16.mxu1 %v6119_v56  ;;  %v6420_v56 = vcombine.low %v540_v42, %v544_v43  ;;  %v6452_v42 = vcombine.low %v572_v24, %v576_v25 }
 0x1e7   :  { %3326 = vmatpush1.bf16.msra.mxu0 %v6364_v52  ;;  %v552_v52 = vld [vmem:[#allocation5 + $0xcf0] sm:$0xff] }
 0x1e8   :  { %3327 = vmatprep.subr.bf16.mxu0 %v6373_v57  ;;  %v6175_v57 = vcombine.high %v293_v47, %v297_v50  ;;  %v6429_v60 = vcombine.high %v548_v51, %v552_v52 }
 0x1e9   :  { %3410 = vmatpush1.bf16.msra.mxu1 %v6118_v0  ;;  %v556_v0 = vld [vmem:[#allocation5 + $0xd10] sm:$0xff] }
 0x1ea   :  { %3411 = vmatprep.subr.bf16.mxu1 %v6127_v2  ;;  %v6174_v2 = vcombine.low %v293_v47, %v297_v50  ;;  %v6898_v50 = vld [vmem:[#allocation8 + $0x4] ss:$16 sps:$4 sm:$0xff]  }
 0x1eb   :  { %3328 = vmatpush1.bf16.msra.mxu0 %v6372_v1  ;;  %v560_v1 = vld [vmem:[#allocation5 + $0xd30] sm:$0xff] }
 0x1ec   :  { %3329 = vmatprep.subr.bf16.mxu0 %v6381_v3  ;;  %v6428_v3 = vcombine.low %v548_v51, %v552_v52  ;;  %v6437_v5 = vcombine.high %v556_v0, %v560_v1  ;;  %v6436_v13 = vcombine.low %v556_v0, %v560_v1  ;;  %v341_v51 = vld [vmem:[#allocation5 + $0x658] sm:$0xff] }
 0x1ed   :  { %3412 = vmatpush1.bf16.msra.mxu1 %v6126_v8  ;;  %v7799_v8 = vld [vmem:[#allocation7] sm:$0xff]  ;;  %v345_v52 = vld [vmem:[#allocation5 + $0x678] sm:$0xff] }
 0x1ee   :  { %3413 = vmatprep.subr.bf16.mxu1 %v6135_v10  ;;  %v564_v10 = vld [vmem:[#allocation5 + $0xd50] sm:$0xff]  ;;  %v591_v15 = vrot.slane %v7799_v8, %v7797_v4  ;;  %v353_v0 = vld [vmem:[#allocation5 + $0x6b8] sm:$0xff] }
 0x1ef   :  { %3330 = vmatpush1.bf16.msra.mxu0 %v6380_v9  ;;  %v7802_v9 = vsub.s32 1, %v7794_v58 }
 0x1f0   :  { %3331 = vmatprep.subr.bf16.mxu0 %v6389_v11  ;;  %v568_v11 = vld [vmem:[#allocation5 + $0xd70] sm:$0xff] }
 0x1f1   :  { %3414 = vmatpush1.bf16.msra.mxu1 %v6134_v16  ;;  %v6445_v16 = vcombine.high %v564_v10, %v568_v11  ;;  %v6444_v27 = vcombine.low %v564_v10, %v568_v11  ;;  %v6902_v11 = vld [vmem:[#allocation8 + $0x40] ss:$16 sps:$4 sm:$0xff]  }
 0x1f2   :  { %3415 = vmatprep.subr.bf16.mxu1 %v6143_v19  ;;  %v321_v19 = vld [vmem:[#allocation5 + $0x5b8] sm:$0xff] }
 0x1f3   :  { %3332 = vmatpush1.bf16.msra.mxu0 %v6388_v18  ;;  %v317_v18 = vld [vmem:[#allocation5 + $0x598] sm:$0xff] }
 0x1f4   :  { %3333 = vmatprep.subr.bf16.mxu0 %v6397_v21  ;;  %v595_v21 = vrot.slane %v7799_v8, %v7802_v9 }
 0x1f5   :  { %3416 = vmatpush1.bf16.msra.mxu1 %v6142_v54  ;;  %v6199_v54 = vcombine.high %v317_v18, %v321_v19 }
 0x1f6   :  { %3426 = vmatprep.subr.bf16.mxu1 %v6151_v55  ;;  %v6453_v55 = vcombine.high %v572_v24, %v576_v25  ;;  %v2930_v32 = vadd.f32 %v7782_v53, %v595_v21  ;;  %v373_v21 = vld [vmem:[#allocation5 + $0x758] sm:$0xff] }
 0x1f7   :  { %3334 = vmatpush1.bf16.msra.mxu0 %v6396_v28  ;;  %v2928_v28 = vadd.f32 %v7780_v48, %v591_v15  ;;  %v6238_v15 = vcombine.low %v357_v6, %v361_v7  ;;  %v377_v24 = vld [vmem:[#allocation5 + $0x778] sm:$0xff] }
 0x1f8   :  { %3344 = vmatprep.subr.bf16.mxu0 %v6405_v30  ;;  %3418 = vmatmul.mubr.bf16.vlgmr.msra.gmra.mrb[8].mxu1 %v7749_v17  ;;  %v6166_v17 = vcombine.low %v285_v40, %v289_v41  ;;  %v325_v30 = vld [vmem:[#allocation5 + $0x5d8] sm:$0xff] }
 0x1f9   :  { %3427 = vmatpush1.bf16.msra.mxu1 %v6150_v36  ;;  %3458 = vmatprep.mubr.bf16.mxu1 %v7743_v62  ;;  %v6183_v62 = vcombine.high %v301_v61, %v305_v63  ;;  %v584_v36 = vld [vmem:[#allocation5 + $0xdf0] sm:$0xff]  ;;  %v6207_v48 = vcombine.high %v325_v30, %v329_v31  ;;  %v6206_v45 = vcombine.low %v325_v30, %v329_v31  ;;  %v6901_v61 = vld [vmem:[#allocation8 + $0x24] ss:$16 sps:$4 sm:$0xff]   ;;  %v6911_v31 = vld [vmem:[#allocation8 + $0xa0] ss:$16 sps:$4 sm:$0xff]  }
 0x1fa   :  { %3336 = vmatmul.mubr.bf16.vlgmr.msra.gmra.mrb[4].mxu0 %v7767_v34  ;;  %3428 = vmatprep.subr.bf16.mxu1 %v6159_v38  ;;  %v349_v63 = vld [vmem:[#allocation5 + $0x698] sm:$0xff]  ;;  %v6254_v30 = vcombine.low %v373_v21, %v377_v24 }
 0x1fb   :  { %3345 = vmatpush1.bf16.msra.mxu0 %v6404_v37  ;;  %3376 = vmatprep.mubr.bf16.mxu0 %v7583_v49  ;;  %v6230_v10 = vcombine.low %v349_v63, %v353_v0 }
 0x1fc   :  { %3346 = vmatprep.subr.bf16.mxu0 %v6413_v39  ;;  %v6198_v39 = vcombine.low %v317_v18, %v321_v19  ;;  %v6910_v19 = vld [vmem:[#allocation8 + $0x84] ss:$16 sps:$4 sm:$0xff]  }
 0x1fd   :  { %3429 = vmatpush1.bf16.msra.mxu1 %v6158_v20  ;;  %v6461_v20 = vcombine.high %v580_v35, %v584_v36 }
 0x1fe   :  { %3430 = vmatprep.subr.bf16.mxu1 %v6167_v44  ;;  %v337_v44 = vld [vmem:[#allocation5 + $0x638] sm:$0xff] }
 0x1ff   :  { %3347 = vmatpush1.bf16.msra.mxu0 %v6412_v59  ;;  %v333_v59 = vld [vmem:[#allocation5 + $0x618] sm:$0xff] }
 0x200   :  { %3348 = vmatprep.subr.bf16.mxu0 %v6421_v46  ;;  %v6460_v46 = vcombine.low %v580_v35, %v584_v36  ;;  %v6215_v47 = vcombine.high %v333_v59, %v337_v44  ;;  %v389_v35 = vld [vmem:[#allocation5 + $0x7d8] sm:$0xff] }
 0x201   :  { %3431 = vmatpush1.bf16.msra.mxu1 %v6166_v17  ;;  %v6214_v17 = vcombine.low %v333_v59, %v337_v44  ;;  %v393_v36 = vld [vmem:[#allocation5 + $0x7f8] sm:$0xff] }
 0x202   :  { %3432 = vmatprep.subr.bf16.mxu1 %v6175_v57  ;;  %v6896_v57 = vld [vmem:[#allocation8] ss:$16 sps:$4 sm:$0xff]   ;;  %v6922_v44 = vld [vmem:[#allocation8 + $0x104] ss:$16 sps:$4 sm:$0xff]  }
 0x203   :  { %3349 = vmatpush1.bf16.msra.mxu0 %v6420_v56 }
 0x204   :  { %3350 = vmatprep.subr.bf16.mxu0 %v6429_v60  ;;  %v6223_v60 = vcombine.high %v341_v51, %v345_v52 }
 0x205   :  { %3433 = vmatpush1.bf16.msra.mxu1 %v6174_v2  ;;  %v6222_v2 = vcombine.low %v341_v51, %v345_v52  ;;  %v6925_v51 = vld [vmem:[#allocation8 + $0x124] ss:$16 sps:$4 sm:$0xff]  }
 0x206   :  { %3434 = vmatprep.subr.bf16.mxu1 %v6183_v62  ;;  %v6231_v62 = vcombine.high %v349_v63, %v353_v0  ;;  %v413_v52 = vld [vmem:[#allocation5 + $0x898] sm:$0xff] }
 0x207   :  { %3351 = vmatpush1.bf16.msra.mxu0 %v6428_v3  ;;  %v6899_v3 = vld [vmem:[#allocation8 + $0x20] ss:$16 sps:$4 sm:$0xff]  }
 0x208   :  { %3352 = vmatprep.subr.bf16.mxu0 %v6437_v5  ;;  %v6904_v5 = vld [vmem:[#allocation8 + $0x44] ss:$16 sps:$4 sm:$0xff]  }
 0x209   :  { %3435 = vmatpush1.bf16.msra.mxu1 %v6182_v12  ;;  %v6239_v12 = vcombine.high %v357_v6, %v361_v7  ;;  %v421_v63 = vld [vmem:[#allocation5 + $0x8d8] sm:$0xff] }
 0x20a   :  { %3436 = vmatprep.subr.bf16.mxu1 %v6191_v14  ;;  %v369_v14 = vld [vmem:[#allocation5 + $0x738] sm:$0xff] }
 0x20b   :  { %3353 = vmatpush1.bf16.msra.mxu0 %v6436_v13  ;;  %v365_v13 = vld [vmem:[#allocation5 + $0x718] sm:$0xff] }
 0x20c   :  { %3354 = vmatprep.subr.bf16.mxu0 %v6445_v16  ;;  %v6905_v16 = vld [vmem:[#allocation8 + $0x60] ss:$16 sps:$4 sm:$0xff]   ;;  %v6247_v18 = vcombine.high %v365_v13, %v369_v14  ;;  %v6246_v25 = vcombine.low %v365_v13, %v369_v14 }
 0x20d   :  { %v3050_v33 = vpop.f32.mrb[0].mxu0  ;;  %3437 = vmatpush1.bf16.msra.mxu1 %v6190_v26  ;;  %v6908_v26 = vld [vmem:[#allocation8 + $0x80] ss:$16 sps:$4 sm:$0xff]  }
 0x20e   :  { %v7810_v37 = vadd.f32 %v3050_v33, %v2928_v28  ;;  %v3052_v38 = vpop.f32.mrb[1].mxu0  ;;  %3438 = vmatprep.subr.bf16.mxu1 %v6199_v54  ;;  %v6913_v54 = vld [vmem:[#allocation8 + $0xa4] ss:$16 sps:$4 sm:$0xff]   ;;  %v6929_v7 = vld [vmem:[#allocation8 + $0x160] ss:$16 sps:$4 sm:$0xff]  }
 0x20f   :  { %v6789_v40 = vadd.f32 %v3052_v38, %v2930_v32  ;;  %v3054_v41 = vpop.f32.mrb[2].mxu0  ;;  %3355 = vmatpush1.bf16.msra.mxu0 %v6444_v27  ;;  %v6255_v27 = vcombine.high %v373_v21, %v377_v24  ;;  %v381_v28 = vld [vmem:[#allocation5 + $0x798] sm:$0xff] }
 0x210   :  { %v3055_v43 = vpop.f32.mrb[3].mxu0  ;;  %3356 = vmatprep.subr.bf16.mxu0 %v6453_v55  ;;  %v385_v55 = vld [vmem:[#allocation5 + $0x7b8] sm:$0xff]  ;;  %vm3549_vm1 = vcmp.gt.f32.partialorder %v7810_v37, 0.0 }
 0x211   :  { %v3558_v53 = vmul.f32 0.2, %v6789_v40  ;;  %3439 = vmatpush1.bf16.msra.mxu1 %v6198_v39  ;;  %vm3550_vm0 = vcmp.gt.f32.partialorder %v6789_v40, 0.0  ;;  %v6263_v32 = vcombine.high %v381_v28, %v385_v55  ;;  %v6916_v33 = vld [vmem:[#allocation8 + $0xc4] ss:$16 sps:$4 sm:$0xff]   ;;  %v6262_v38 = vcombine.low %v381_v28, %v385_v55 }
 0x212   :  { %3440 = vmatprep.subr.bf16.mxu1 %v6207_v48  ;;  %v6914_v39 = vld [vmem:[#allocation8 + $0xc0] ss:$16 sps:$4 sm:$0xff]   ;;  %v6919_v41 = vld [vmem:[#allocation8 + $0xe4] ss:$16 sps:$4 sm:$0xff]   ;;  %v6270_v43 = vcombine.low %v389_v35, %v393_v36 }
 0x213   :  { %3357 = vmatpush1.bf16.msra.mxu0 %v6452_v42  ;;  %v3566_v56 = vsel %vm3550_vm0, %v6789_v40, %v3558_v53  ;;  %v6271_v40 = vcombine.high %v389_v35, %v393_v36  ;;  %v397_v42 = vld [vmem:[#allocation5 + $0x818] sm:$0xff]  ;;  %v3557_v35 = vmul.f32 0.2, %v7810_v37 }
 0x214   :  { %3358 = vmatprep.subr.bf16.mxu0 %v6461_v20  ;;  %v7812_v1 = vpack.c.bf16 %v3566_v56, %v3566_v56  ;;  %v401_v48 = vld [vmem:[#allocation5 + $0x838] sm:$0xff] }
 0x215   :  { %3441 = vmatpush1.bf16.msra.mxu1 %v6206_v45  ;;  %v6917_v20 = vld [vmem:[#allocation8 + $0xe0] ss:$16 sps:$4 sm:$0xff]   ;;  %v6279_v59 = vcombine.high %v397_v42, %v401_v48 }
 0x216   :  { %3442 = vmatprep.subr.bf16.mxu1 %v6215_v47  ;;  %v405_v53 = vld [vmem:[#allocation5 + $0x858] sm:$0xff] }
 0x217   :  { %3359 = vmatpush1.bf16.msra.mxu0 %v6460_v46  ;;  %v409_v45 = vld [vmem:[#allocation5 + $0x878] sm:$0xff]  ;;  %v6278_v46 = vcombine.low %v397_v42, %v401_v48  ;;  %v3565_v48 = vsel %vm3549_vm1, %v7810_v37, %v3557_v35 }
 0x218   :  { %5139 = vmatprep.subr.bf16.mxu0 %v6898_v50  ;;  %v6920_v47 = vld [vmem:[#allocation8 + $0x100] ss:$16 sps:$4 sm:$0xff]   ;;  %v6287_v50 = vcombine.high %v405_v53, %v409_v45  ;;  %v6286_v56 = vcombine.low %v405_v53, %v409_v45  ;;  %v6949_v53 = vld [vmem:[#allocation8 + $0x224] ss:$16 sps:$4 sm:$0xff]  }
 0x219   :  { %3443 = vmatpush1.bf16.msra.mxu1 %v6214_v17  ;;  %v417_v17 = vld [vmem:[#allocation5 + $0x8b8] sm:$0xff] }
 0x21a   :  { %3377 = vmatmul.mubr.bf16.vlgmr.msra.gmra.mrb[4].mxu0 %v7784_v23  ;;  %3444 = vmatprep.subr.bf16.mxu1 %v6223_v60  ;;  %v6907_v23 = vld [vmem:[#allocation8 + $0x64] ss:$16 sps:$4 sm:$0xff]   ;;  %v6295_v60 = vcombine.high %v413_v52, %v417_v17  ;;  %v6932_v14 = vld [vmem:[#allocation8 + $0x180] ss:$16 sps:$4 sm:$0xff]  }
 0x21b   :  { %5140 = vmatpush1.bf16.msra.mxu0 %v6896_v57  ;;  %5171 = vmatprep.mubr.bf16.mxu0 %v7812_v1  ;;  %v6923_v57 = vld [vmem:[#allocation8 + $0x120] ss:$16 sps:$4 sm:$0xff]  }
 0x21c   :  { %5141 = vmatprep.subr.bf16.mxu0 %v6901_v61  ;;  %v6928_v61 = vld [vmem:[#allocation8 + $0x144] ss:$16 sps:$4 sm:$0xff]   ;;  %v6935_v24 = vld [vmem:[#allocation8 + $0x1a0] ss:$16 sps:$4 sm:$0xff]  }
 0x21d   :  { %3445 = vmatpush1.bf16.msra.mxu1 %v6222_v2  ;;  %v425_v0 = vld [vmem:[#allocation5 + $0x8f8] sm:$0xff]  ;;  %v6294_v2 = vcombine.low %v413_v52, %v417_v17 }
 0x21e   :  { %3446 = vmatprep.subr.bf16.mxu1 %v6231_v62  ;;  %v6303_v62 = vcombine.high %v421_v63, %v425_v0  ;;  %v433_v6 = vld [vmem:[#allocation5 + $0x938] sm:$0xff] }
 0x21f   :  { %5142 = vmatpush1.bf16.msra.mxu0 %v6899_v3  ;;  %v6926_v3 = vld [vmem:[#allocation8 + $0x140] ss:$16 sps:$4 sm:$0xff]  }
 0x220   :  { %5143 = vmatprep.subr.bf16.mxu0 %v6904_v5  ;;  %v429_v5 = vld [vmem:[#allocation5 + $0x918] sm:$0xff] }
 0x221   :  { %3447 = vmatpush1.bf16.msra.mxu1 %v6230_v10  ;;  %v6311_v10 = vcombine.high %v429_v5, %v433_v6  ;;  %v6310_v13 = vcombine.low %v429_v5, %v433_v6  ;;  %v6938_v55 = vld [vmem:[#allocation8 + $0x1c0] ss:$16 sps:$4 sm:$0xff]  }
 0x222   :  { %3448 = vmatprep.subr.bf16.mxu1 %v6239_v12  ;;  %v437_v12 = vld [vmem:[#allocation5 + $0x958] sm:$0xff] }
 0x223   :  { %5144 = vmatpush1.bf16.msra.mxu0 %v6902_v11  ;;  %v6934_v11 = vld [vmem:[#allocation8 + $0x184] ss:$16 sps:$4 sm:$0xff]  }
 0x224   :  { %5145 = vmatprep.subr.bf16.mxu0 %v6907_v23  ;;  %v441_v23 = vld [vmem:[#allocation5 + $0x978] sm:$0xff] }
 0x225   :  { %3449 = vmatpush1.bf16.msra.mxu1 %v6238_v15  ;;  %v6319_v15 = vcombine.high %v437_v12, %v441_v23  ;;  %v6318_v21 = vcombine.low %v437_v12, %v441_v23  ;;  %v473_v42 = vld [vmem:[#allocation5 + $0xa78] sm:$0xff] }
 0x226   :  { %3450 = vmatprep.subr.bf16.mxu1 %v6247_v18  ;;  %v445_v18 = vld [vmem:[#allocation5 + $0x998] sm:$0xff] }
 0x227   :  { %5146 = vmatpush1.bf16.msra.mxu0 %v6905_v16  ;;  %v6937_v16 = vld [vmem:[#allocation8 + $0x1a4] ss:$16 sps:$4 sm:$0xff]  }
 0x228   :  { %5147 = vmatprep.subr.bf16.mxu0 %v6910_v19  ;;  %v449_v19 = vld [vmem:[#allocation5 + $0x9b8] sm:$0xff] }
 0x229   :  { %3451 = vmatpush1.bf16.msra.mxu1 %v6246_v25  ;;  %v6327_v25 = vcombine.high %v445_v18, %v449_v19  ;;  %v6326_v28 = vcombine.low %v445_v18, %v449_v19  ;;  %v477_v45 = vld [vmem:[#allocation5 + $0xa98] sm:$0xff] }
 0x22a   :  { %3452 = vmatprep.subr.bf16.mxu1 %v6255_v27  ;;  %v453_v27 = vld [vmem:[#allocation5 + $0x9d8] sm:$0xff] }
 0x22b   :  { %5148 = vmatpush1.bf16.msra.mxu0 %v6908_v26  ;;  %v6940_v26 = vld [vmem:[#allocation8 + $0x1c4] ss:$16 sps:$4 sm:$0xff]  }
 0x22c   :  { %5149 = vmatprep.subr.bf16.mxu0 %v6913_v54  ;;  %v457_v54 = vld [vmem:[#allocation5 + $0x9f8] sm:$0xff] }
 0x22d   :  { %3453 = vmatpush1.bf16.msra.mxu1 %v6254_v30  ;;  %v6335_v30 = vcombine.high %v453_v27, %v457_v54  ;;  %v6334_v36 = vcombine.low %v453_v27, %v457_v54  ;;  %v485_v52 = vld [vmem:[#allocation5 + $0xad8] sm:$0xff] }
 0x22e   :  { %3454 = vmatprep.subr.bf16.mxu1 %v6263_v32  ;;  %v461_v32 = vld [vmem:[#allocation5 + $0xa18] sm:$0xff] }
 0x22f   :  { %5150 = vmatpush1.bf16.msra.mxu0 %v6911_v31  ;;  %v6943_v31 = vld [vmem:[#allocation8 + $0x1e4] ss:$16 sps:$4 sm:$0xff]  }
 0x230   :  { %5151 = vmatprep.subr.bf16.mxu0 %v6916_v33  ;;  %v465_v33 = vld [vmem:[#allocation5 + $0xa38] sm:$0xff] }
 0x231   :  { %3455 = vmatpush1.bf16.msra.mxu1 %v6262_v38  ;;  %v6941_v38 = vld [vmem:[#allocation8 + $0x1e0] ss:$16 sps:$4 sm:$0xff]  }
 0x232   :  { %3456 = vmatprep.subr.bf16.mxu1 %v6271_v40  ;;  %v6946_v40 = vld [vmem:[#allocation8 + $0x204] ss:$16 sps:$4 sm:$0xff]  }
 0x233   :  { %5152 = vmatpush1.bf16.msra.mxu0 %v6914_v39  ;;  %v6343_v39 = vcombine.high %v461_v32, %v465_v33  ;;  %v489_v17 = vld [vmem:[#allocation5 + $0xaf8] sm:$0xff] }
 0x234   :  { %5153 = vmatprep.subr.bf16.mxu0 %v6919_v41  ;;  %v469_v41 = vld [vmem:[#allocation5 + $0xa58] sm:$0xff] }
 0x235   :  { %3457 = vmatpush1.bf16.msra.mxu1 %v6270_v43  ;;  %v6342_v43 = vcombine.low %v461_v32, %v465_v33  ;;  %v501_v5 = vld [vmem:[#allocation5 + $0xb58] sm:$0xff] }
 0x236   :  { %3467 = vmatprep.subr.bf16.mxu1 %v6279_v59  ;;  %v6351_v59 = vcombine.high %v469_v41, %v473_v42  ;;  %v505_v6 = vld [vmem:[#allocation5 + $0xb78] sm:$0xff] }
 0x237   :  { %5154 = vmatpush1.bf16.msra.mxu0 %v6917_v20  ;;  %v6944_v20 = vld [vmem:[#allocation8 + $0x200] ss:$16 sps:$4 sm:$0xff]  }
 0x238   :  { %5155 = vmatprep.subr.bf16.mxu0 %v6922_v44  ;;  %3459 = vmatmul.mubr.bf16.vlgmr.msra.gmra.mrb[8].mxu1 %v7755_v22  ;;  %v6931_v22 = vld [vmem:[#allocation8 + $0x164] ss:$16 sps:$4 sm:$0xff]   ;;  %v7821_v44 = vpack.c.bf16 %v3565_v48, %v3565_v48  ;;  %v6971_v48 = vld [vmem:[#allocation8 + $0x320] ss:$16 sps:$4 sm:$0xff]  }
 0x239   :  { %3468 = vmatpush1.bf16.msra.mxu1 %v6278_v46  ;;  %3499 = vmatprep.mubr.bf16.mxu1 %v7759_v29  ;;  %v6302_v29 = vcombine.low %v421_v63, %v425_v0  ;;  %v481_v46 = vld [vmem:[#allocation5 + $0xab8] sm:$0xff] }
 0x23a   :  { %3469 = vmatprep.subr.bf16.mxu1 %v6287_v50  ;;  %v6947_v50 = vld [vmem:[#allocation8 + $0x220] ss:$16 sps:$4 sm:$0xff]   ;;  %v6359_v37 = vcombine.high %v477_v45, %v481_v46 }
 0x23b   :  { %5156 = vmatpush1.bf16.msra.mxu0 %v6920_v47  ;;  %v6350_v47 = vcombine.low %v469_v41, %v473_v42  ;;  %v493_v63 = vld [vmem:[#allocation5 + $0xb18] sm:$0xff] }
 0x23c   :  { %5157 = vmatprep.subr.bf16.mxu0 %v6925_v51  ;;  %v6952_v51 = vld [vmem:[#allocation8 + $0x244] ss:$16 sps:$4 sm:$0xff]  }
 0x23d   :  { %3470 = vmatpush1.bf16.msra.mxu1 %v6286_v56  ;;  %v6358_v56 = vcombine.low %v477_v45, %v481_v46  ;;  %v497_v0 = vld [vmem:[#allocation5 + $0xb38] sm:$0xff] }
 0x23e   :  { %3471 = vmatprep.subr.bf16.mxu1 %v6295_v60  ;;  %v6367_v60 = vcombine.high %v485_v52, %v489_v17  ;;  %v509_v12 = vld [vmem:[#allocation5 + $0xb98] sm:$0xff] }
 0x23f   :  { %5158 = vmatpush1.bf16.msra.mxu0 %v6923_v57  ;;  %v6950_v57 = vld [vmem:[#allocation8 + $0x240] ss:$16 sps:$4 sm:$0xff]  }
 0x240   :  { %5159 = vmatprep.subr.bf16.mxu0 %v6928_v61  ;;  %v6955_v61 = vld [vmem:[#allocation8 + $0x264] ss:$16 sps:$4 sm:$0xff]   ;;  %v6974_v46 = vld [vmem:[#allocation8 + $0x340] ss:$16 sps:$4 sm:$0xff]  }
 0x241   :  { %3472 = vmatpush1.bf16.msra.mxu1 %v6294_v2  ;;  %v6366_v2 = vcombine.low %v485_v52, %v489_v17  ;;  %v513_v23 = vld [vmem:[#allocation5 + $0xbb8] sm:$0xff] }
 0x242   :  { %3473 = vmatprep.subr.bf16.mxu1 %v6303_v62  ;;  %v6375_v62 = vcombine.high %v493_v63, %v497_v0  ;;  %v517_v18 = vld [vmem:[#allocation5 + $0xbd8] sm:$0xff] }
 0x243   :  { %5160 = vmatpush1.bf16.msra.mxu0 %v6926_v3  ;;  %v6953_v3 = vld [vmem:[#allocation8 + $0x260] ss:$16 sps:$4 sm:$0xff]   ;;  %v6982_v17 = vld [vmem:[#allocation8 + $0x384] ss:$16 sps:$4 sm:$0xff]  }
 0x244   :  { %5161 = vmatprep.subr.bf16.mxu0 %v6931_v22  ;;  %v6958_v22 = vld [vmem:[#allocation8 + $0x284] ss:$16 sps:$4 sm:$0xff]  }
 0x245   :  { %3474 = vmatpush1.bf16.msra.mxu1 %v6302_v29  ;;  %v6374_v29 = vcombine.low %v493_v63, %v497_v0  ;;  %v521_v19 = vld [vmem:[#allocation5 + $0xbf8] sm:$0xff]  ;;  %v602_v63 = vsub.s32 3, %v7794_v58 }
 0x246   :  { %3475 = vmatprep.subr.bf16.mxu1 %v6311_v10  ;;  %v6383_v10 = vcombine.high %v501_v5, %v505_v6  ;;  %v525_v27 = vld [vmem:[#allocation5 + $0xc18] sm:$0xff] }
 0x247   :  { %5162 = vmatpush1.bf16.msra.mxu0 %v6929_v7  ;;  %v6956_v7 = vld [vmem:[#allocation8 + $0x280] ss:$16 sps:$4 sm:$0xff]  }
 0x248   :  { %5163 = vmatprep.subr.bf16.mxu0 %v6934_v11  ;;  %v6961_v11 = vld [vmem:[#allocation8 + $0x2a4] ss:$16 sps:$4 sm:$0xff]   ;;  %v6980_v0 = vld [vmem:[#allocation8 + $0x380] ss:$16 sps:$4 sm:$0xff]  }
 0x249   :  { %3476 = vmatpush1.bf16.msra.mxu1 %v6310_v13  ;;  %v6382_v13 = vcombine.low %v501_v5, %v505_v6  ;;  %v529_v54 = vld [vmem:[#allocation5 + $0xc38] sm:$0xff]  ;;  %v603_v6 = vrot.slane %v7799_v8, %v602_v63 }
 0x24a   :  { %3477 = vmatprep.subr.bf16.mxu1 %v6319_v15  ;;  %v6391_v15 = vcombine.high %v509_v12, %v513_v23  ;;  %v533_v32 = vld [vmem:[#allocation5 + $0xc58] sm:$0xff]  ;;  %v6406_v35 = vcombine.low %v525_v27, %v529_v54 }
 0x24b   :  { %5164 = vmatpush1.bf16.msra.mxu0 %v6932_v14  ;;  %v6959_v14 = vld [vmem:[#allocation8 + $0x2a0] ss:$16 sps:$4 sm:$0xff]  }
 0x24c   :  { %5165 = vmatprep.subr.bf16.mxu0 %v6937_v16  ;;  %v6964_v16 = vld [vmem:[#allocation8 + $0x2c4] ss:$16 sps:$4 sm:$0xff]  }
 0x24d   :  { %3478 = vmatpush1.bf16.msra.mxu1 %v6318_v21  ;;  %v6390_v21 = vcombine.low %v509_v12, %v513_v23  ;;  %v537_v33 = vld [vmem:[#allocation5 + $0xc78] sm:$0xff] }
 0x24e   :  { %3479 = vmatprep.subr.bf16.mxu1 %v6327_v25  ;;  %v6399_v25 = vcombine.high %v517_v18, %v521_v19  ;;  %v545_v41 = vld [vmem:[#allocation5 + $0xcb8] sm:$0xff]  ;;  %v6414_v42 = vcombine.low %v533_v32, %v537_v33 }
 0x24f   :  { %5166 = vmatpush1.bf16.msra.mxu0 %v6935_v24  ;;  %v6962_v24 = vld [vmem:[#allocation8 + $0x2c0] ss:$16 sps:$4 sm:$0xff]   ;;  %v6988_v12 = vld [vmem:[#allocation8 + $0x3c4] ss:$16 sps:$4 sm:$0xff]  }
 0x250   :  { %5167 = vmatprep.subr.bf16.mxu0 %v6940_v26  ;;  %v6967_v26 = vld [vmem:[#allocation8 + $0x2e4] ss:$16 sps:$4 sm:$0xff]  }
 0x251   :  { %3480 = vmatpush1.bf16.msra.mxu1 %v6326_v28  ;;  %v6398_v28 = vcombine.low %v517_v18, %v521_v19  ;;  %v581_v23 = vld [vmem:[#allocation5 + $0xdd8] sm:$0xff] }
 0x252   :  { %3481 = vmatprep.subr.bf16.mxu1 %v6335_v30  ;;  %v6407_v30 = vcombine.high %v525_v27, %v529_v54 }
 0x253   :  { %5168 = vmatpush1.bf16.msra.mxu0 %v6938_v55  ;;  %v6965_v55 = vld [vmem:[#allocation8 + $0x2e0] ss:$16 sps:$4 sm:$0xff]  }
 0x254   :  { %5169 = vmatprep.subr.bf16.mxu0 %v6943_v31  ;;  %v6970_v31 = vld [vmem:[#allocation8 + $0x304] ss:$16 sps:$4 sm:$0xff]  }
 0x255   :  { %3482 = vmatpush1.bf16.msra.mxu1 %v6334_v36  ;;  %v6968_v36 = vld [vmem:[#allocation8 + $0x300] ss:$16 sps:$4 sm:$0xff]  }
 0x256   :  { %3483 = vmatprep.subr.bf16.mxu1 %v6343_v39  ;;  %v6973_v39 = vld [vmem:[#allocation8 + $0x324] ss:$16 sps:$4 sm:$0xff]  }
 0x257   :  { %5170 = vmatpush1.bf16.msra.mxu0 %v6941_v38  ;;  %v6415_v38 = vcombine.high %v533_v32, %v537_v33  ;;  %v7018_v32 = vld [vmem:[#allocation8 + $0x404] ss:$16 sps:$4 sm:$0xff]  }
 0x258   :  { %5180 = vmatprep.subr.bf16.mxu0 %v6946_v40  ;;  %v541_v40 = vld [vmem:[#allocation5 + $0xc98] sm:$0xff] }
 0x259   :  { %3484 = vmatpush1.bf16.msra.mxu1 %v6342_v43  ;;  %v6423_v43 = vcombine.high %v541_v40, %v545_v41  ;;  %v6422_v45 = vcombine.low %v541_v40, %v545_v41  ;;  %v7381_v40 = vld [vmem:[#allocation3 + $0x18] ss:$0 sps:$4 sm:$0xff]  }
 0x25a   :  { %5172 = vmatmul.mubr.bf16.vlgmr.msra.gmra.mrb[8].mxu0 %v7821_v44  ;;  %3485 = vmatprep.subr.bf16.mxu1 %v6351_v59  ;;  %v549_v59 = vld [vmem:[#allocation5 + $0xcd8] sm:$0xff] }
 0x25b   :  { %5181 = vmatpush1.bf16.msra.mxu0 %v6944_v20  ;;  %v6976_v20 = vld [vmem:[#allocation8 + $0x344] ss:$16 sps:$4 sm:$0xff]  }
 0x25c   :  { %5182 = vmatprep.subr.bf16.mxu0 %v6949_v53  ;;  %v553_v53 = vld [vmem:[#allocation5 + $0xcf8] sm:$0xff] }
 0x25d   :  { %3486 = vmatpush1.bf16.msra.mxu1 %v6350_v47  ;;  %v6431_v47 = vcombine.high %v549_v59, %v553_v53  ;;  %v7024_v41 = vld [vmem:[#allocation8 + $0x424] ss:$16 sps:$4 sm:$0xff]  }
 0x25e   :  { %3487 = vmatprep.subr.bf16.mxu1 %v6359_v37  ;;  %v561_v37 = vld [vmem:[#allocation5 + $0xd38] sm:$0xff] }
 0x25f   :  { %5183 = vmatpush1.bf16.msra.mxu0 %v6947_v50  ;;  %v557_v50 = vld [vmem:[#allocation5 + $0xd18] sm:$0xff] }
 0x260   :  { %5184 = vmatprep.subr.bf16.mxu0 %v6952_v51  ;;  %v6977_v51 = vld [vmem:[#allocation8 + $0x360] ss:$16 sps:$4 sm:$0xff]   ;;  %v6439_v52 = vcombine.high %v557_v50, %v561_v37 }
 0x261   :  { %3488 = vmatpush1.bf16.msra.mxu1 %v6358_v56  ;;  %v565_v56 = vld [vmem:[#allocation5 + $0xd58] sm:$0xff] }
 0x262   :  { %3489 = vmatprep.subr.bf16.mxu1 %v6367_v60  ;;  %v598_v60 = vsub.s32 2, %v7794_v58 }
 0x263   :  { %5185 = vmatpush1.bf16.msra.mxu0 %v6950_v57  ;;  %v569_v57 = vld [vmem:[#allocation5 + $0xd78] sm:$0xff] }
 0x264   :  { %5186 = vmatprep.subr.bf16.mxu0 %v6955_v61  ;;  %v6438_v61 = vcombine.low %v557_v50, %v561_v37  ;;  %v599_v5 = vrot.slane %v7799_v8, %v598_v60  ;;  %v6986_v8 = vld [vmem:[#allocation8 + $0x3c0] ss:$16 sps:$4 sm:$0xff]   ;;  %v7042_v50 = vld [vmem:[#allocation8 + $0x484] ss:$16 sps:$4 sm:$0xff]   ;;  %v7004_v37 = vld [vmem:[#allocation8 + $0x88] ss:$16 sps:$4 sm:$0xff]  }
 0x265   :  { %3490 = vmatpush1.bf16.msra.mxu1 %v6366_v2  ;;  %v6447_v2 = vcombine.high %v565_v56, %v569_v57 }
 0x266   :  { %3491 = vmatprep.subr.bf16.mxu1 %v6375_v62  ;;  %v573_v62 = vld [vmem:[#allocation5 + $0xd98] sm:$0xff] }
 0x267   :  { %5187 = vmatpush1.bf16.msra.mxu0 %v6953_v3  ;;  %v6985_v3 = vld [vmem:[#allocation8 + $0x3a4] ss:$16 sps:$4 sm:$0xff]  }
 0x268   :  { %5188 = vmatprep.subr.bf16.mxu0 %v6958_v22  ;;  %v577_v22 = vld [vmem:[#allocation5 + $0xdb8] sm:$0xff] }
 0x269   :  { %3492 = vmatpush1.bf16.msra.mxu1 %v6374_v29  ;;  %v6446_v29 = vcombine.low %v565_v56, %v569_v57  ;;  %v6454_v19 = vcombine.low %v573_v62, %v577_v22  ;;  %v7012_v56 = vld [vmem:[#allocation8 + $0xcc] ss:$16 sps:$4 sm:$0xff]   ;;  %v7046_v57 = vld [vmem:[#allocation8 + $0x4a0] ss:$16 sps:$4 sm:$0xff]  }
 0x26a   :  { %3493 = vmatprep.subr.bf16.mxu1 %v6383_v10  ;;  %v6455_v10 = vcombine.high %v573_v62, %v577_v22  ;;  %v7060_v62 = vld [vmem:[#allocation8 + $0x4e4] ss:$16 sps:$4 sm:$0xff]   ;;  %v7013_v22 = vld [vmem:[#allocation8 + $0xe8] ss:$16 sps:$4 sm:$0xff]  }
 0x26b   :  { %5189 = vmatpush1.bf16.msra.mxu0 %v6956_v7  ;;  %v6983_v7 = vld [vmem:[#allocation8 + $0x3a0] ss:$16 sps:$4 sm:$0xff]  }
 0x26c   :  { %5190 = vmatprep.subr.bf16.mxu0 %v6961_v11 }
 0x26d   :  { %3494 = vmatpush1.bf16.msra.mxu1 %v6382_v13  ;;  %v585_v13 = vld [vmem:[#allocation5 + $0xdf8] sm:$0xff] }
 0x26e   :  { %3495 = vmatprep.subr.bf16.mxu1 %v6391_v15  ;;  %v6462_v54 = vcombine.low %v581_v23, %v585_v13 }
 0x26f   :  { %5191 = vmatpush1.bf16.msra.mxu0 %v6959_v14 }
 0x270   :  { %5192 = vmatprep.subr.bf16.mxu0 %v6964_v16 }
 0x271   :  { %3496 = vmatpush1.bf16.msra.mxu1 %v6390_v21 }
 0x272   :  { %3497 = vmatprep.subr.bf16.mxu1 %v6399_v25 }
 0x273   :  { %5193 = vmatpush1.bf16.msra.mxu0 %v6962_v24  ;;  %v6463_v24 = vcombine.high %v581_v23, %v585_v13  ;;  %v7025_v23 = vld [vmem:[#allocation8 + $0x128] ss:$16 sps:$4 sm:$0xff]   ;;  %v7033_v13 = vld [vmem:[#allocation8 + $0x14c] ss:$16 sps:$4 sm:$0xff]  }
 0x274   :  { %5194 = vmatprep.subr.bf16.mxu0 %v6967_v26  ;;  %v6991_v26 = vld [vmem:[#allocation8 + $0x3e4] ss:$16 sps:$4 sm:$0xff]  }
 0x275   :  { %3498 = vmatpush1.bf16.msra.mxu1 %v6398_v28 }
 0x276   :  { %3508 = vmatprep.subr.bf16.mxu1 %v6407_v30 }
 0x277   :  { %5195 = vmatpush1.bf16.msra.mxu0 %v6965_v55  ;;  %v6989_v55 = vld [vmem:[#allocation8 + $0x3e0] ss:$16 sps:$4 sm:$0xff]  }
 0x278   :  { %5196 = vmatprep.subr.bf16.mxu0 %v6970_v31  ;;  %3500 = vmatmul.mubr.bf16.vlgmr.msra.gmra.mrb[8].mxu1 %v7767_v34  ;;  %v6979_v34 = vld [vmem:[#allocation8 + $0x364] ss:$16 sps:$4 sm:$0xff]   ;;  %v6994_v31 = vld [vmem:[#allocation8 + $0xc] ss:$16 sps:$4 sm:$0xff]  }
 0x279   :  { %3509 = vmatpush1.bf16.msra.mxu1 %v6406_v35  ;;  %3540 = vmatprep.mubr.bf16.mxu1 %v7583_v49  ;;  %v6430_v49 = vcombine.low %v549_v59, %v553_v53  ;;  %v6992_v35 = vld [vmem:[#allocation8 + $0x8] ss:$16 sps:$4 sm:$0xff]   ;;  %v7003_v53 = vld [vmem:[#allocation8 + $0x6c] ss:$16 sps:$4 sm:$0xff]  }
 0x27a   :  { %3510 = vmatprep.subr.bf16.mxu1 %v6415_v38  ;;  %v6998_v59 = vld [vmem:[#allocation8 + $0x48] ss:$16 sps:$4 sm:$0xff]  }
 0x27b   :  { %5197 = vmatpush1.bf16.msra.mxu0 %v6968_v36  ;;  %v6997_v36 = vld [vmem:[#allocation8 + $0x2c] ss:$16 sps:$4 sm:$0xff]  }
 0x27c   :  { %5198 = vmatprep.subr.bf16.mxu0 %v6973_v39  ;;  %v7016_v39 = vld [vmem:[#allocation8 + $0x400] ss:$16 sps:$4 sm:$0xff]  }
 0x27d   :  { %3511 = vmatpush1.bf16.msra.mxu1 %v6414_v42  ;;  %v6995_v42 = vld [vmem:[#allocation8 + $0x28] ss:$16 sps:$4 sm:$0xff]  }
 0x27e   :  { %3512 = vmatprep.subr.bf16.mxu1 %v6423_v43  ;;  %v7022_v43 = vld [vmem:[#allocation8 + $0x420] ss:$16 sps:$4 sm:$0xff]  }
 0x27f   :  { %5199 = vmatpush1.bf16.msra.mxu0 %v6971_v48  ;;  %v7000_v48 = vld [vmem:[#allocation8 + $0x4c] ss:$16 sps:$4 sm:$0xff]  }
 0x280   :  { %5200 = vmatprep.subr.bf16.mxu0 %v6976_v20  ;;  %v7030_v20 = vld [vmem:[#allocation8 + $0x444] ss:$16 sps:$4 sm:$0xff]  }
 0x281   :  { %3513 = vmatpush1.bf16.msra.mxu1 %v6422_v45  ;;  %v7028_v45 = vld [vmem:[#allocation8 + $0x440] ss:$16 sps:$4 sm:$0xff]  }
 0x282   :  { %3514 = vmatprep.subr.bf16.mxu1 %v6431_v47  ;;  %v7001_v47 = vld [vmem:[#allocation8 + $0x68] ss:$16 sps:$4 sm:$0xff]  }
 0x283   :  { %5201 = vmatpush1.bf16.msra.mxu0 %v6974_v46  ;;  %v7036_v46 = vld [vmem:[#allocation8 + $0x464] ss:$16 sps:$4 sm:$0xff]  }
 0x284   :  { %5202 = vmatprep.subr.bf16.mxu0 %v6979_v34  ;;  %v7006_v34 = vld [vmem:[#allocation8 + $0x8c] ss:$16 sps:$4 sm:$0xff]  }
 0x285   :  { %3515 = vmatpush1.bf16.msra.mxu1 %v6430_v49  ;;  %v7009_v49 = vld [vmem:[#allocation8 + $0xac] ss:$16 sps:$4 sm:$0xff]  }
 0x286   :  { %3516 = vmatprep.subr.bf16.mxu1 %v6439_v52  ;;  %v7048_v52 = vld [vmem:[#allocation8 + $0x4a4] ss:$16 sps:$4 sm:$0xff]  }
 0x287   :  { %5203 = vmatpush1.bf16.msra.mxu0 %v6977_v51  ;;  %v7040_v51 = vld [vmem:[#allocation8 + $0x480] ss:$16 sps:$4 sm:$0xff]  }
 0x288   :  { %5204 = vmatprep.subr.bf16.mxu0 %v6982_v17  ;;  %v7007_v17 = vld [vmem:[#allocation8 + $0xa8] ss:$16 sps:$4 sm:$0xff]  }
 0x289   :  { %3517 = vmatpush1.bf16.msra.mxu1 %v6438_v61  ;;  %v7054_v61 = vld [vmem:[#allocation8 + $0x4c4] ss:$16 sps:$4 sm:$0xff]  }
 0x28a   :  { %3518 = vmatprep.subr.bf16.mxu1 %v6447_v2  ;;  %v7015_v2 = vld [vmem:[#allocation8 + $0xec] ss:$16 sps:$4 sm:$0xff]  }
 0x28b   :  { %5205 = vmatpush1.bf16.msra.mxu0 %v6980_v0  ;;  %v3214_v11 = vpop.f32.mrb[4].mxu1  ;;  %v7010_v0 = vld [vmem:[#allocation8 + $0xc8] ss:$16 sps:$4 sm:$0xff]  }
 0x28c   :  { %5206 = vmatprep.subr.bf16.mxu0 %v6985_v3  ;;  %v6790_v14 = vadd.f32 %v3214_v11, %v599_v5  ;;  %v3216_v15 = vpop.f32.mrb[5].mxu1  ;;  %v7052_v3 = vld [vmem:[#allocation8 + $0x4c0] ss:$16 sps:$4 sm:$0xff]   ;;  %v7021_v5 = vld [vmem:[#allocation8 + $0x10c] ss:$16 sps:$4 sm:$0xff]  }
 0x28d   :  { %v6791_v16 = vadd.f32 %v3216_v15, %v603_v6  ;;  %v3218_v18 = vpop.f32.mrb[6].mxu1  ;;  %3519 = vmatpush1.bf16.msra.mxu1 %v6446_v29  ;;  %v7058_v6 = vld [vmem:[#allocation8 + $0x4e0] ss:$16 sps:$4 sm:$0xff]   ;;  %v7066_v29 = vld [vmem:[#allocation8 + $0x504] ss:$16 sps:$4 sm:$0xff]  }
 0x28e   :  { %v3219_v21 = vpop.f32.mrb[7].mxu1  ;;  %3520 = vmatprep.subr.bf16.mxu1 %v6455_v10  ;;  %v3559_v27 = vmul.f32 0.2, %v6790_v14  ;;  %vm3551_vm3 = vcmp.gt.f32.partialorder %v6790_v14, 0.0  ;;  %v7027_v10 = vld [vmem:[#allocation8 + $0x12c] ss:$16 sps:$4 sm:$0xff]  }
 0x28f   :  { %5207 = vmatpush1.bf16.msra.mxu0 %v6983_v7  ;;  %vm3552_vm2 = vcmp.gt.f32.partialorder %v6791_v16, 0.0  ;;  %v3560_v25 = vmul.f32 0.2, %v6791_v16  ;;  %v7019_v7 = vld [vmem:[#allocation8 + $0x108] ss:$16 sps:$4 sm:$0xff]  }
 0x290   :  { %5208 = vmatprep.subr.bf16.mxu0 %v6988_v12  ;;  %v3567_v33 = vsel %vm3551_vm3, %v6790_v14, %v3559_v27  ;;  %v7064_v11 = vld [vmem:[#allocation8 + $0x500] ss:$16 sps:$4 sm:$0xff]   ;;  %v7072_v12 = vld [vmem:[#allocation8 + $0x524] ss:$16 sps:$4 sm:$0xff]   ;;  %v7039_v18 = vld [vmem:[#allocation8 + $0x16c] ss:$16 sps:$4 sm:$0xff]  }
 0x291   :  { %3521 = vmatpush1.bf16.msra.mxu1 %v6454_v19  ;;  %v3568_v28 = vsel %vm3552_vm2, %v6791_v16, %v3560_v25  ;;  %v7837_v38 = vpack.c.bf16 %v3567_v33, %v3567_v33  ;;  %v7070_v14 = vld [vmem:[#allocation8 + $0x520] ss:$16 sps:$4 sm:$0xff]   ;;  %v7078_v15 = vld [vmem:[#allocation8 + $0x544] ss:$16 sps:$4 sm:$0xff]   ;;  %v7031_v16 = vld [vmem:[#allocation8 + $0x148] ss:$16 sps:$4 sm:$0xff]  }
 0x292   :  { %3522 = vmatprep.subr.bf16.mxu1 %v6463_v24  ;;  %v7834_v30 = vpack.c.bf16 %v3568_v28, %v3568_v28  ;;  %v7076_v19 = vld [vmem:[#allocation8 + $0x540] ss:$16 sps:$4 sm:$0xff]   ;;  %v7084_v21 = vld [vmem:[#allocation8 + $0x564] ss:$16 sps:$4 sm:$0xff]   ;;  %v7045_v24 = vld [vmem:[#allocation8 + $0x18c] ss:$16 sps:$4 sm:$0xff]  }
 0x293   :  { %5209 = vmatpush1.bf16.msra.mxu0 %v6986_v8  ;;  %v7037_v8 = vld [vmem:[#allocation8 + $0x168] ss:$16 sps:$4 sm:$0xff]   ;;  %v7082_v25 = vld [vmem:[#allocation8 + $0x560] ss:$16 sps:$4 sm:$0xff]  }
 0x294   :  { %5210 = vmatprep.subr.bf16.mxu0 %v6991_v26  ;;  %5212 = vmatprep.mubr.bf16.mxu0 %v7834_v30  ;;  %v7090_v26 = vld [vmem:[#allocation8 + $0x584] ss:$16 sps:$4 sm:$0xff]   ;;  %v7043_v27 = vld [vmem:[#allocation8 + $0x188] ss:$16 sps:$4 sm:$0xff]   ;;  %v7088_v28 = vld [vmem:[#allocation8 + $0x580] ss:$16 sps:$4 sm:$0xff]  }
 0x295   :  { %3523 = vmatpush1.bf16.msra.mxu1 %v6462_v54  ;;  %v7051_v54 = vld [vmem:[#allocation8 + $0x1ac] ss:$16 sps:$4 sm:$0xff]   ;;  %v7094_v33 = vld [vmem:[#allocation8 + $0x5a0] ss:$16 sps:$4 sm:$0xff]  }
 0x296   :  { %5303 = vmatprep.subr.bf16.mxu1 %v6994_v31  ;;  %v7049_v31 = vld [vmem:[#allocation8 + $0x1a8] ss:$16 sps:$4 sm:$0xff]  }
 0x297   :  { %5211 = vmatpush1.bf16.msra.mxu0 %v6989_v55  ;;  %v7096_v55 = vld [vmem:[#allocation8 + $0x5a4] ss:$16 sps:$4 sm:$0xff]  }
 0x298   :  { %5221 = vmatprep.subr.bf16.mxu0 %v7018_v32  ;;  %3541 = vmatmul.mubr.bf16.vlgmr.msra.gmra.mrb[8].mxu1 %v7381_v40  ;;  %v7057_v32 = vld [vmem:[#allocation8 + $0x1cc] ss:$16 sps:$4 sm:$0xff]   ;;  %v7100_v40 = vld [vmem:[#allocation8 + $0x5c0] ss:$16 sps:$4 sm:$0xff]  }
 0x299   :  { %5304 = vmatpush1.bf16.msra.mxu1 %v6992_v35  ;;  %5335 = vmatprep.mubr.bf16.mxu1 %v7812_v1  ;;  %v7034_v1 = vld [vmem:[#allocation8 + $0x460] ss:$16 sps:$4 sm:$0xff]   ;;  %v7102_v35 = vld [vmem:[#allocation8 + $0x5c4] ss:$16 sps:$4 sm:$0xff]  }
 0x29a   :  { %5213 = vmatmul.mubr.bf16.vlgmr.msra.gmra.mrb[8].mxu0 %v7837_v38  ;;  %5305 = vmatprep.subr.bf16.mxu1 %v6997_v36  ;;  %v7055_v36 = vld [vmem:[#allocation8 + $0x1c8] ss:$16 sps:$4 sm:$0xff]  }
 0x29b   :  { %5222 = vmatpush1.bf16.msra.mxu0 %v7016_v39  ;;  %v7063_v39 = vld [vmem:[#allocation8 + $0x1ec] ss:$16 sps:$4 sm:$0xff]  }
 0x29c   :  { %5223 = vmatprep.subr.bf16.mxu0 %v7024_v41  ;;  %v7108_v41 = vld [vmem:[#allocation8 + $0x5e4] ss:$16 sps:$4 sm:$0xff]  }
 0x29d   :  { %5306 = vmatpush1.bf16.msra.mxu1 %v6995_v42  ;;  %v7061_v42 = vld [vmem:[#allocation8 + $0x1e8] ss:$16 sps:$4 sm:$0xff]  }
 0x29e   :  { %5307 = vmatprep.subr.bf16.mxu1 %v7000_v48  ;;  %v7069_v48 = vld [vmem:[#allocation8 + $0x20c] ss:$16 sps:$4 sm:$0xff]  }
 0x29f   :  { %5224 = vmatpush1.bf16.msra.mxu0 %v7022_v43  ;;  %v7106_v43 = vld [vmem:[#allocation8 + $0x5e0] ss:$16 sps:$4 sm:$0xff]  }
 0x2a0   :  { %5225 = vmatprep.subr.bf16.mxu0 %v7030_v20  ;;  %v7162_v20 = vld [vmem:[#allocation8 + $0x604] ss:$16 sps:$4 sm:$0xff]  }
 0x2a1   :  { %5308 = vmatpush1.bf16.msra.mxu1 %v6998_v59  ;;  %v7067_v59 = vld [vmem:[#allocation8 + $0x208] ss:$16 sps:$4 sm:$0xff]  }
 0x2a2   :  { %5309 = vmatprep.subr.bf16.mxu1 %v7003_v53  ;;  %v7075_v53 = vld [vmem:[#allocation8 + $0x22c] ss:$16 sps:$4 sm:$0xff]  }
 0x2a3   :  { %5226 = vmatpush1.bf16.msra.mxu0 %v7028_v45  ;;  %v7073_v45 = vld [vmem:[#allocation8 + $0x228] ss:$16 sps:$4 sm:$0xff]  }
 0x2a4   :  { %5227 = vmatprep.subr.bf16.mxu0 %v7036_v46  ;;  %v7081_v46 = vld [vmem:[#allocation8 + $0x24c] ss:$16 sps:$4 sm:$0xff]  }
 0x2a5   :  { %5310 = vmatpush1.bf16.msra.mxu1 %v7001_v47  ;;  %v7079_v47 = vld [vmem:[#allocation8 + $0x248] ss:$16 sps:$4 sm:$0xff]  }
 0x2a6   :  { %5311 = vmatprep.subr.bf16.mxu1 %v7006_v34  ;;  %v7087_v34 = vld [vmem:[#allocation8 + $0x26c] ss:$16 sps:$4 sm:$0xff]  }
 0x2a7   :  { %5228 = vmatpush1.bf16.msra.mxu0 %v7034_v1  ;;  %v7085_v1 = vld [vmem:[#allocation8 + $0x268] ss:$16 sps:$4 sm:$0xff]  }
 0x2a8   :  { %5229 = vmatprep.subr.bf16.mxu0 %v7042_v50  ;;  %v7093_v50 = vld [vmem:[#allocation8 + $0x28c] ss:$16 sps:$4 sm:$0xff]  }
 0x2a9   :  { %5312 = vmatpush1.bf16.msra.mxu1 %v7004_v37  ;;  %v7091_v37 = vld [vmem:[#allocation8 + $0x288] ss:$16 sps:$4 sm:$0xff]  }
 0x2aa   :  { %5313 = vmatprep.subr.bf16.mxu1 %v7009_v49  ;;  %v606_v49 = vsub.s32 4, %v7794_v58 }
 0x2ab   :  { %5230 = vmatpush1.bf16.msra.mxu0 %v7040_v51  ;;  %v7099_v51 = vld [vmem:[#allocation8 + $0x2ac] ss:$16 sps:$4 sm:$0xff]  }
 0x2ac   :  { %5231 = vmatprep.subr.bf16.mxu0 %v7048_v52 }
 0x2ad   :  { %5314 = vmatpush1.bf16.msra.mxu1 %v7007_v17  ;;  %v7097_v17 = vld [vmem:[#allocation8 + $0x2a8] ss:$16 sps:$4 sm:$0xff]  }
 0x2ae   :  { %5315 = vmatprep.subr.bf16.mxu1 %v7012_v56 }
 0x2af   :  { %5232 = vmatpush1.bf16.msra.mxu0 %v7046_v57  ;;  %v7105_v57 = vld [vmem:[#allocation8 + $0x2cc] ss:$16 sps:$4 sm:$0xff]  }
 0x2b0   :  { %5233 = vmatprep.subr.bf16.mxu0 %v7054_v61 }
 0x2b1   :  { %5316 = vmatpush1.bf16.msra.mxu1 %v7010_v0 }
 0x2b2   :  { %5317 = vmatprep.subr.bf16.mxu1 %v7015_v2 }
 0x2b3   :  { %5234 = vmatpush1.bf16.msra.mxu0 %v7052_v3  ;;  %v7103_v3 = vld [vmem:[#allocation8 + $0x2c8] ss:$16 sps:$4 sm:$0xff]  }
 0x2b4   :  { %5235 = vmatprep.subr.bf16.mxu0 %v7060_v62 }
 0x2b5   :  { %5318 = vmatpush1.bf16.msra.mxu1 %v7013_v22 }
 0x2b6   :  { %5319 = vmatprep.subr.bf16.mxu1 %v7021_v5  ;;  %v7111_v5 = vld [vmem:[#allocation8 + $0x2ec] ss:$16 sps:$4 sm:$0xff]  }
 0x2b7   :  { %5236 = vmatpush1.bf16.msra.mxu0 %v7058_v6 }
 0x2b8   :  { %5237 = vmatprep.subr.bf16.mxu0 %v7066_v29 }
 0x2b9   :  { %5320 = vmatpush1.bf16.msra.mxu1 %v7019_v7 }
 0x2ba   :  { %5321 = vmatprep.subr.bf16.mxu1 %v7027_v10 }
 0x2bb   :  { %5238 = vmatpush1.bf16.msra.mxu0 %v7064_v11  ;;  %v7109_v11 = vld [vmem:[#allocation8 + $0x2e8] ss:$16 sps:$4 sm:$0xff]  }
 0x2bc   :  { %5239 = vmatprep.subr.bf16.mxu0 %v7072_v12 }
 0x2bd   :  { %5322 = vmatpush1.bf16.msra.mxu1 %v7025_v23  ;;  %v7114_v23 = vld [vmem:[#allocation8 + $0x30c] ss:$16 sps:$4 sm:$0xff]  }
 0x2be   :  { %5323 = vmatprep.subr.bf16.mxu1 %v7033_v13 }
 0x2bf   :  { %5240 = vmatpush1.bf16.msra.mxu0 %v7070_v14  ;;  %v7160_v14 = vld [vmem:[#allocation8 + $0x600] ss:$16 sps:$4 sm:$0xff]  }
 0x2c0   :  { %5241 = vmatprep.subr.bf16.mxu0 %v7078_v15 }
 0x2c1   :  { %5324 = vmatpush1.bf16.msra.mxu1 %v7031_v16  ;;  %v7168_v16 = vld [vmem:[#allocation8 + $0x624] ss:$16 sps:$4 sm:$0xff]  }
 0x2c2   :  { %5325 = vmatprep.subr.bf16.mxu1 %v7039_v18  ;;  %v7112_v18 = vld [vmem:[#allocation8 + $0x308] ss:$16 sps:$4 sm:$0xff]  }
 0x2c3   :  { %5242 = vmatpush1.bf16.msra.mxu0 %v7076_v19  ;;  %v7117_v19 = vld [vmem:[#allocation8 + $0x32c] ss:$16 sps:$4 sm:$0xff]  }
 0x2c4   :  { %5243 = vmatprep.subr.bf16.mxu0 %v7084_v21  ;;  %v7166_v21 = vld [vmem:[#allocation8 + $0x620] ss:$16 sps:$4 sm:$0xff]  }
 0x2c5   :  { %5326 = vmatpush1.bf16.msra.mxu1 %v7037_v8  ;;  %v7174_v8 = vld [vmem:[#allocation8 + $0x644] ss:$16 sps:$4 sm:$0xff]  }
 0x2c6   :  { %5327 = vmatprep.subr.bf16.mxu1 %v7045_v24  ;;  %v7115_v24 = vld [vmem:[#allocation8 + $0x328] ss:$16 sps:$4 sm:$0xff]  }
 0x2c7   :  { %5244 = vmatpush1.bf16.msra.mxu0 %v7082_v25  ;;  %v7120_v25 = vld [vmem:[#allocation8 + $0x34c] ss:$16 sps:$4 sm:$0xff]  }
 0x2c8   :  { %5245 = vmatprep.subr.bf16.mxu0 %v7090_v26  ;;  %v7172_v26 = vld [vmem:[#allocation8 + $0x640] ss:$16 sps:$4 sm:$0xff]  }
 0x2c9   :  { %5328 = vmatpush1.bf16.msra.mxu1 %v7043_v27  ;;  %v7180_v27 = vld [vmem:[#allocation8 + $0x664] ss:$16 sps:$4 sm:$0xff]  }
 0x2ca   :  { %5329 = vmatprep.subr.bf16.mxu1 %v7051_v54  ;;  %v7118_v54 = vld [vmem:[#allocation8 + $0x348] ss:$16 sps:$4 sm:$0xff]  }
 0x2cb   :  { %5246 = vmatpush1.bf16.msra.mxu0 %v7088_v28  ;;  %v7123_v28 = vld [vmem:[#allocation8 + $0x36c] ss:$16 sps:$4 sm:$0xff]  }
 0x2cc   :  { %5247 = vmatprep.subr.bf16.mxu0 %v7096_v55  ;;  %v7178_v55 = vld [vmem:[#allocation8 + $0x660] ss:$16 sps:$4 sm:$0xff]  }
 0x2cd   :  { %5330 = vmatpush1.bf16.msra.mxu1 %v7049_v31  ;;  %v7186_v31 = vld [vmem:[#allocation8 + $0x684] ss:$16 sps:$4 sm:$0xff]  }
 0x2ce   :  { %5331 = vmatprep.subr.bf16.mxu1 %v7057_v32  ;;  %v7121_v32 = vld [vmem:[#allocation8 + $0x368] ss:$16 sps:$4 sm:$0xff]  }
 0x2cf   :  { %5248 = vmatpush1.bf16.msra.mxu0 %v7094_v33  ;;  %v7126_v33 = vld [vmem:[#allocation8 + $0x38c] ss:$16 sps:$4 sm:$0xff]  }
 0x2d0   :  { %5249 = vmatprep.subr.bf16.mxu0 %v7102_v35  ;;  %v7184_v35 = vld [vmem:[#allocation8 + $0x680] ss:$16 sps:$4 sm:$0xff]  }
 0x2d1   :  { %5332 = vmatpush1.bf16.msra.mxu1 %v7055_v36  ;;  %v7192_v36 = vld [vmem:[#allocation8 + $0x6a4] ss:$16 sps:$4 sm:$0xff]  }
 0x2d2   :  { %5333 = vmatprep.subr.bf16.mxu1 %v7063_v39  ;;  %v7124_v39 = vld [vmem:[#allocation8 + $0x388] ss:$16 sps:$4 sm:$0xff]  }
 0x2d3   :  { %5250 = vmatpush1.bf16.msra.mxu0 %v7100_v40  ;;  %v7129_v40 = vld [vmem:[#allocation8 + $0x3ac] ss:$16 sps:$4 sm:$0xff]  }
 0x2d4   :  { %5251 = vmatprep.subr.bf16.mxu0 %v7108_v41  ;;  %v7190_v41 = vld [vmem:[#allocation8 + $0x6a0] ss:$16 sps:$4 sm:$0xff]  }
 0x2d5   :  { %5334 = vmatpush1.bf16.msra.mxu1 %v7061_v42  ;;  %v7198_v42 = vld [vmem:[#allocation8 + $0x6c4] ss:$16 sps:$4 sm:$0xff]  }
 0x2d6   :  { %5344 = vmatprep.subr.bf16.mxu1 %v7069_v48  ;;  %v7127_v48 = vld [vmem:[#allocation8 + $0x3a8] ss:$16 sps:$4 sm:$0xff]  }
 0x2d7   :  { %5252 = vmatpush1.bf16.msra.mxu0 %v7106_v43  ;;  %v7132_v43 = vld [vmem:[#allocation8 + $0x3cc] ss:$16 sps:$4 sm:$0xff]  }
 0x2d8   :  { %5336 = vmatmul.mubr.bf16.vlgmr.msra.gmra.mrb[12].mxu1 %v7821_v44  ;;  %5262 = vmatprep.subr.bf16.mxu0 %v7162_v20  ;;  %v610_v44 = vsub.s32 5, %v7794_v58  ;;  %v7196_v20 = vld [vmem:[#allocation8 + $0x6c0] ss:$16 sps:$4 sm:$0xff]  }
 0x2d9   :  { %5345 = vmatpush1.bf16.msra.mxu1 %v7067_v59  ;;  %5376 = vmatprep.mubr.bf16.mxu1 %v7834_v30  ;;  %v7845_v30 = vld [vmem:[#allocation7] sm:$0xff]  ;;  %v7204_v59 = vld [vmem:[#allocation8 + $0x6e4] ss:$16 sps:$4 sm:$0xff]  }
 0x2da   :  { %5346 = vmatprep.subr.bf16.mxu1 %v7075_v53  ;;  %v607_v52 = vrot.slane %v7845_v30, %v606_v49  ;;  %v611_v56 = vrot.slane %v7845_v30, %v610_v44  ;;  %v7130_v53 = vld [vmem:[#allocation8 + $0x3c8] ss:$16 sps:$4 sm:$0xff]   ;;  %v7141_v44 = vld [vmem:[#allocation8 + $0x42c] ss:$16 sps:$4 sm:$0xff]  }
 0x2db   :  { %v7136_v49 = vld [vmem:[#allocation8 + $0x408] ss:$16 sps:$4 sm:$0xff]  }
 0x2dd   :  { %5347 = vmatpush1.bf16.msra.mxu1 %v7073_v45  ;;  %v7135_v45 = vld [vmem:[#allocation8 + $0x3ec] ss:$16 sps:$4 sm:$0xff]  }
 0x2de   :  { %5348 = vmatprep.subr.bf16.mxu1 %v7081_v46  ;;  %v7202_v46 = vld [vmem:[#allocation8 + $0x6e0] ss:$16 sps:$4 sm:$0xff]  }
 0x2e1   :  { %5349 = vmatpush1.bf16.msra.mxu1 %v7079_v47  ;;  %v7210_v47 = vld [vmem:[#allocation8 + $0x704] ss:$16 sps:$4 sm:$0xff]  }
 0x2e2   :  { %5350 = vmatprep.subr.bf16.mxu1 %v7087_v34  ;;  %v7133_v34 = vld [vmem:[#allocation8 + $0x3e8] ss:$16 sps:$4 sm:$0xff]  }
 0x2e5   :  { %5351 = vmatpush1.bf16.msra.mxu1 %v7085_v1  ;;  %v7138_v1 = vld [vmem:[#allocation8 + $0x40c] ss:$16 sps:$4 sm:$0xff]  }
 0x2e6   :  { %5352 = vmatprep.subr.bf16.mxu1 %v7093_v50  ;;  %v7208_v50 = vld [vmem:[#allocation8 + $0x700] ss:$16 sps:$4 sm:$0xff]  }
 0x2e9   :  { %5353 = vmatpush1.bf16.msra.mxu1 %v7091_v37  ;;  %v7216_v37 = vld [vmem:[#allocation8 + $0x724] ss:$16 sps:$4 sm:$0xff]  }
 0x2ea   :  { %5354 = vmatprep.subr.bf16.mxu1 %v7099_v51  ;;  %v7214_v51 = vld [vmem:[#allocation8 + $0x720] ss:$16 sps:$4 sm:$0xff]  }
 0x2ed   :  { %v3378_v61 = vpop.f32.mrb[4].mxu0  ;;  %5355 = vmatpush1.bf16.msra.mxu1 %v7097_v17  ;;  %v7139_v17 = vld [vmem:[#allocation8 + $0x428] ss:$16 sps:$4 sm:$0xff]  }
 0x2ee   :  { %v6792_v0 = vadd.f32 %v3378_v61, %v607_v52  ;;  %v3380_v2 = vpop.f32.mrb[5].mxu0  ;;  %5356 = vmatprep.subr.bf16.mxu1 %v7105_v57  ;;  %v7222_v52 = vld [vmem:[#allocation8 + $0x744] ss:$16 sps:$4 sm:$0xff]   ;;  %v7220_v57 = vld [vmem:[#allocation8 + $0x740] ss:$16 sps:$4 sm:$0xff]  }
 0x2ef   :  { %v6793_v62 = vadd.f32 %v3380_v2, %v611_v56  ;;  %v3382_v22 = vpop.f32.mrb[6].mxu0  ;;  %v7144_v56 = vld [vmem:[#allocation8 + $0x44c] ss:$16 sps:$4 sm:$0xff]   ;;  %v7228_v61 = vld [vmem:[#allocation8 + $0x764] ss:$16 sps:$4 sm:$0xff]  }
 0x2f0   :  { %vm3553_vm4 = vcmp.gt.f32.partialorder %v6792_v0, 0.0  ;;  %v3561_v6 = vmul.f32 0.2, %v6792_v0  ;;  %v3383_v29 = vpop.f32.mrb[7].mxu0  ;;  %v7147_v2 = vld [vmem:[#allocation8 + $0x46c] ss:$16 sps:$4 sm:$0xff]  }
 0x2f1   :  { %vm3554_vm5 = vcmp.gt.f32.partialorder %v6793_v62, 0.0  ;;  %v3562_v7 = vmul.f32 0.2, %v6793_v62  ;;  %5357 = vmatpush1.bf16.msra.mxu1 %v7103_v3  ;;  %v7226_v3 = vld [vmem:[#allocation8 + $0x760] ss:$16 sps:$4 sm:$0xff]  }
 0x2f2   :  { %v3569_v10 = vsel %vm3553_vm4, %v6792_v0, %v3561_v6  ;;  %5358 = vmatprep.subr.bf16.mxu1 %v7111_v5  ;;  %v7142_v0 = vld [vmem:[#allocation8 + $0x448] ss:$16 sps:$4 sm:$0xff]   ;;  %v7150_v22 = vld [vmem:[#allocation8 + $0x48c] ss:$16 sps:$4 sm:$0xff]   ;;  %v7232_v5 = vld [vmem:[#allocation8 + $0x780] ss:$16 sps:$4 sm:$0xff]  }
 0x2f3   :  { %v3570_v12 = vsel %vm3554_vm5, %v6793_v62, %v3562_v7  ;;  %v7851_v15 = vpack.c.bf16 %v3569_v10, %v3569_v10  ;;  %v7145_v62 = vld [vmem:[#allocation8 + $0x468] ss:$16 sps:$4 sm:$0xff]   ;;  %v7240_v6 = vld [vmem:[#allocation8 + $0x7a4] ss:$16 sps:$4 sm:$0xff]   ;;  %v7153_v7 = vld [vmem:[#allocation8 + $0x4ac] ss:$16 sps:$4 sm:$0xff]  }
 0x2f4   :  { %v7849_v13 = vpack.c.bf16 %v3570_v12, %v3570_v12  ;;  %v7148_v29 = vld [vmem:[#allocation8 + $0x488] ss:$16 sps:$4 sm:$0xff]   ;;  %v7238_v10 = vld [vmem:[#allocation8 + $0x7a0] ss:$16 sps:$4 sm:$0xff]  }
 0x2f5   :  { %5359 = vmatpush1.bf16.msra.mxu1 %v7109_v11  ;;  %v7246_v11 = vld [vmem:[#allocation8 + $0x7c4] ss:$16 sps:$4 sm:$0xff]   ;;  %v7151_v12 = vld [vmem:[#allocation8 + $0x4a8] ss:$16 sps:$4 sm:$0xff]  }
 0x2f6   :  { %5253 = vmatprep.mubr.bf16.mxu0 %v7849_v13  ;;  %5360 = vmatprep.subr.bf16.mxu1 %v7114_v23  ;;  %v7156_v23 = vld [vmem:[#allocation8 + $0x4cc] ss:$16 sps:$4 sm:$0xff]  }
 0x2f7   :  { %5254 = vmatmul.mubr.bf16.vlgmr.msra.gmra.mrb[8].mxu0 %v7851_v15 }
 0x2f8   :  { %5263 = vmatpush1.bf16.msra.mxu0 %v7160_v14  ;;  %v7252_v14 = vld [vmem:[#allocation8 + $0x7e4] ss:$16 sps:$4 sm:$0xff]  }
 0x2f9   :  { %5264 = vmatprep.subr.bf16.mxu0 %v7168_v16  ;;  %5361 = vmatpush1.bf16.msra.mxu1 %v7112_v18  ;;  %v7154_v16 = vld [vmem:[#allocation8 + $0x4c8] ss:$16 sps:$4 sm:$0xff]   ;;  %v7159_v18 = vld [vmem:[#allocation8 + $0x4ec] ss:$16 sps:$4 sm:$0xff]  }
 0x2fa   :  { %5362 = vmatprep.subr.bf16.mxu1 %v7117_v19  ;;  %v7250_v19 = vld [vmem:[#allocation8 + $0x7e0] ss:$16 sps:$4 sm:$0xff]  }
 0x2fc   :  { %5265 = vmatpush1.bf16.msra.mxu0 %v7166_v21  ;;  %v7282_v21 = vld [vmem:[#allocation11 + $0x4] ss:$8 sps:$4 sm:$0xff]  }
 0x2fd   :  { %5266 = vmatprep.subr.bf16.mxu0 %v7174_v8  ;;  %5363 = vmatpush1.bf16.msra.mxu1 %v7115_v24  ;;  %v7157_v8 = vld [vmem:[#allocation8 + $0x4e8] ss:$16 sps:$4 sm:$0xff]   ;;  %v7165_v24 = vld [vmem:[#allocation8 + $0x50c] ss:$16 sps:$4 sm:$0xff]  }
 0x2fe   :  { %5364 = vmatprep.subr.bf16.mxu1 %v7120_v25  ;;  %v7163_v25 = vld [vmem:[#allocation8 + $0x508] ss:$16 sps:$4 sm:$0xff]  }
 0x300   :  { %5267 = vmatpush1.bf16.msra.mxu0 %v7172_v26  ;;  %v7171_v26 = vld [vmem:[#allocation8 + $0x52c] ss:$16 sps:$4 sm:$0xff]  }
 0x301   :  { %5268 = vmatprep.subr.bf16.mxu0 %v7180_v27  ;;  %5365 = vmatpush1.bf16.msra.mxu1 %v7118_v54  ;;  %v7169_v27 = vld [vmem:[#allocation8 + $0x528] ss:$16 sps:$4 sm:$0xff]   ;;  %v7177_v54 = vld [vmem:[#allocation8 + $0x54c] ss:$16 sps:$4 sm:$0xff]  }
 0x302   :  { %5366 = vmatprep.subr.bf16.mxu1 %v7123_v28  ;;  %v7175_v28 = vld [vmem:[#allocation8 + $0x548] ss:$16 sps:$4 sm:$0xff]  }
 0x304   :  { %5269 = vmatpush1.bf16.msra.mxu0 %v7178_v55  ;;  %v7183_v55 = vld [vmem:[#allocation8 + $0x56c] ss:$16 sps:$4 sm:$0xff]  }
 0x305   :  { %5270 = vmatprep.subr.bf16.mxu0 %v7186_v31  ;;  %5367 = vmatpush1.bf16.msra.mxu1 %v7121_v32  ;;  %v7181_v31 = vld [vmem:[#allocation8 + $0x568] ss:$16 sps:$4 sm:$0xff]   ;;  %v7189_v32 = vld [vmem:[#allocation8 + $0x58c] ss:$16 sps:$4 sm:$0xff]  }
 0x306   :  { %5368 = vmatprep.subr.bf16.mxu1 %v7126_v33  ;;  %v7187_v33 = vld [vmem:[#allocation8 + $0x588] ss:$16 sps:$4 sm:$0xff]  }
 0x308   :  { %5271 = vmatpush1.bf16.msra.mxu0 %v7184_v35  ;;  %v7195_v35 = vld [vmem:[#allocation8 + $0x5ac] ss:$16 sps:$4 sm:$0xff]  }
 0x309   :  { %5272 = vmatprep.subr.bf16.mxu0 %v7192_v36  ;;  %5369 = vmatpush1.bf16.msra.mxu1 %v7124_v39  ;;  %v7193_v36 = vld [vmem:[#allocation8 + $0x5a8] ss:$16 sps:$4 sm:$0xff]   ;;  %v7201_v39 = vld [vmem:[#allocation8 + $0x5cc] ss:$16 sps:$4 sm:$0xff]  }
 0x30a   :  { %5370 = vmatprep.subr.bf16.mxu1 %v7129_v40  ;;  %v7199_v40 = vld [vmem:[#allocation8 + $0x5c8] ss:$16 sps:$4 sm:$0xff]  }
 0x30c   :  { %5273 = vmatpush1.bf16.msra.mxu0 %v7190_v41  ;;  %v7207_v41 = vld [vmem:[#allocation8 + $0x5ec] ss:$16 sps:$4 sm:$0xff]  }
 0x30d   :  { %5274 = vmatprep.subr.bf16.mxu0 %v7198_v42  ;;  %5371 = vmatpush1.bf16.msra.mxu1 %v7127_v48  ;;  %v7205_v42 = vld [vmem:[#allocation8 + $0x5e8] ss:$16 sps:$4 sm:$0xff]   ;;  %v7213_v48 = vld [vmem:[#allocation8 + $0x60c] ss:$16 sps:$4 sm:$0xff]  }
 0x30e   :  { %5372 = vmatprep.subr.bf16.mxu1 %v7132_v43  ;;  %v7211_v43 = vld [vmem:[#allocation8 + $0x608] ss:$16 sps:$4 sm:$0xff]  }
 0x310   :  { %5275 = vmatpush1.bf16.msra.mxu0 %v7196_v20  ;;  %v7219_v20 = vld [vmem:[#allocation8 + $0x62c] ss:$16 sps:$4 sm:$0xff]  }
 0x311   :  { %5276 = vmatprep.subr.bf16.mxu0 %v7204_v59  ;;  %5373 = vmatpush1.bf16.msra.mxu1 %v7130_v53  ;;  %v7217_v59 = vld [vmem:[#allocation8 + $0x628] ss:$16 sps:$4 sm:$0xff]   ;;  %v7225_v53 = vld [vmem:[#allocation8 + $0x64c] ss:$16 sps:$4 sm:$0xff]  }
 0x312   :  { %5374 = vmatprep.subr.bf16.mxu1 %v7135_v45  ;;  %v7223_v45 = vld [vmem:[#allocation8 + $0x648] ss:$16 sps:$4 sm:$0xff]  }
 0x314   :  { %5277 = vmatpush1.bf16.msra.mxu0 %v7202_v46  ;;  %v7231_v46 = vld [vmem:[#allocation8 + $0x66c] ss:$16 sps:$4 sm:$0xff]  }
 0x315   :  { %5278 = vmatprep.subr.bf16.mxu0 %v7210_v47  ;;  %5375 = vmatpush1.bf16.msra.mxu1 %v7133_v34  ;;  %v7229_v47 = vld [vmem:[#allocation8 + $0x668] ss:$16 sps:$4 sm:$0xff]   ;;  %v7237_v34 = vld [vmem:[#allocation8 + $0x68c] ss:$16 sps:$4 sm:$0xff]  }
 0x316   :  { %5385 = vmatprep.subr.bf16.mxu1 %v7138_v1  ;;  %v614_v1 = vsub.s32 6, %v7794_v58 }
 0x318   :  { %5279 = vmatpush1.bf16.msra.mxu0 %v7208_v50  ;;  %5377 = vmatmul.mubr.bf16.vlgmr.msra.gmra.mrb[12].mxu1 %v7837_v38  ;;  %v7234_v38 = vld [vmem:[#allocation8 + $0x784] ss:$16 sps:$4 sm:$0xff]   ;;  %v7235_v50 = vld [vmem:[#allocation8 + $0x688] ss:$16 sps:$4 sm:$0xff]  }
 0x319   :  { %5280 = vmatprep.subr.bf16.mxu0 %v7216_v37  ;;  %5386 = vmatpush1.bf16.msra.mxu1 %v7136_v49  ;;  %v618_v37 = vsub.s32 7, %v7794_v58  ;;  %v615_v49 = vrot.slane %v7845_v30, %v614_v1  ;;  %v7310_v1 = vld [vmem:[#allocation11 + $0xa0] ss:$8 sps:$4 sm:$0xff]  }
 0x31a   :  { %5417 = vmatprep.mubr.bf16.mxu1 %v7849_v13  ;;  %5387 = vmatprep.subr.bf16.mxu1 %v7141_v44  ;;  %v7244_v13 = vld [vmem:[#allocation8 + $0x7c0] ss:$16 sps:$4 sm:$0xff]   ;;  %v5547_v58 = vld [vmem:[#allocation13] sm:$0x3] }
 0x31b   :  { %v619_v44 = vrot.slane %v7845_v30, %v618_v37  ;;  %v7313_v37 = vld [vmem:[#allocation11 + $0xb0] ss:$8 sps:$4 sm:$0xff]  }
 0x31c   :  { %5281 = vmatpush1.bf16.msra.mxu0 %v7214_v51  ;;  %v7241_v51 = vld [vmem:[#allocation8 + $0x6a8] ss:$16 sps:$4 sm:$0xff]  }
 0x31d   :  { %5282 = vmatprep.subr.bf16.mxu0 %v7222_v52  ;;  %5388 = vmatpush1.bf16.msra.mxu1 %v7139_v17  ;;  %v7249_v52 = vld [vmem:[#allocation8 + $0x6cc] ss:$16 sps:$4 sm:$0xff]  }
 0x31e   :  { %5389 = vmatprep.subr.bf16.mxu1 %v7144_v56 }
 0x320   :  { %5283 = vmatpush1.bf16.msra.mxu0 %v7220_v57 }
 0x321   :  { %5284 = vmatprep.subr.bf16.mxu0 %v7228_v61  ;;  %5390 = vmatpush1.bf16.msra.mxu1 %v7142_v0 }
 0x322   :  { %5391 = vmatprep.subr.bf16.mxu1 %v7147_v2  ;;  %v7247_v2 = vld [vmem:[#allocation8 + $0x6c8] ss:$16 sps:$4 sm:$0xff]  }
 0x324   :  { %5285 = vmatpush1.bf16.msra.mxu0 %v7226_v3 }
 0x325   :  { %5286 = vmatprep.subr.bf16.mxu0 %v7234_v38  ;;  %5392 = vmatpush1.bf16.msra.mxu1 %v7145_v62  ;;  %v7255_v62 = vld [vmem:[#allocation8 + $0x6ec] ss:$16 sps:$4 sm:$0xff]  }
 0x326   :  { %5393 = vmatprep.subr.bf16.mxu1 %v7150_v22 }
 0x328   :  { %5287 = vmatpush1.bf16.msra.mxu0 %v7232_v5 }
 0x329   :  { %5288 = vmatprep.subr.bf16.mxu0 %v7240_v6  ;;  %5394 = vmatpush1.bf16.msra.mxu1 %v7148_v29  ;;  %v7253_v6 = vld [vmem:[#allocation8 + $0x6e8] ss:$16 sps:$4 sm:$0xff]  }
 0x32a   :  { %5395 = vmatprep.subr.bf16.mxu1 %v7153_v7  ;;  %v7258_v7 = vld [vmem:[#allocation8 + $0x70c] ss:$16 sps:$4 sm:$0xff]  }
 0x32c   :  { %5289 = vmatpush1.bf16.msra.mxu0 %v7238_v10  ;;  %v7280_v10 = vld [vmem:[#allocation11] ss:$8 sps:$4 sm:$0xff]  }
 0x32d   :  { %5290 = vmatprep.subr.bf16.mxu0 %v7246_v11  ;;  %5396 = vmatpush1.bf16.msra.mxu1 %v7151_v12  ;;  %v7285_v12 = vld [vmem:[#allocation11 + $0x14] ss:$8 sps:$4 sm:$0xff]  }
 0x32e   :  { %5397 = vmatprep.subr.bf16.mxu1 %v7156_v23  ;;  %v7256_v23 = vld [vmem:[#allocation8 + $0x708] ss:$16 sps:$4 sm:$0xff]  }
 0x330   :  { %5291 = vmatpush1.bf16.msra.mxu0 %v7244_v13  ;;  %v7261_v13 = vld [vmem:[#allocation8 + $0x72c] ss:$16 sps:$4 sm:$0xff]  }
 0x331   :  { %5292 = vmatprep.subr.bf16.mxu0 %v7252_v14  ;;  %5398 = vmatpush1.bf16.msra.mxu1 %v7154_v16  ;;  %v7283_v14 = vld [vmem:[#allocation11 + $0x10] ss:$8 sps:$4 sm:$0xff]   ;;  %v7288_v16 = vld [vmem:[#allocation11 + $0x24] ss:$8 sps:$4 sm:$0xff]  }
 0x332   :  { %5399 = vmatprep.subr.bf16.mxu1 %v7159_v18  ;;  %v7259_v18 = vld [vmem:[#allocation8 + $0x728] ss:$16 sps:$4 sm:$0xff]  }
 0x334   :  { %5293 = vmatpush1.bf16.msra.mxu0 %v7250_v19  ;;  %v7264_v19 = vld [vmem:[#allocation8 + $0x74c] ss:$16 sps:$4 sm:$0xff]  }
 0x335   :  { %5879 = vmatprep.subr.bf16.mxu0 %v7282_v21  ;;  %5400 = vmatpush1.bf16.msra.mxu1 %v7157_v8  ;;  %v7286_v21 = vld [vmem:[#allocation11 + $0x20] ss:$8 sps:$4 sm:$0xff]   ;;  %v7291_v8 = vld [vmem:[#allocation11 + $0x34] ss:$8 sps:$4 sm:$0xff]  }
 0x336   :  { %5401 = vmatprep.subr.bf16.mxu1 %v7165_v24  ;;  %v7262_v24 = vld [vmem:[#allocation8 + $0x748] ss:$16 sps:$4 sm:$0xff]  }
 0x339   :  { %5402 = vmatpush1.bf16.msra.mxu1 %v7163_v25  ;;  %v7267_v25 = vld [vmem:[#allocation8 + $0x76c] ss:$16 sps:$4 sm:$0xff]  }
 0x33a   :  { %5403 = vmatprep.subr.bf16.mxu1 %v7171_v26  ;;  %v7289_v26 = vld [vmem:[#allocation11 + $0x30] ss:$8 sps:$4 sm:$0xff]  }
 0x33d   :  { %5404 = vmatpush1.bf16.msra.mxu1 %v7169_v27  ;;  %v7294_v27 = vld [vmem:[#allocation11 + $0x44] ss:$8 sps:$4 sm:$0xff]  }
 0x33e   :  { %5405 = vmatprep.subr.bf16.mxu1 %v7177_v54  ;;  %v7265_v54 = vld [vmem:[#allocation8 + $0x768] ss:$16 sps:$4 sm:$0xff]  }
 0x341   :  { %5406 = vmatpush1.bf16.msra.mxu1 %v7175_v28  ;;  %v7270_v28 = vld [vmem:[#allocation8 + $0x78c] ss:$16 sps:$4 sm:$0xff]  }
 0x342   :  { %5407 = vmatprep.subr.bf16.mxu1 %v7183_v55  ;;  %v7292_v55 = vld [vmem:[#allocation11 + $0x40] ss:$8 sps:$4 sm:$0xff]  }
 0x345   :  { %5408 = vmatpush1.bf16.msra.mxu1 %v7181_v31  ;;  %v7297_v31 = vld [vmem:[#allocation11 + $0x54] ss:$8 sps:$4 sm:$0xff]  }
 0x346   :  { %5409 = vmatprep.subr.bf16.mxu1 %v7189_v32  ;;  %v7268_v32 = vld [vmem:[#allocation8 + $0x788] ss:$16 sps:$4 sm:$0xff]  }
 0x349   :  { %5410 = vmatpush1.bf16.msra.mxu1 %v7187_v33  ;;  %v7273_v33 = vld [vmem:[#allocation8 + $0x7ac] ss:$16 sps:$4 sm:$0xff]  }
 0x34a   :  { %5411 = vmatprep.subr.bf16.mxu1 %v7195_v35  ;;  %v7295_v35 = vld [vmem:[#allocation11 + $0x50] ss:$8 sps:$4 sm:$0xff]  }
 0x34d   :  { %5412 = vmatpush1.bf16.msra.mxu1 %v7193_v36  ;;  %v7300_v36 = vld [vmem:[#allocation11 + $0x64] ss:$8 sps:$4 sm:$0xff]  }
 0x34e   :  { %5413 = vmatprep.subr.bf16.mxu1 %v7201_v39  ;;  %v7271_v39 = vld [vmem:[#allocation8 + $0x7a8] ss:$16 sps:$4 sm:$0xff]  }
 0x351   :  { %5414 = vmatpush1.bf16.msra.mxu1 %v7199_v40  ;;  %v7276_v40 = vld [vmem:[#allocation8 + $0x7cc] ss:$16 sps:$4 sm:$0xff]  }
 0x352   :  { %5415 = vmatprep.subr.bf16.mxu1 %v7207_v41  ;;  %v7298_v41 = vld [vmem:[#allocation11 + $0x60] ss:$8 sps:$4 sm:$0xff]  }
 0x355   :  { %5416 = vmatpush1.bf16.msra.mxu1 %v7205_v42  ;;  %v7303_v42 = vld [vmem:[#allocation11 + $0x74] ss:$8 sps:$4 sm:$0xff]  }
 0x356   :  { %5426 = vmatprep.subr.bf16.mxu1 %v7213_v48  ;;  %v7274_v48 = vld [vmem:[#allocation8 + $0x7c8] ss:$16 sps:$4 sm:$0xff]  }
 0x358   :  { %5418 = vmatmul.mubr.bf16.vlgmr.msra.gmra.mrb[12].mxu1 %v7851_v15  ;;  %v7243_v15 = vld [vmem:[#allocation8 + $0x6ac] ss:$16 sps:$4 sm:$0xff]  }
 0x359   :  { %5427 = vmatpush1.bf16.msra.mxu1 %v7211_v43  ;;  %v7279_v43 = vld [vmem:[#allocation8 + $0x7ec] ss:$16 sps:$4 sm:$0xff]  }
 0x35a   :  { %5428 = vmatprep.subr.bf16.mxu1 %v7219_v20  ;;  %v7301_v20 = vld [vmem:[#allocation11 + $0x70] ss:$8 sps:$4 sm:$0xff]  }
 0x35d   :  { %5429 = vmatpush1.bf16.msra.mxu1 %v7217_v59  ;;  %v7306_v59 = vld [vmem:[#allocation11 + $0x84] ss:$8 sps:$4 sm:$0xff]  }
 0x35e   :  { %5430 = vmatprep.subr.bf16.mxu1 %v7225_v53  ;;  %v7277_v53 = vld [vmem:[#allocation8 + $0x7e8] ss:$16 sps:$4 sm:$0xff]  }
 0x361   :  { %5431 = vmatpush1.bf16.msra.mxu1 %v7223_v45  ;;  %v7304_v45 = vld [vmem:[#allocation11 + $0x80] ss:$8 sps:$4 sm:$0xff]  }
 0x362   :  { %5432 = vmatprep.subr.bf16.mxu1 %v7231_v46  ;;  %v7309_v46 = vld [vmem:[#allocation11 + $0x94] ss:$8 sps:$4 sm:$0xff]  }
 0x365   :  { %5433 = vmatpush1.bf16.msra.mxu1 %v7229_v47  ;;  %v7307_v47 = vld [vmem:[#allocation11 + $0x90] ss:$8 sps:$4 sm:$0xff]  }
 0x366   :  { %5434 = vmatprep.subr.bf16.mxu1 %v7237_v34  ;;  %v7312_v34 = vld [vmem:[#allocation11 + $0xa4] ss:$8 sps:$4 sm:$0xff]  }
 0x369   :  { %5435 = vmatpush1.bf16.msra.mxu1 %v7235_v50  ;;  %v7315_v50 = vld [vmem:[#allocation11 + $0xb4] ss:$8 sps:$4 sm:$0xff]  }
 0x36a   :  { %5436 = vmatprep.subr.bf16.mxu1 %v7243_v15  ;;  %v7318_v15 = vld [vmem:[#allocation11 + $0xc4] ss:$8 sps:$4 sm:$0xff]  }
 0x36b   :  { %v3542_v17 = vpop.f32.mrb[8].mxu1 }
 0x36c   :  { %v6794_v56 = vadd.f32 %v3542_v17, %v615_v49  ;;  %v3544_v57 = vpop.f32.mrb[9].mxu1  ;;  %v7316_v49 = vld [vmem:[#allocation11 + $0xc0] ss:$8 sps:$4 sm:$0xff]  }
 0x36d   :  { %v6795_v61 = vadd.f32 %v3544_v57, %v619_v44  ;;  %v3546_v0 = vpop.f32.mrb[10].mxu1  ;;  %5437 = vmatpush1.bf16.msra.mxu1 %v7241_v51  ;;  %v7321_v44 = vld [vmem:[#allocation11 + $0xd4] ss:$8 sps:$4 sm:$0xff]   ;;  %v7319_v51 = vld [vmem:[#allocation11 + $0xd0] ss:$8 sps:$4 sm:$0xff]  }
 0x36e   :  { %vm3555_vm6 = vcmp.gt.f32.partialorder %v6794_v56, 0.0  ;;  %v3563_v3 = vmul.f32 0.2, %v6794_v56  ;;  %v3547_v38 = vpop.f32.mrb[11].mxu1  ;;  %5438 = vmatprep.subr.bf16.mxu1 %v7249_v52  ;;  %v7324_v52 = vld [vmem:[#allocation11 + $0xe4] ss:$8 sps:$4 sm:$0xff]  }
 0x36f   :  { %vm3556_vm7 = vcmp.gt.f32.partialorder %v6795_v61, 0.0  ;;  %v3564_v22 = vmul.f32 0.2, %v6795_v61  ;;  %v7322_v17 = vld [vmem:[#allocation11 + $0xe0] ss:$8 sps:$4 sm:$0xff]  }
 0x370   :  { %v3571_v5 = vsel %vm3555_vm6, %v6794_v56, %v3563_v3  ;;  %v7327_v56 = vld [vmem:[#allocation11 + $0xf4] ss:$8 sps:$4 sm:$0xff]   ;;  %v7325_v57 = vld [vmem:[#allocation11 + $0xf0] ss:$8 sps:$4 sm:$0xff]  }
 0x371   :  { %5439 = vmatpush1.bf16.msra.mxu1 %v7247_v2  ;;  %v3572_v30 = vsel %vm3556_vm7, %v6795_v61, %v3564_v22  ;;  %v7862_v11 = vpack.c.bf16 %v3571_v5, %v3571_v5  ;;  %v7330_v61 = vld [vmem:[#allocation11 + $0x104] ss:$8 sps:$4 sm:$0xff]   ;;  %v7866_v0 = vld [vmem:[#allocation10] sm:$0xf] }
 0x372   :  { %v3580_v29 = vpack.c.bf16 %v3572_v30, %v3572_v30  ;;  %5440 = vmatprep.subr.bf16.mxu1 %v7255_v62  ;;  %v3842_v2 = vrot.slane %v7866_v0, %v7797_v4  ;;  %v3846_v3 = vrot.slane %v7866_v0, %v7802_v9 }
 0x374   :  { %5294 = vmatprep.mubr.bf16.mxu0 %v3580_v29  ;;  %5458 = vmatprep.mubr.bf16.mxu1 %v3580_v29 }
 0x375   :  { %5295 = vmatmul.mubr.bf16.vlgmr.msra.gmra.mrb[8].mxu0 %v7862_v11  ;;  %5441 = vmatpush1.bf16.msra.mxu1 %v7253_v6 }
 0x376   :  { %5442 = vmatprep.subr.bf16.mxu1 %v7258_v7  ;;  %5880 = vmatpush1.bf16.msra.mxu0 %v7280_v10 }
 0x377   :  { %5881 = vmatprep.subr.bf16.mxu0 %v7285_v12 }
 0x379   :  { %5443 = vmatpush1.bf16.msra.mxu1 %v7256_v23  ;;  %v7328_v23 = vld [vmem:[#allocation11 + $0x100] ss:$8 sps:$4 sm:$0xff]  }
 0x37a   :  { %5444 = vmatprep.subr.bf16.mxu1 %v7261_v13  ;;  %5882 = vmatpush1.bf16.msra.mxu0 %v7283_v14  ;;  %v7333_v14 = vld [vmem:[#allocation11 + $0x114] ss:$8 sps:$4 sm:$0xff]  }
 0x37b   :  { %5883 = vmatprep.subr.bf16.mxu0 %v7288_v16  ;;  %v7331_v16 = vld [vmem:[#allocation11 + $0x110] ss:$8 sps:$4 sm:$0xff]  }
 0x37d   :  { %5445 = vmatpush1.bf16.msra.mxu1 %v7259_v18  ;;  %v7336_v18 = vld [vmem:[#allocation11 + $0x124] ss:$8 sps:$4 sm:$0xff]  }
 0x37e   :  { %5446 = vmatprep.subr.bf16.mxu1 %v7264_v19  ;;  %5884 = vmatpush1.bf16.msra.mxu0 %v7286_v21  ;;  %v7334_v19 = vld [vmem:[#allocation11 + $0x120] ss:$8 sps:$4 sm:$0xff]   ;;  %v7339_v21 = vld [vmem:[#allocation11 + $0x134] ss:$8 sps:$4 sm:$0xff]  }
 0x37f   :  { %5885 = vmatprep.subr.bf16.mxu0 %v7291_v8  ;;  %v7337_v8 = vld [vmem:[#allocation11 + $0x130] ss:$8 sps:$4 sm:$0xff]  }
 0x381   :  { %5447 = vmatpush1.bf16.msra.mxu1 %v7262_v24  ;;  %v7342_v24 = vld [vmem:[#allocation11 + $0x144] ss:$8 sps:$4 sm:$0xff]  }
 0x382   :  { %5448 = vmatprep.subr.bf16.mxu1 %v7267_v25  ;;  %5886 = vmatpush1.bf16.msra.mxu0 %v7289_v26  ;;  %v7340_v25 = vld [vmem:[#allocation11 + $0x140] ss:$8 sps:$4 sm:$0xff]   ;;  %v7345_v26 = vld [vmem:[#allocation11 + $0x154] ss:$8 sps:$4 sm:$0xff]  }
 0x383   :  { %5887 = vmatprep.subr.bf16.mxu0 %v7294_v27  ;;  %v7343_v27 = vld [vmem:[#allocation11 + $0x150] ss:$8 sps:$4 sm:$0xff]  }
 0x385   :  { %5449 = vmatpush1.bf16.msra.mxu1 %v7265_v54  ;;  %v7348_v54 = vld [vmem:[#allocation11 + $0x164] ss:$8 sps:$4 sm:$0xff]  }
 0x386   :  { %5450 = vmatprep.subr.bf16.mxu1 %v7270_v28  ;;  %5888 = vmatpush1.bf16.msra.mxu0 %v7292_v55  ;;  %v7346_v28 = vld [vmem:[#allocation11 + $0x160] ss:$8 sps:$4 sm:$0xff]   ;;  %v7351_v55 = vld [vmem:[#allocation11 + $0x174] ss:$8 sps:$4 sm:$0xff]  }
 0x387   :  { %5889 = vmatprep.subr.bf16.mxu0 %v7297_v31  ;;  %v3854_v31 = vrot.slane %v7866_v0, %v602_v63  ;;  %v7360_v63 = vld [vmem:[#allocation11 + $0x1a4] ss:$8 sps:$4 sm:$0xff]  }
 0x389   :  { %5451 = vmatpush1.bf16.msra.mxu1 %v7268_v32 }
 0x38a   :  { %5452 = vmatprep.subr.bf16.mxu1 %v7273_v33  ;;  %5890 = vmatpush1.bf16.msra.mxu0 %v7295_v35  ;;  %v7349_v33 = vld [vmem:[#allocation11 + $0x170] ss:$8 sps:$4 sm:$0xff]  }
 0x38b   :  { %5891 = vmatprep.subr.bf16.mxu0 %v7300_v36  ;;  %v7354_v36 = vld [vmem:[#allocation11 + $0x184] ss:$8 sps:$4 sm:$0xff]  }
 0x38d   :  { %5453 = vmatpush1.bf16.msra.mxu1 %v7271_v39 }
 0x38e   :  { %5454 = vmatprep.subr.bf16.mxu1 %v7276_v40  ;;  %5892 = vmatpush1.bf16.msra.mxu0 %v7298_v41 }
 0x38f   :  { %5893 = vmatprep.subr.bf16.mxu0 %v7303_v42 }
 0x391   :  { %5455 = vmatpush1.bf16.msra.mxu1 %v7274_v48  ;;  %v7352_v48 = vld [vmem:[#allocation11 + $0x180] ss:$8 sps:$4 sm:$0xff]  }
 0x392   :  { %5456 = vmatprep.subr.bf16.mxu1 %v7279_v43  ;;  %5894 = vmatpush1.bf16.msra.mxu0 %v7301_v20  ;;  %v7357_v43 = vld [vmem:[#allocation11 + $0x194] ss:$8 sps:$4 sm:$0xff]  }
 0x393   :  { %5895 = vmatprep.subr.bf16.mxu0 %v7306_v59 }
 0x395   :  { %5457 = vmatpush1.bf16.msra.mxu1 %v7277_v53  ;;  %v7355_v53 = vld [vmem:[#allocation11 + $0x190] ss:$8 sps:$4 sm:$0xff]  }
 0x396   :  { %5896 = vmatpush1.bf16.msra.mxu0 %v7304_v45  ;;  %v7358_v45 = vld [vmem:[#allocation11 + $0x1a0] ss:$8 sps:$4 sm:$0xff]  }
 0x397   :  { %5897 = vmatprep.subr.bf16.mxu0 %v7309_v46  ;;  %v7363_v46 = vld [vmem:[#allocation11 + $0x1b4] ss:$8 sps:$4 sm:$0xff]  }
 0x398   :  { %5459 = vmatmul.mubr.bf16.vlgmr.msra.gmra.mrb[12].mxu1 %v7862_v11 }
 0x39a   :  { %5898 = vmatpush1.bf16.msra.mxu0 %v7307_v47  ;;  %v7361_v47 = vld [vmem:[#allocation11 + $0x1b0] ss:$8 sps:$4 sm:$0xff]  }
 0x39b   :  { %5899 = vmatprep.subr.bf16.mxu0 %v7312_v34  ;;  %v7366_v34 = vld [vmem:[#allocation11 + $0x1c4] ss:$8 sps:$4 sm:$0xff]  }
 0x39e   :  { %5900 = vmatpush1.bf16.msra.mxu0 %v7310_v1  ;;  %v7364_v1 = vld [vmem:[#allocation11 + $0x1c0] ss:$8 sps:$4 sm:$0xff]  }
 0x39f   :  { %5901 = vmatprep.subr.bf16.mxu0 %v7315_v50  ;;  %v7369_v50 = vld [vmem:[#allocation11 + $0x1d4] ss:$8 sps:$4 sm:$0xff]  }
 0x3a2   :  { %5902 = vmatpush1.bf16.msra.mxu0 %v7313_v37  ;;  %v3850_v37 = vrot.slane %v7866_v0, %v598_v60  ;;  %v5552_v60 = vrot.slane %v5547_v58, %v7797_v4  ;;  %v5556_v0 = vrot.slane %v5547_v58, %v7802_v9 }
 0x3a3   :  { %5903 = vmatprep.subr.bf16.mxu0 %v7318_v15  ;;  %v7367_v15 = vld [vmem:[#allocation11 + $0x1d0] ss:$8 sps:$4 sm:$0xff]  }
 0x3a6   :  { %5904 = vmatpush1.bf16.msra.mxu0 %v7316_v49  ;;  %v7372_v49 = vld [vmem:[#allocation11 + $0x1e4] ss:$8 sps:$4 sm:$0xff]  }
 0x3a7   :  { %5905 = vmatprep.subr.bf16.mxu0 %v7321_v44 }
 0x3aa   :  { %5906 = vmatpush1.bf16.msra.mxu0 %v7319_v51  ;;  %v7370_v51 = vld [vmem:[#allocation11 + $0x1e0] ss:$8 sps:$4 sm:$0xff]  }
 0x3ab   :  { %5907 = vmatprep.subr.bf16.mxu0 %v7324_v52  ;;  %v7375_v52 = vld [vmem:[#allocation11 + $0x1f4] ss:$8 sps:$4 sm:$0xff]  }
 0x3ae   :  { %5908 = vmatpush1.bf16.msra.mxu0 %v7322_v17 }
 0x3af   :  { %5909 = vmatprep.subr.bf16.mxu0 %v7327_v56  ;;  %v7373_v56 = vld [vmem:[#allocation11 + $0x1f0] ss:$8 sps:$4 sm:$0xff]  }
 0x3b2   :  { %5910 = vmatpush1.bf16.msra.mxu0 %v7325_v57 }
 0x3b3   :  { %5920 = vmatprep.subr.bf16.mxu0 %v7330_v61 }
 0x448   :  { %v5296_v38 = vpop.f32.mrb[8].mxu0 }
 0x449   :  { %v6796_v62 = vadd.f32 %v5296_v38, %v3842_v2  ;;  %v5298_v22 = vpop.f32.mrb[9].mxu0  ;;  %v5967_v2 = vld [vmem:[#allocation14] sm:$0x3] }
 0x44a   :  { %v6797_v5 = vadd.f32 %v5298_v22, %v3846_v3  ;;  %v5300_v30 = vpop.f32.mrb[10].mxu0 }
 0x44b   :  { %vm5467_vm8 = vcmp.gt.f32.partialorder %v6796_v62, 0.0  ;;  %v5471_v6 = vmul.f32 0.2, %v6796_v62  ;;  %v5301_v29 = vpop.f32.mrb[11].mxu0  ;;  %v5972_v30 = vrot.slane %v5967_v2, %v7797_v4 }
 0x44c   :  { %vm5468_vm9 = vcmp.gt.f32.partialorder %v6797_v5, 0.0  ;;  %v5472_v7 = vmul.f32 0.2, %v6797_v5 }
 0x44d   :  { %v5475_v10 = vsel %vm5467_vm8, %v6796_v62, %v5471_v6 }
 0x44e   :  { %v5476_v11 = vsel %vm5468_vm9, %v6797_v5, %v5472_v7  ;;  %v5479_v13 = vpack.c.bf16 %v5475_v10, %v5475_v10  ;;  %v5976_v7 = vrot.slane %v5967_v2, %v7802_v9 }
 0x44f   :  { %v5480_v12 = vpack.c.bf16 %v5476_v11, %v5476_v11 }
 0x451   :  { %5911 = vmatprep.mubr.bf16.mxu0 %v5480_v12 }
 0x452   :  { %5912 = vmatmul.mubr.bf16.vlgmr.msra.gmra.mrb[12].mxu0 %v5479_v13 }
 0x453   :  { %5921 = vmatpush1.bf16.msra.mxu0 %v7328_v23 }
 0x454   :  { %5922 = vmatprep.subr.bf16.mxu0 %v7333_v14 }
 0x457   :  { %5923 = vmatpush1.bf16.msra.mxu0 %v7331_v16  ;;  %v6784_v16 = vld [vmem:[#allocation2] ss:$0 sm:$0xff] }
 0x458   :  { %5924 = vmatprep.subr.bf16.mxu0 %v7336_v18 }
 0x45b   :  { %5925 = vmatpush1.bf16.msra.mxu0 %v7334_v19 }
 0x45c   :  { %5926 = vmatprep.subr.bf16.mxu0 %v7339_v21 }
 0x45f   :  { %5927 = vmatpush1.bf16.msra.mxu0 %v7337_v8 }
 0x460   :  { %5928 = vmatprep.subr.bf16.mxu0 %v7342_v24 }
 0x463   :  { %5929 = vmatpush1.bf16.msra.mxu0 %v7340_v25 }
 0x464   :  { %5930 = vmatprep.subr.bf16.mxu0 %v7345_v26 }
 0x467   :  { %5931 = vmatpush1.bf16.msra.mxu0 %v7343_v27 }
 0x468   :  { %5932 = vmatprep.subr.bf16.mxu0 %v7348_v54 }
 0x46b   :  { %5933 = vmatpush1.bf16.msra.mxu0 %v7346_v28  ;;  %v5460_v32 = vpop.f32.mrb[12].mxu1 }
 0x46c   :  { %v5462_v35 = vpop.f32.mrb[13].mxu1  ;;  %5934 = vmatprep.subr.bf16.mxu0 %v7351_v55  ;;  %v6798_v44 = vadd.f32 %v5460_v32, %v3850_v37 }
 0x46d   :  { %v6799_v39 = vadd.f32 %v5462_v35, %v3854_v31  ;;  %v5464_v40 = vpop.f32.mrb[14].mxu1 }
 0x46e   :  { %v5465_v41 = vpop.f32.mrb[15].mxu1  ;;  %v5473_v17 = vmul.f32 0.2, %v6798_v44  ;;  %vm5469_vm11 = vcmp.gt.f32.partialorder %v6798_v44, 0.0 }
 0x46f   :  { %vm5470_vm10 = vcmp.gt.f32.partialorder %v6799_v39, 0.0  ;;  %v5474_v42 = vmul.f32 0.2, %v6799_v39  ;;  %5935 = vmatpush1.bf16.msra.mxu0 %v7349_v33 }
 0x470   :  { %5936 = vmatprep.subr.bf16.mxu0 %v7354_v36  ;;  %v5477_v57 = vsel %vm5469_vm11, %v6798_v44, %v5473_v17 }
 0x471   :  { %v5478_v20 = vsel %vm5470_vm10, %v6799_v39, %v5474_v42  ;;  %v5481_v61 = vpack.c.bf16 %v5477_v57, %v5477_v57 }
 0x472   :  { %v5482_v59 = vpack.c.bf16 %v5478_v20, %v5478_v20 }
 0x473   :  { %5937 = vmatpush1.bf16.msra.mxu0 %v7352_v48 }
 0x474   :  { %5952 = vmatprep.mubr.bf16.mxu0 %v5482_v59  ;;  %5938 = vmatprep.subr.bf16.mxu0 %v7357_v43 }
 0x477   :  { %5939 = vmatpush1.bf16.msra.mxu0 %v7355_v53 }
 0x478   :  { %5940 = vmatprep.subr.bf16.mxu0 %v7360_v63 }
 0x47b   :  { %5941 = vmatpush1.bf16.msra.mxu0 %v7358_v45 }
 0x47c   :  { %5942 = vmatprep.subr.bf16.mxu0 %v7363_v46 }
 0x47f   :  { %5943 = vmatpush1.bf16.msra.mxu0 %v7361_v47 }
 0x480   :  { %5944 = vmatprep.subr.bf16.mxu0 %v7366_v34 }
 0x483   :  { %5945 = vmatpush1.bf16.msra.mxu0 %v7364_v1 }
 0x484   :  { %5946 = vmatprep.subr.bf16.mxu0 %v7369_v50 }
 0x487   :  { %5947 = vmatpush1.bf16.msra.mxu0 %v7367_v15 }
 0x488   :  { %5948 = vmatprep.subr.bf16.mxu0 %v7372_v49 }
 0x48b   :  { %5949 = vmatpush1.bf16.msra.mxu0 %v7370_v51 }
 0x48c   :  { %5950 = vmatprep.subr.bf16.mxu0 %v7375_v52 }
 0x48f   :  { %5951 = vmatpush1.bf16.msra.mxu0 %v7373_v56 }
 0x492   :  { %5953 = vmatmul.mubr.bf16.vlgmr.msra.gmra.mrb[12].mxu0 %v5481_v61 }
 0x565   :  { %v5954_v3 = vpop.f32.mrb[12].mxu0 }
 0x566   :  { %v6800_v38 = vadd.f32 %v5954_v3, %v5552_v60  ;;  %v5956_v62 = vpop.f32.mrb[13].mxu0 }
 0x567   :  { %v6801_v22 = vadd.f32 %v5956_v62, %v5556_v0  ;;  %v5958_v5 = vpop.f32.mrb[14].mxu0 }
 0x568   :  { %vm5961_vm12 = vcmp.gt.f32.partialorder %v6800_v38, 0.0  ;;  %v5963_v6 = vmul.f32 0.2, %v6800_v38  ;;  %v5959_v29 = vpop.f32.mrb[15].mxu0 }
 0x569   :  { %vm5962_vm13 = vcmp.gt.f32.partialorder %v6801_v22, 0.0  ;;  %v5964_v10 = vmul.f32 0.2, %v6801_v22 }
 0x56a   :  { %v5965_v11 = vsel %vm5961_vm12, %v6800_v38, %v5963_v6 }
 0x56b   :  { %v5966_v12 = vsel %vm5962_vm13, %v6801_v22, %v5964_v10  ;;  %v5979_v23 = vmul.f32 %v5972_v30, %v5965_v11 }
 0x56c   :  { %v5980_v13 = vmul.f32 %v5976_v7, %v5966_v12 }
 0x56e   :  { %v5981_v14 = vadd.f32 %v5980_v13, %v5979_v23 }
 0x570   :  { %5982 = vadd.xlane.f32.xlu0 %v5981_v14 }
 0x5fd   :  { %v5983_v18 = vpop.xlane.xlu0 %5982 }
 0x5fe   :  { %v5991_v19 = vadd.f32 %v6784_v16, %v5983_v18 }
 0x600   :  { %v6785_v21 = vmul.f32 -1.442695, %v5991_v19 }
 0x602   :  { %7376 = vpow2.f32 %v6785_v21 }
 0x60c   :  { %v7377_v8 = vpop.eup %7376 }
 0x60d   :  { %v5995_v4 = vadd.f32 1.0, %v7377_v8 }
 0x60f   :  { %7378 = vrcp.f32 %v5995_v4 }
 0x619   :  { %v7379_v24 = vpop.eup %7378 }
 0x61a   :  { %5999 = vst.msk [vmem:[%s7894_s9] sm:$0xff] %vm5998_vm14, %v7379_v24 }
 0x61b   :  { %6004 = vsyncpa [#allocation4], 1 }
 0x61c   :  { %6005 = vsyncpa [#allocation6], 1 }
 0x61d   :  { %6006 = vsyncpa [#allocation9], 1 }
 0x61e   :  { %6007 = vsyncpa [#allocation12], 1 }
 0x61f   :  { %6008 = vsyncpa [#allocation15], 1 }

</bundles_post_ra>
